<compile_context>
chip_gen: v6e
topology: v6e:2x2x1
jax: 0.10.0
libtpu: 0.0.40
codegen_flags: <defaults>
</compile_context>

<pallas_src>
import jax
import jax.numpy as jnp
from jax.experimental import pallas as pl
from jax.experimental.pallas import tpu as pltpu

UV_DIM = 2
CODE_DIM = 8
HIDDEN = 256
OUT_DIM = 3

UV_PAD = 8       # uv lanes (streamed narrow)
CODE_PAD = 8     # code lanes (== CODE_DIM here)
OUT_PAD = 8      # output lanes (streamed narrow)


def _lrelu(v):
    # LeakyReLU(0.2) == max(v, 0.2*v) for slope in (0, 1): 2 VALU ops, no select.
    return jnp.maximum(v, 0.2 * v)


def cycle_decoder_kernel(uv_ref, code_ref,
                         w_in_ref, b_in_ref,
                         w0_ref, b0_ref,
                         wr_ref, br_ref,
                         wout_ref, bout_ref,
                         o_ref):
    f32 = jnp.float32
    bf16 = jnp.bfloat16

    def mm(x, w):
        # bf16 x bf16 matmul on the MXU, f32 accumulation.
        return jnp.dot(x.astype(bf16), w, preferred_element_type=f32)

    # in_linear(uv) + code, leaky_relu(0.2).  The code add is folded into the
    # bias: (1,8)+(1,8) for per-batch code, (TM,8) elementwise for per-row.
    bias0 = b_in_ref[...] + code_ref[...]
    x = _lrelu(mm(uv_ref[...], w_in_ref[...]) + bias0)          # (TM, 8)

    # block: Linear(code_dim, 256) -> LReLU -> Linear(256, 256)
    x = _lrelu(mm(x, w0_ref[...]) + b0_ref[...])                # (TM, 256)
    x = mm(x, wr_ref[0]) + br_ref[0]

    # four residual blocks: x = x + (L -> LReLU -> L -> LReLU -> L)(x)
    for r in range(4):
        base = 1 + 3 * r
        h = _lrelu(mm(x, wr_ref[base]) + br_ref[base])
        h = _lrelu(mm(h, wr_ref[base + 1]) + br_ref[base + 1])
        x = x + (mm(h, wr_ref[base + 2]) + br_ref[base + 2])

    # block2: Linear(256, 3) + tanh.  tanh runs on the EUP slot; only the
    # narrow 8-lane tile is written back.
    o_ref[...] = jnp.tanh(mm(x, wout_ref[...]) + bout_ref[...])


def init_params(key):
    """Deterministic synthetic parameters (JAX convention: W is [in, out])."""
    ks = jax.random.split(key, 32)
    k = iter(ks)

    def lin(kin, kb, fan_in, fan_out):
        scale = 1.0 / jnp.sqrt(jnp.float32(fan_in))
        w = jax.random.uniform(kin, (fan_in, fan_out), jnp.float32, -scale, scale)
        b = jax.random.uniform(kb, (fan_out,), jnp.float32, -scale, scale)
        return w, b

    p = {}
    p["w_in"], p["b_in"] = lin(next(k), next(k), UV_DIM, CODE_DIM)
    p["w0"], p["b0"] = lin(next(k), next(k), CODE_DIM, HIDDEN)      # block linear 0
    # 13 hidden (256,256) linears: block linear 1, then 3 per rblock * 4
    wrs, brs = [], []
    for _ in range(13):
        w, b = lin(next(k), next(k), HIDDEN, HIDDEN)
        wrs.append(w)
        brs.append(b)
    p["wr"] = jnp.stack(wrs)           # (13, 256, 256)
    p["br"] = jnp.stack(brs)           # (13, 256)
    p["wout"], p["bout"] = lin(next(k), next(k), HIDDEN, OUT_DIM)
    return p


def _choose_tm(B, N, target=1024):
    """Row-tile size.

    Big enough to amortize the ~0.35us per-grid-step overhead (target 1024),
    small enough to keep >=2 grid programs, and -- when the program count is
    small -- an even count so v7x's two TensorCores are both busy.
    """
    n_pad8 = pl.cdiv(N, 8) * 8
    tm = min(target, n_pad8)
    while tm > 8:
        n_prog = B * pl.cdiv(N, tm)
        if n_prog >= 2 and (n_prog % 2 == 0 or n_prog >= 8):
            break
        tm = max(8, pl.cdiv(tm // 2, 8) * 8)   # halve, keep multiple of 8
    return tm


@jax.jit
def cycle_decoder_pallas(uv, code, params):
    """uv: (B, N, uv_dim), code: (B, 1, code_dim) or (B, N, code_dim)."""
    B, N, _ = uv.shape
    TM = _choose_tm(B, N)
    n_tiles = pl.cdiv(N, TM)
    N_pad = n_tiles * TM

    f32 = jnp.float32
    bf16 = jnp.bfloat16

    # Row-pad and (narrow) lane-pad uv; zeros preserve the math and padded
    # rows are sliced off at the end.
    uv_p = jnp.pad(uv.astype(f32), ((0, 0), (0, N_pad - N), (0, UV_PAD - UV_DIM)))

    if code.shape[1] == 1:
        # Per-batch code: a tiny (B, 1, 8) block per grid step.
        code_p = jnp.pad(code.astype(f32), ((0, 0), (0, 0), (0, CODE_PAD - CODE_DIM)))
        code_spec = pl.BlockSpec((None, 1, CODE_PAD), lambda b, i: (b, 0, 0))
    else:
        # Per-row code: streamed narrow, never broadcast to 128 lanes in HBM.
        code_b = jnp.broadcast_to(code, (B, N, CODE_DIM)).astype(f32)
        code_p = jnp.pad(code_b, ((0, 0), (0, N_pad - N), (0, CODE_PAD - CODE_DIM)))
        code_spec = pl.BlockSpec((None, TM, CODE_PAD), lambda b, i: (b, i, 0))

    # Weights in bf16 (fast MXU path, half the resident VMEM); biases in f32.
    w_in = jnp.zeros((UV_PAD, CODE_PAD), f32).at[:UV_DIM, :CODE_DIM].set(params["w_in"]).astype(bf16)
    b_in = jnp.zeros((1, CODE_PAD), f32).at[0, :CODE_DIM].set(params["b_in"])
    w0 = jnp.zeros((CODE_PAD, HIDDEN), f32).at[:CODE_DIM, :].set(params["w0"]).astype(bf16)
    b0 = params["b0"].reshape(1, HIDDEN).astype(f32)
    wr = params["wr"].astype(bf16)                          # (13, 256, 256)
    br = params["br"].reshape(13, 1, HIDDEN).astype(f32)    # (13, 1, 256) -> sublane bcast
    wout = jnp.zeros((HIDDEN, OUT_PAD), f32).at[:, :OUT_DIM].set(params["wout"]).astype(bf16)
    bout = jnp.zeros((1, OUT_PAD), f32).at[0, :OUT_DIM].set(params["bout"])

    # Grid-invariant weights/biases: constant index map + single-buffered
    # (no point double-buffering a block that never changes).
    resident = pl.Buffered(1)

    def full(shape):
        nd = len(shape)
        return pl.BlockSpec(shape, lambda *_: (0,) * nd, pipeline_mode=resident)

    out = pl.pallas_call(
        cycle_decoder_kernel,
        out_shape=jax.ShapeDtypeStruct((B, N_pad, OUT_PAD), f32),
        grid_spec=pltpu.PrefetchScalarGridSpec(
            num_scalar_prefetch=0,
            grid=(B, n_tiles),
            in_specs=[
                pl.BlockSpec((None, TM, UV_PAD), lambda b, i: (b, i, 0)),   # uv (narrow)
                code_spec,                                                  # code (narrow)
                full((UV_PAD, CODE_PAD)),                                   # w_in
                full((1, CODE_PAD)),                                        # b_in
                full((CODE_PAD, HIDDEN)),                                   # w0
                full((1, HIDDEN)),                                          # b0
                full((13, HIDDEN, HIDDEN)),                                 # wr stack
                full((13, 1, HIDDEN)),                                      # br stack
                full((HIDDEN, OUT_PAD)),                                    # wout
                full((1, OUT_PAD)),                                         # bout
            ],
            out_specs=pl.BlockSpec((None, TM, OUT_PAD), lambda b, i: (b, i, 0)),
        ),
        compiler_params=pltpu.CompilerParams(
            dimension_semantics=("parallel", "parallel"),
            # Explicit budget: safe on v5e/v6e (128 MiB physical) and leaves
            # headroom under v7x's 64 MiB physical VMEM even at TM=1024.
            vmem_limit_bytes=48 * 1024 * 1024,
        ),
    )(uv_p, code_p, w_in, b_in, w0, b0, wr, br, wout, bout)

    # tanh already applied in-kernel; just drop padded rows / lanes.
    return out[:, :N, :OUT_DIM]


def cycle_decoder_ref(uv, code, params):
    """Pure-JAX f32 reference mirroring the PyTorch forward."""
    B, N, _ = uv.shape
    code = jnp.broadcast_to(code, (B, N, CODE_DIM))
    x = uv @ params["w_in"] + params["b_in"]
    x = _lrelu(x + code)
    x = _lrelu(x @ params["w0"] + params["b0"])
    x = x @ params["wr"][0] + params["br"][0]
    for r in range(4):
        base = 1 + 3 * r
        h = _lrelu(x @ params["wr"][base] + params["br"][base])
        h = _lrelu(h @ params["wr"][base + 1] + params["br"][base + 1])
        h = h @ params["wr"][base + 2] + params["br"][base + 2]
        x = x + h
    return jnp.tanh(x @ params["wout"] + params["bout"])


def cycle_decoder_ref_mixed(uv, code, params):
    """Same mixed precision as the kernel: bf16 operands into dots, f32 accum."""
    bf16, f32 = jnp.bfloat16, jnp.float32

    def mm(a, w):
        return jnp.dot(a.astype(bf16), w.astype(bf16), preferred_element_type=f32)

    B, N, _ = uv.shape
    code = jnp.broadcast_to(code, (B, N, CODE_DIM)).astype(f32)
    x = mm(uv.astype(f32), params["w_in"]) + params["b_in"]
    x = _lrelu(x + code)
    x = _lrelu(mm(x, params["w0"]) + params["b0"])
    x = mm(x, params["wr"][0]) + params["br"][0]
    for r in range(4):
        base = 1 + 3 * r
        h = _lrelu(mm(x, params["wr"][base]) + params["br"][base])
        h = _lrelu(mm(h, params["wr"][base + 1]) + params["br"][base + 1])
        h = mm(h, params["wr"][base + 2]) + params["br"][base + 2]
        x = x + h
    return jnp.tanh(mm(x, params["wout"]) + params["bout"])


if __name__ == "__main__":
    key = jax.random.PRNGKey(0)
    kp, ku, kc, ku2, kc2 = jax.random.split(key, 5)

    params = init_params(kp)

    # Case 1: per-batch code (the NeuTex usage).
    B, N = 2, 128
    uv = jax.random.uniform(ku, (B, N, UV_DIM), jnp.float32, -1.0, 1.0)
    code = jax.random.normal(kc, (B, 1, CODE_DIM), jnp.float32)

    out = jax.block_until_ready(cycle_decoder_pallas(uv, code, params))
    assert out.shape == (B, N, OUT_DIM)

    ref_mixed = cycle_decoder_ref_mixed(uv, code, params)
    assert jnp.allclose(out, ref_mixed, atol=1e-3, rtol=1e-3), "mismatch vs mixed-precision reference"
    ref_f32 = cycle_decoder_ref(uv, code, params)
    assert jnp.allclose(out, ref_f32, atol=1e-1, rtol=1e-1), "mismatch vs f32 reference"

    # Case 2: per-row code + ragged N (exercises row padding and the other
    # code branch).
    B2, N2 = 1, 57
    uv2 = jax.random.uniform(ku2, (B2, N2, UV_DIM), jnp.float32, -1.0, 1.0)
    code2 = jax.random.normal(kc2, (B2, N2, CODE_DIM), jnp.float32)

    out2 = jax.block_until_ready(cycle_decoder_pallas(uv2, code2, params))
    assert out2.shape == (B2, N2, OUT_DIM)
    ref2 = cycle_decoder_ref_mixed(uv2, code2, params)
    assert jnp.allclose(out2, ref2, atol=1e-3, rtol=1e-3), "mismatch vs mixed-precision reference (case 2)"

    print("KERNEL_OK")
</pallas_src>

<mosaic_0001>
module attributes {stable_mosaic.version = 11 : i64} {
  func.func @cycle_decoder_kernel(%arg0: i32, %arg1: i32, %arg2: memref<1x128x8xf32, #tpu.memory_space<vmem>>, %arg3: memref<1x1x8xf32, #tpu.memory_space<vmem>>, %arg4: memref<8x8xbf16, #tpu.memory_space<vmem>>, %arg5: memref<1x8xf32, #tpu.memory_space<vmem>>, %arg6: memref<8x256xbf16, #tpu.memory_space<vmem>>, %arg7: memref<1x256xf32, #tpu.memory_space<vmem>>, %arg8: memref<13x256x256xbf16, #tpu.memory_space<vmem>>, %arg9: memref<13x1x256xf32, #tpu.memory_space<vmem>>, %arg10: memref<256x8xbf16, #tpu.memory_space<vmem>>, %arg11: memref<1x8xf32, #tpu.memory_space<vmem>>, %arg12: memref<1x128x8xf32, #tpu.memory_space<vmem>>) attributes {dimension_semantics = [#tpu.dimension_semantics<parallel>, #tpu.dimension_semantics<parallel>], iteration_bounds = array<i64: 2, 1>, scalar_prefetch = 0 : i64, scratch_operands = 0 : i64, tpu.core_type = #tpu.core_type<tc>, window_params = [{transform_indices = @transform_0, window_bounds = array<i64: 1, 128, 8>}, {transform_indices = @transform_1, window_bounds = array<i64: 1, 1, 8>}, {pipeline_mode = #tpu.pipeline_mode<synchronous>, transform_indices = @transform_2, window_bounds = array<i64: 8, 8>}, {pipeline_mode = #tpu.pipeline_mode<synchronous>, transform_indices = @transform_3, window_bounds = array<i64: 1, 8>}, {pipeline_mode = #tpu.pipeline_mode<synchronous>, transform_indices = @transform_4, window_bounds = array<i64: 8, 256>}, {pipeline_mode = #tpu.pipeline_mode<synchronous>, transform_indices = @transform_5, window_bounds = array<i64: 1, 256>}, {pipeline_mode = #tpu.pipeline_mode<synchronous>, transform_indices = @transform_6, window_bounds = array<i64: 13, 256, 256>}, {pipeline_mode = #tpu.pipeline_mode<synchronous>, transform_indices = @transform_7, window_bounds = array<i64: 13, 1, 256>}, {pipeline_mode = #tpu.pipeline_mode<synchronous>, transform_indices = @transform_8, window_bounds = array<i64: 256, 8>}, {pipeline_mode = #tpu.pipeline_mode<synchronous>, transform_indices = @transform_9, window_bounds = array<i64: 1, 8>}, {transform_indices = @transform_10, window_bounds = array<i64: 1, 128, 8>}]} {
    %c0 = arith.constant 0 : index
    %c0_0 = arith.constant 0 : index
    %0 = vector.load %arg5[%c0, %c0_0] : memref<1x8xf32, #tpu.memory_space<vmem>>, vector<1x8xf32>
    %c0_1 = arith.constant 0 : index
    %c0_2 = arith.constant 0 : index
    %c0_3 = arith.constant 0 : index
    %1 = vector.load %arg3[%c0_1, %c0_2, %c0_3] : memref<1x1x8xf32, #tpu.memory_space<vmem>>, vector<1x1x8xf32>
    %2 = vector.shape_cast %1 : vector<1x1x8xf32> to vector<1x8xf32>
    %3 = arith.addf %0, %2 : vector<1x8xf32>
    %c0_4 = arith.constant 0 : index
    %c0_5 = arith.constant 0 : index
    %c0_6 = arith.constant 0 : index
    %4 = vector.load %arg2[%c0_4, %c0_5, %c0_6] : memref<1x128x8xf32, #tpu.memory_space<vmem>>, vector<1x128x8xf32>
    %5 = vector.shape_cast %4 : vector<1x128x8xf32> to vector<128x8xf32>
    %c0_7 = arith.constant 0 : index
    %c0_8 = arith.constant 0 : index
    %6 = vector.load %arg4[%c0_7, %c0_8] : memref<8x8xbf16, #tpu.memory_space<vmem>>, vector<8x8xbf16>
    %7 = arith.truncf %5 : vector<128x8xf32> to vector<128x8xbf16>
    %cst = arith.constant dense<0.000000e+00> : vector<128x8xf32>
    %8 = tpu.matmul %7, %6, %cst {dimension_numbers = #tpu.dot_dimension_numbers<[1], [0], [0], [1], [0, 0, 1, 1], [], []>} : vector<128x8xbf16>, vector<8x8xbf16>, vector<128x8xf32> -> vector<128x8xf32>
    %9 = vector.broadcast %3 : vector<1x8xf32> to vector<128x8xf32>
    %10 = arith.addf %8, %9 : vector<128x8xf32>
    %cst_9 = arith.constant 2.000000e-01 : f32
    %11 = vector.broadcast %cst_9 : f32 to vector<128x8xf32>
    %12 = arith.mulf %11, %10 : vector<128x8xf32>
    %13 = arith.maximumf %10, %12 : vector<128x8xf32>
    %c0_10 = arith.constant 0 : index
    %c0_11 = arith.constant 0 : index
    %14 = vector.load %arg6[%c0_10, %c0_11] : memref<8x256xbf16, #tpu.memory_space<vmem>>, vector<8x256xbf16>
    %15 = arith.truncf %13 : vector<128x8xf32> to vector<128x8xbf16>
    %cst_12 = arith.constant dense<0.000000e+00> : vector<128x256xf32>
    %16 = tpu.matmul %15, %14, %cst_12 {dimension_numbers = #tpu.dot_dimension_numbers<[1], [0], [0], [1], [0, 0, 1, 1], [], []>} : vector<128x8xbf16>, vector<8x256xbf16>, vector<128x256xf32> -> vector<128x256xf32>
    %c0_13 = arith.constant 0 : index
    %c0_14 = arith.constant 0 : index
    %17 = vector.load %arg7[%c0_13, %c0_14] : memref<1x256xf32, #tpu.memory_space<vmem>>, vector<1x256xf32>
    %18 = vector.broadcast %17 : vector<1x256xf32> to vector<128x256xf32>
    %19 = arith.addf %16, %18 : vector<128x256xf32>
    %cst_15 = arith.constant 2.000000e-01 : f32
    %20 = vector.broadcast %cst_15 : f32 to vector<128x256xf32>
    %21 = arith.mulf %20, %19 : vector<128x256xf32>
    %22 = arith.maximumf %19, %21 : vector<128x256xf32>
    %c0_16 = arith.constant 0 : index
    %c0_17 = arith.constant 0 : index
    %c0_18 = arith.constant 0 : index
    %23 = vector.load %arg8[%c0_16, %c0_17, %c0_18] : memref<13x256x256xbf16, #tpu.memory_space<vmem>>, vector<1x256x256xbf16>
    %24 = vector.shape_cast %23 : vector<1x256x256xbf16> to vector<256x256xbf16>
    %25 = arith.truncf %22 : vector<128x256xf32> to vector<128x256xbf16>
    %cst_19 = arith.constant dense<0.000000e+00> : vector<128x256xf32>
    %26 = tpu.matmul %25, %24, %cst_19 {dimension_numbers = #tpu.dot_dimension_numbers<[1], [0], [0], [1], [0, 0, 1, 1], [], []>} : vector<128x256xbf16>, vector<256x256xbf16>, vector<128x256xf32> -> vector<128x256xf32>
    %c0_20 = arith.constant 0 : index
    %c0_21 = arith.constant 0 : index
    %c0_22 = arith.constant 0 : index
    %27 = vector.load %arg9[%c0_20, %c0_21, %c0_22] : memref<13x1x256xf32, #tpu.memory_space<vmem>>, vector<1x1x256xf32>
    %28 = vector.shape_cast %27 : vector<1x1x256xf32> to vector<1x256xf32>
    %29 = vector.broadcast %28 : vector<1x256xf32> to vector<128x256xf32>
    %30 = arith.addf %26, %29 : vector<128x256xf32>
    %c1 = arith.constant 1 : index
    %c0_23 = arith.constant 0 : index
    %c0_24 = arith.constant 0 : index
    %31 = vector.load %arg8[%c1, %c0_23, %c0_24] : memref<13x256x256xbf16, #tpu.memory_space<vmem>>, vector<1x256x256xbf16>
    %32 = vector.shape_cast %31 : vector<1x256x256xbf16> to vector<256x256xbf16>
    %33 = arith.truncf %30 : vector<128x256xf32> to vector<128x256xbf16>
    %cst_25 = arith.constant dense<0.000000e+00> : vector<128x256xf32>
    %34 = tpu.matmul %33, %32, %cst_25 {dimension_numbers = #tpu.dot_dimension_numbers<[1], [0], [0], [1], [0, 0, 1, 1], [], []>} : vector<128x256xbf16>, vector<256x256xbf16>, vector<128x256xf32> -> vector<128x256xf32>
    %c1_26 = arith.constant 1 : index
    %c0_27 = arith.constant 0 : index
    %c0_28 = arith.constant 0 : index
    %35 = vector.load %arg9[%c1_26, %c0_27, %c0_28] : memref<13x1x256xf32, #tpu.memory_space<vmem>>, vector<1x1x256xf32>
    %36 = vector.shape_cast %35 : vector<1x1x256xf32> to vector<1x256xf32>
    %37 = vector.broadcast %36 : vector<1x256xf32> to vector<128x256xf32>
    %38 = arith.addf %34, %37 : vector<128x256xf32>
    %cst_29 = arith.constant 2.000000e-01 : f32
    %39 = vector.broadcast %cst_29 : f32 to vector<128x256xf32>
    %40 = arith.mulf %39, %38 : vector<128x256xf32>
    %41 = arith.maximumf %38, %40 : vector<128x256xf32>
    %c2 = arith.constant 2 : index
    %c0_30 = arith.constant 0 : index
    %c0_31 = arith.constant 0 : index
    %42 = vector.load %arg8[%c2, %c0_30, %c0_31] : memref<13x256x256xbf16, #tpu.memory_space<vmem>>, vector<1x256x256xbf16>
    %43 = vector.shape_cast %42 : vector<1x256x256xbf16> to vector<256x256xbf16>
    %44 = arith.truncf %41 : vector<128x256xf32> to vector<128x256xbf16>
    %cst_32 = arith.constant dense<0.000000e+00> : vector<128x256xf32>
    %45 = tpu.matmul %44, %43, %cst_32 {dimension_numbers = #tpu.dot_dimension_numbers<[1], [0], [0], [1], [0, 0, 1, 1], [], []>} : vector<128x256xbf16>, vector<256x256xbf16>, vector<128x256xf32> -> vector<128x256xf32>
    %c2_33 = arith.constant 2 : index
    %c0_34 = arith.constant 0 : index
    %c0_35 = arith.constant 0 : index
    %46 = vector.load %arg9[%c2_33, %c0_34, %c0_35] : memref<13x1x256xf32, #tpu.memory_space<vmem>>, vector<1x1x256xf32>
    %47 = vector.shape_cast %46 : vector<1x1x256xf32> to vector<1x256xf32>
    %48 = vector.broadcast %47 : vector<1x256xf32> to vector<128x256xf32>
    %49 = arith.addf %45, %48 : vector<128x256xf32>
    %cst_36 = arith.constant 2.000000e-01 : f32
    %50 = vector.broadcast %cst_36 : f32 to vector<128x256xf32>
    %51 = arith.mulf %50, %49 : vector<128x256xf32>
    %52 = arith.maximumf %49, %51 : vector<128x256xf32>
    %c3 = arith.constant 3 : index
    %c0_37 = arith.constant 0 : index
    %c0_38 = arith.constant 0 : index
    %53 = vector.load %arg8[%c3, %c0_37, %c0_38] : memref<13x256x256xbf16, #tpu.memory_space<vmem>>, vector<1x256x256xbf16>
    %54 = vector.shape_cast %53 : vector<1x256x256xbf16> to vector<256x256xbf16>
    %55 = arith.truncf %52 : vector<128x256xf32> to vector<128x256xbf16>
    %cst_39 = arith.constant dense<0.000000e+00> : vector<128x256xf32>
    %56 = tpu.matmul %55, %54, %cst_39 {dimension_numbers = #tpu.dot_dimension_numbers<[1], [0], [0], [1], [0, 0, 1, 1], [], []>} : vector<128x256xbf16>, vector<256x256xbf16>, vector<128x256xf32> -> vector<128x256xf32>
    %c3_40 = arith.constant 3 : index
    %c0_41 = arith.constant 0 : index
    %c0_42 = arith.constant 0 : index
    %57 = vector.load %arg9[%c3_40, %c0_41, %c0_42] : memref<13x1x256xf32, #tpu.memory_space<vmem>>, vector<1x1x256xf32>
    %58 = vector.shape_cast %57 : vector<1x1x256xf32> to vector<1x256xf32>
    %59 = vector.broadcast %58 : vector<1x256xf32> to vector<128x256xf32>
    %60 = arith.addf %56, %59 : vector<128x256xf32>
    %61 = arith.addf %30, %60 : vector<128x256xf32>
    %c4 = arith.constant 4 : index
    %c0_43 = arith.constant 0 : index
    %c0_44 = arith.constant 0 : index
    %62 = vector.load %arg8[%c4, %c0_43, %c0_44] : memref<13x256x256xbf16, #tpu.memory_space<vmem>>, vector<1x256x256xbf16>
    %63 = vector.shape_cast %62 : vector<1x256x256xbf16> to vector<256x256xbf16>
    %64 = arith.truncf %61 : vector<128x256xf32> to vector<128x256xbf16>
    %cst_45 = arith.constant dense<0.000000e+00> : vector<128x256xf32>
    %65 = tpu.matmul %64, %63, %cst_45 {dimension_numbers = #tpu.dot_dimension_numbers<[1], [0], [0], [1], [0, 0, 1, 1], [], []>} : vector<128x256xbf16>, vector<256x256xbf16>, vector<128x256xf32> -> vector<128x256xf32>
    %c4_46 = arith.constant 4 : index
    %c0_47 = arith.constant 0 : index
    %c0_48 = arith.constant 0 : index
    %66 = vector.load %arg9[%c4_46, %c0_47, %c0_48] : memref<13x1x256xf32, #tpu.memory_space<vmem>>, vector<1x1x256xf32>
    %67 = vector.shape_cast %66 : vector<1x1x256xf32> to vector<1x256xf32>
    %68 = vector.broadcast %67 : vector<1x256xf32> to vector<128x256xf32>
    %69 = arith.addf %65, %68 : vector<128x256xf32>
    %cst_49 = arith.constant 2.000000e-01 : f32
    %70 = vector.broadcast %cst_49 : f32 to vector<128x256xf32>
    %71 = arith.mulf %70, %69 : vector<128x256xf32>
    %72 = arith.maximumf %69, %71 : vector<128x256xf32>
    %c5 = arith.constant 5 : index
    %c0_50 = arith.constant 0 : index
    %c0_51 = arith.constant 0 : index
    %73 = vector.load %arg8[%c5, %c0_50, %c0_51] : memref<13x256x256xbf16, #tpu.memory_space<vmem>>, vector<1x256x256xbf16>
    %74 = vector.shape_cast %73 : vector<1x256x256xbf16> to vector<256x256xbf16>
    %75 = arith.truncf %72 : vector<128x256xf32> to vector<128x256xbf16>
    %cst_52 = arith.constant dense<0.000000e+00> : vector<128x256xf32>
    %76 = tpu.matmul %75, %74, %cst_52 {dimension_numbers = #tpu.dot_dimension_numbers<[1], [0], [0], [1], [0, 0, 1, 1], [], []>} : vector<128x256xbf16>, vector<256x256xbf16>, vector<128x256xf32> -> vector<128x256xf32>
    %c5_53 = arith.constant 5 : index
    %c0_54 = arith.constant 0 : index
    %c0_55 = arith.constant 0 : index
    %77 = vector.load %arg9[%c5_53, %c0_54, %c0_55] : memref<13x1x256xf32, #tpu.memory_space<vmem>>, vector<1x1x256xf32>
    %78 = vector.shape_cast %77 : vector<1x1x256xf32> to vector<1x256xf32>
    %79 = vector.broadcast %78 : vector<1x256xf32> to vector<128x256xf32>
    %80 = arith.addf %76, %79 : vector<128x256xf32>
    %cst_56 = arith.constant 2.000000e-01 : f32
    %81 = vector.broadcast %cst_56 : f32 to vector<128x256xf32>
    %82 = arith.mulf %81, %80 : vector<128x256xf32>
    %83 = arith.maximumf %80, %82 : vector<128x256xf32>
    %c6 = arith.constant 6 : index
    %c0_57 = arith.constant 0 : index
    %c0_58 = arith.constant 0 : index
    %84 = vector.load %arg8[%c6, %c0_57, %c0_58] : memref<13x256x256xbf16, #tpu.memory_space<vmem>>, vector<1x256x256xbf16>
    %85 = vector.shape_cast %84 : vector<1x256x256xbf16> to vector<256x256xbf16>
    %86 = arith.truncf %83 : vector<128x256xf32> to vector<128x256xbf16>
    %cst_59 = arith.constant dense<0.000000e+00> : vector<128x256xf32>
    %87 = tpu.matmul %86, %85, %cst_59 {dimension_numbers = #tpu.dot_dimension_numbers<[1], [0], [0], [1], [0, 0, 1, 1], [], []>} : vector<128x256xbf16>, vector<256x256xbf16>, vector<128x256xf32> -> vector<128x256xf32>
    %c6_60 = arith.constant 6 : index
    %c0_61 = arith.constant 0 : index
    %c0_62 = arith.constant 0 : index
    %88 = vector.load %arg9[%c6_60, %c0_61, %c0_62] : memref<13x1x256xf32, #tpu.memory_space<vmem>>, vector<1x1x256xf32>
    %89 = vector.shape_cast %88 : vector<1x1x256xf32> to vector<1x256xf32>
    %90 = vector.broadcast %89 : vector<1x256xf32> to vector<128x256xf32>
    %91 = arith.addf %87, %90 : vector<128x256xf32>
    %92 = arith.addf %61, %91 : vector<128x256xf32>
    %c7 = arith.constant 7 : index
    %c0_63 = arith.constant 0 : index
    %c0_64 = arith.constant 0 : index
    %93 = vector.load %arg8[%c7, %c0_63, %c0_64] : memref<13x256x256xbf16, #tpu.memory_space<vmem>>, vector<1x256x256xbf16>
    %94 = vector.shape_cast %93 : vector<1x256x256xbf16> to vector<256x256xbf16>
    %95 = arith.truncf %92 : vector<128x256xf32> to vector<128x256xbf16>
    %cst_65 = arith.constant dense<0.000000e+00> : vector<128x256xf32>
    %96 = tpu.matmul %95, %94, %cst_65 {dimension_numbers = #tpu.dot_dimension_numbers<[1], [0], [0], [1], [0, 0, 1, 1], [], []>} : vector<128x256xbf16>, vector<256x256xbf16>, vector<128x256xf32> -> vector<128x256xf32>
    %c7_66 = arith.constant 7 : index
    %c0_67 = arith.constant 0 : index
    %c0_68 = arith.constant 0 : index
    %97 = vector.load %arg9[%c7_66, %c0_67, %c0_68] : memref<13x1x256xf32, #tpu.memory_space<vmem>>, vector<1x1x256xf32>
    %98 = vector.shape_cast %97 : vector<1x1x256xf32> to vector<1x256xf32>
    %99 = vector.broadcast %98 : vector<1x256xf32> to vector<128x256xf32>
    %100 = arith.addf %96, %99 : vector<128x256xf32>
    %cst_69 = arith.constant 2.000000e-01 : f32
    %101 = vector.broadcast %cst_69 : f32 to vector<128x256xf32>
    %102 = arith.mulf %101, %100 : vector<128x256xf32>
    %103 = arith.maximumf %100, %102 : vector<128x256xf32>
    %c8 = arith.constant 8 : index
    %c0_70 = arith.constant 0 : index
    %c0_71 = arith.constant 0 : index
    %104 = vector.load %arg8[%c8, %c0_70, %c0_71] : memref<13x256x256xbf16, #tpu.memory_space<vmem>>, vector<1x256x256xbf16>
    %105 = vector.shape_cast %104 : vector<1x256x256xbf16> to vector<256x256xbf16>
    %106 = arith.truncf %103 : vector<128x256xf32> to vector<128x256xbf16>
    %cst_72 = arith.constant dense<0.000000e+00> : vector<128x256xf32>
    %107 = tpu.matmul %106, %105, %cst_72 {dimension_numbers = #tpu.dot_dimension_numbers<[1], [0], [0], [1], [0, 0, 1, 1], [], []>} : vector<128x256xbf16>, vector<256x256xbf16>, vector<128x256xf32> -> vector<128x256xf32>
    %c8_73 = arith.constant 8 : index
    %c0_74 = arith.constant 0 : index
    %c0_75 = arith.constant 0 : index
    %108 = vector.load %arg9[%c8_73, %c0_74, %c0_75] : memref<13x1x256xf32, #tpu.memory_space<vmem>>, vector<1x1x256xf32>
    %109 = vector.shape_cast %108 : vector<1x1x256xf32> to vector<1x256xf32>
    %110 = vector.broadcast %109 : vector<1x256xf32> to vector<128x256xf32>
    %111 = arith.addf %107, %110 : vector<128x256xf32>
    %cst_76 = arith.constant 2.000000e-01 : f32
    %112 = vector.broadcast %cst_76 : f32 to vector<128x256xf32>
    %113 = arith.mulf %112, %111 : vector<128x256xf32>
    %114 = arith.maximumf %111, %113 : vector<128x256xf32>
    %c9 = arith.constant 9 : index
    %c0_77 = arith.constant 0 : index
    %c0_78 = arith.constant 0 : index
    %115 = vector.load %arg8[%c9, %c0_77, %c0_78] : memref<13x256x256xbf16, #tpu.memory_space<vmem>>, vector<1x256x256xbf16>
    %116 = vector.shape_cast %115 : vector<1x256x256xbf16> to vector<256x256xbf16>
    %117 = arith.truncf %114 : vector<128x256xf32> to vector<128x256xbf16>
    %cst_79 = arith.constant dense<0.000000e+00> : vector<128x256xf32>
    %118 = tpu.matmul %117, %116, %cst_79 {dimension_numbers = #tpu.dot_dimension_numbers<[1], [0], [0], [1], [0, 0, 1, 1], [], []>} : vector<128x256xbf16>, vector<256x256xbf16>, vector<128x256xf32> -> vector<128x256xf32>
    %c9_80 = arith.constant 9 : index
    %c0_81 = arith.constant 0 : index
    %c0_82 = arith.constant 0 : index
    %119 = vector.load %arg9[%c9_80, %c0_81, %c0_82] : memref<13x1x256xf32, #tpu.memory_space<vmem>>, vector<1x1x256xf32>
    %120 = vector.shape_cast %119 : vector<1x1x256xf32> to vector<1x256xf32>
    %121 = vector.broadcast %120 : vector<1x256xf32> to vector<128x256xf32>
    %122 = arith.addf %118, %121 : vector<128x256xf32>
    %123 = arith.addf %92, %122 : vector<128x256xf32>
    %c10 = arith.constant 10 : index
    %c0_83 = arith.constant 0 : index
    %c0_84 = arith.constant 0 : index
    %124 = vector.load %arg8[%c10, %c0_83, %c0_84] : memref<13x256x256xbf16, #tpu.memory_space<vmem>>, vector<1x256x256xbf16>
    %125 = vector.shape_cast %124 : vector<1x256x256xbf16> to vector<256x256xbf16>
    %126 = arith.truncf %123 : vector<128x256xf32> to vector<128x256xbf16>
    %cst_85 = arith.constant dense<0.000000e+00> : vector<128x256xf32>
    %127 = tpu.matmul %126, %125, %cst_85 {dimension_numbers = #tpu.dot_dimension_numbers<[1], [0], [0], [1], [0, 0, 1, 1], [], []>} : vector<128x256xbf16>, vector<256x256xbf16>, vector<128x256xf32> -> vector<128x256xf32>
    %c10_86 = arith.constant 10 : index
    %c0_87 = arith.constant 0 : index
    %c0_88 = arith.constant 0 : index
    %128 = vector.load %arg9[%c10_86, %c0_87, %c0_88] : memref<13x1x256xf32, #tpu.memory_space<vmem>>, vector<1x1x256xf32>
    %129 = vector.shape_cast %128 : vector<1x1x256xf32> to vector<1x256xf32>
    %130 = vector.broadcast %129 : vector<1x256xf32> to vector<128x256xf32>
    %131 = arith.addf %127, %130 : vector<128x256xf32>
    %cst_89 = arith.constant 2.000000e-01 : f32
    %132 = vector.broadcast %cst_89 : f32 to vector<128x256xf32>
    %133 = arith.mulf %132, %131 : vector<128x256xf32>
    %134 = arith.maximumf %131, %133 : vector<128x256xf32>
    %c11 = arith.constant 11 : index
    %c0_90 = arith.constant 0 : index
    %c0_91 = arith.constant 0 : index
    %135 = vector.load %arg8[%c11, %c0_90, %c0_91] : memref<13x256x256xbf16, #tpu.memory_space<vmem>>, vector<1x256x256xbf16>
    %136 = vector.shape_cast %135 : vector<1x256x256xbf16> to vector<256x256xbf16>
    %137 = arith.truncf %134 : vector<128x256xf32> to vector<128x256xbf16>
    %cst_92 = arith.constant dense<0.000000e+00> : vector<128x256xf32>
    %138 = tpu.matmul %137, %136, %cst_92 {dimension_numbers = #tpu.dot_dimension_numbers<[1], [0], [0], [1], [0, 0, 1, 1], [], []>} : vector<128x256xbf16>, vector<256x256xbf16>, vector<128x256xf32> -> vector<128x256xf32>
    %c11_93 = arith.constant 11 : index
    %c0_94 = arith.constant 0 : index
    %c0_95 = arith.constant 0 : index
    %139 = vector.load %arg9[%c11_93, %c0_94, %c0_95] : memref<13x1x256xf32, #tpu.memory_space<vmem>>, vector<1x1x256xf32>
    %140 = vector.shape_cast %139 : vector<1x1x256xf32> to vector<1x256xf32>
    %141 = vector.broadcast %140 : vector<1x256xf32> to vector<128x256xf32>
    %142 = arith.addf %138, %141 : vector<128x256xf32>
    %cst_96 = arith.constant 2.000000e-01 : f32
    %143 = vector.broadcast %cst_96 : f32 to vector<128x256xf32>
    %144 = arith.mulf %143, %142 : vector<128x256xf32>
    %145 = arith.maximumf %142, %144 : vector<128x256xf32>
    %c12 = arith.constant 12 : index
    %c0_97 = arith.constant 0 : index
    %c0_98 = arith.constant 0 : index
    %146 = vector.load %arg8[%c12, %c0_97, %c0_98] : memref<13x256x256xbf16, #tpu.memory_space<vmem>>, vector<1x256x256xbf16>
    %147 = vector.shape_cast %146 : vector<1x256x256xbf16> to vector<256x256xbf16>
    %148 = arith.truncf %145 : vector<128x256xf32> to vector<128x256xbf16>
    %cst_99 = arith.constant dense<0.000000e+00> : vector<128x256xf32>
    %149 = tpu.matmul %148, %147, %cst_99 {dimension_numbers = #tpu.dot_dimension_numbers<[1], [0], [0], [1], [0, 0, 1, 1], [], []>} : vector<128x256xbf16>, vector<256x256xbf16>, vector<128x256xf32> -> vector<128x256xf32>
    %c12_100 = arith.constant 12 : index
    %c0_101 = arith.constant 0 : index
    %c0_102 = arith.constant 0 : index
    %150 = vector.load %arg9[%c12_100, %c0_101, %c0_102] : memref<13x1x256xf32, #tpu.memory_space<vmem>>, vector<1x1x256xf32>
    %151 = vector.shape_cast %150 : vector<1x1x256xf32> to vector<1x256xf32>
    %152 = vector.broadcast %151 : vector<1x256xf32> to vector<128x256xf32>
    %153 = arith.addf %149, %152 : vector<128x256xf32>
    %154 = arith.addf %123, %153 : vector<128x256xf32>
    %c0_103 = arith.constant 0 : index
    %c0_104 = arith.constant 0 : index
    %155 = vector.load %arg10[%c0_103, %c0_104] : memref<256x8xbf16, #tpu.memory_space<vmem>>, vector<256x8xbf16>
    %156 = arith.truncf %154 : vector<128x256xf32> to vector<128x256xbf16>
    %cst_105 = arith.constant dense<0.000000e+00> : vector<128x8xf32>
    %157 = tpu.matmul %156, %155, %cst_105 {dimension_numbers = #tpu.dot_dimension_numbers<[1], [0], [0], [1], [0, 0, 1, 1], [], []>} : vector<128x256xbf16>, vector<256x8xbf16>, vector<128x8xf32> -> vector<128x8xf32>
    %c0_106 = arith.constant 0 : index
    %c0_107 = arith.constant 0 : index
    %158 = vector.load %arg11[%c0_106, %c0_107] : memref<1x8xf32, #tpu.memory_space<vmem>>, vector<1x8xf32>
    %159 = vector.broadcast %158 : vector<1x8xf32> to vector<128x8xf32>
    %160 = arith.addf %157, %159 : vector<128x8xf32>
    %161 = math.tanh %160 : vector<128x8xf32>
    %c0_108 = arith.constant 0 : index
    %c0_109 = arith.constant 0 : index
    %c0_110 = arith.constant 0 : index
    %162 = vector.load %arg12[%c0_108, %c0_109, %c0_110] : memref<1x128x8xf32, #tpu.memory_space<vmem>>, vector<1x128x8xf32>
    %163 = vector.shape_cast %162 : vector<1x128x8xf32> to vector<128x8xf32>
    %164 = vector.shape_cast %161 : vector<128x8xf32> to vector<1x128x8xf32>
    tpu.vector_store %arg12[%c0_108, %c0_109, %c0_110], %164 {strides = array<i32>} : memref<1x128x8xf32, #tpu.memory_space<vmem>>, vector<1x128x8xf32>,
    return
  }
  func.func @transform_0(%arg0: i32, %arg1: i32) -> (i32, i32, i32) {
    %c0_i32 = arith.constant 0 : i32
    %c0_i32_0 = arith.constant 0 : i32
    return %arg0, %arg1, %c0_i32 : i32, i32, i32
  }
  func.func @transform_1(%arg0: i32, %arg1: i32) -> (i32, i32, i32) {
    %c0_i32 = arith.constant 0 : i32
    %c0_i32_0 = arith.constant 0 : i32
    %c0_i32_1 = arith.constant 0 : i32
    return %arg0, %c0_i32, %c0_i32_0 : i32, i32, i32
  }
  func.func @transform_2(%arg0: i32, %arg1: i32) -> (i32, i32) {
    %c0_i32 = arith.constant 0 : i32
    %c0_i32_0 = arith.constant 0 : i32
    %c0_i32_1 = arith.constant 0 : i32
    return %c0_i32, %c0_i32_0 : i32, i32
  }
  func.func @transform_3(%arg0: i32, %arg1: i32) -> (i32, i32) {
    %c0_i32 = arith.constant 0 : i32
    %c0_i32_0 = arith.constant 0 : i32
    %c0_i32_1 = arith.constant 0 : i32
    return %c0_i32, %c0_i32_0 : i32, i32
  }
  func.func @transform_4(%arg0: i32, %arg1: i32) -> (i32, i32) {
    %c0_i32 = arith.constant 0 : i32
    %c0_i32_0 = arith.constant 0 : i32
    %c0_i32_1 = arith.constant 0 : i32
    return %c0_i32, %c0_i32_0 : i32, i32
  }
  func.func @transform_5(%arg0: i32, %arg1: i32) -> (i32, i32) {
    %c0_i32 = arith.constant 0 : i32
    %c0_i32_0 = arith.constant 0 : i32
    %c0_i32_1 = arith.constant 0 : i32
    return %c0_i32, %c0_i32_0 : i32, i32
  }
  func.func @transform_6(%arg0: i32, %arg1: i32) -> (i32, i32, i32) {
    %c0_i32 = arith.constant 0 : i32
    %c0_i32_0 = arith.constant 0 : i32
    %c0_i32_1 = arith.constant 0 : i32
    %c0_i32_2 = arith.constant 0 : i32
    return %c0_i32, %c0_i32_0, %c0_i32_1 : i32, i32, i32
  }
  func.func @transform_7(%arg0: i32, %arg1: i32) -> (i32, i32, i32) {
    %c0_i32 = arith.constant 0 : i32
    %c0_i32_0 = arith.constant 0 : i32
    %c0_i32_1 = arith.constant 0 : i32
    %c0_i32_2 = arith.constant 0 : i32
    return %c0_i32, %c0_i32_0, %c0_i32_1 : i32, i32, i32
  }
  func.func @transform_8(%arg0: i32, %arg1: i32) -> (i32, i32) {
    %c0_i32 = arith.constant 0 : i32
    %c0_i32_0 = arith.constant 0 : i32
    %c0_i32_1 = arith.constant 0 : i32
    return %c0_i32, %c0_i32_0 : i32, i32
  }
  func.func @transform_9(%arg0: i32, %arg1: i32) -> (i32, i32) {
    %c0_i32 = arith.constant 0 : i32
    %c0_i32_0 = arith.constant 0 : i32
    %c0_i32_1 = arith.constant 0 : i32
    return %c0_i32, %c0_i32_0 : i32, i32
  }
  func.func @transform_10(%arg0: i32, %arg1: i32) -> (i32, i32, i32) {
    %c0_i32 = arith.constant 0 : i32
    %c0_i32_0 = arith.constant 0 : i32
    return %arg0, %arg1, %c0_i32 : i32, i32, i32
  }
}

</mosaic_0001>

<bundles_post_ra>
// kernel: cycle_decoder_pallas.1
= control target key start
LH: loop header
LB: loop body
LE: loop exit
PB: predicated region body
PF: predicated region fallthrough
CT: control target
= control target key end

     0   :  { %s7940_s13 = smov 0   ;;  %s7942_s14 = smov 0   ;;  %s10485_s0 = inlined_call_operand.vmem [shape: f32[2,128,8], index: 0, kind: input, shape index: {}]   ;;  %s10486_s1 = inlined_call_operand.vmem [shape: f32[2,1,8], index: 1, kind: input, shape index: {}]   ;;  %s10487_s2 = inlined_call_operand.vmem [shape: bf16[8,8], index: 2, kind: input, shape index: {}]   ;;  %s10488_s3 = inlined_call_operand.vmem [shape: f32[1,8], index: 3, kind: input, shape index: {}]   ;;  %s10489_s4 = inlined_call_operand.vmem [shape: bf16[8,256], index: 4, kind: input, shape index: {}]   ;;  %s10490_s5 = inlined_call_operand.vmem [shape: f32[1,256], index: 5, kind: input, shape index: {}]   ;;  %s10491_s6 = inlined_call_operand.vmem [shape: bf16[13,256,256], index: 6, kind: input, shape index: {}]   ;;  %s10492_s7 = inlined_call_operand.vmem [shape: f32[13,1,256], index: 7, kind: input, shape index: {}]   ;;  %s10493_s8 = inlined_call_operand.vmem [shape: bf16[256,8], index: 8, kind: input, shape index: {}]   ;;  %s10494_s9 = inlined_call_operand.vmem [shape: f32[1,8], index: 9, kind: input, shape index: {}]   ;;  %s10495_s10 = inlined_call_operand.vmem [shape: f32[2,128,8], index: 10, kind: output, shape index: {}]  }
   0x1   :  { %s7944_s15 = smov 0  }
   0x2 LB: > { %s32_s16 = sadd.s32 1, %s7878_s14  ;;  %p6212_p0 = scmp.ge.s32.totalorder %s7882_s15, 1  ;;  %s7882_s15 = sphi %s7944_s15, %s20_s15   ;;  %s7878_s14 = sphi %s7942_s14, %s10497_s14   ;;  %s7874_s13 = sphi %s7940_s13, %s10496_s13  }
   0x3   : > { %p34_p1 = scmp.ge.s32.totalorder %s32_s16, 2  ;;  %p341_p2 = scmp.lt.s32.totalorder %s7882_s15, 3 }
   0x5   : > { %s10499_s16 = smov (%p34_p1, %s32_s16), 0  ;;  %p342_p3 = pnand %p6212_p0, %p341_p2 }
   0x6   : > { %p391_p4 = scmp.lt.s32.totalorder (!%p342_p3), %s7874_s13, 1 }
   0x7   : > { %345 = sbr.rel (%p342_p3) target bundleno = 3400 (0xd48), region = 60 }
   0xc   : > { %v433_v0 = vld [vmem:[%s10487_s2] sm:$0xf]  ;;  %vm473_vm0 = vcmask 1043456   ;;  %s10501_s13 = smov (!%p391_p4, %s7874_s13), 1  ;;  %vm448_vm1 = vcmask 64512   ;;  %v7884_v30 = vmov 0   ;;  %v443_v55 = vlaneseq }
   0xd   : > { %7160 = vmatprep.subr.msk.bf16.mxu0 %vm473_vm0, %v433_v0  ;;  %v475_v1 = vsel %vm473_vm0, %v433_v0, 0  ;;  %s7067_s19 = sshll.u32 %s10501_s13, 7  ;;  %v606_v26 = vld [vmem:[%s10489_s4] sm:$0xff]  ;;  %694 = vmatprep.mubr.bf16.mxu1 %v7884_v30  ;;  %v7188_v31 = vld [vmem:[%s10491_s6 + $0x70] ss:$8 sps:$4 sm:$0xff]   ;;  %s402_s30 = scalar_lea.vmem %s10486_s1, %s10501_s13 }
   0xe   : > { %7143 = vmatpush3.bf16.msra.mxu0 %v475_v1  ;;  %s398_s22 = scalar_lea.vmem %s10485_s0, %s7067_s19  ;;  %v6226_v27 = vcombine.high %v606_v26, %v606_v26  ;;  %v6225_v28 = vcombine.low %v606_v26, %v606_v26  ;;  %v7190_v32 = vld [vmem:[%s10491_s6 + $0x74] ss:$8 sps:$4 sm:$0xff]   ;;  %v7193_v33 = vld [vmem:[%s10491_s6 + $0x64] ss:$8 sps:$4 sm:$0xff]   ;;  %v7191_v34 = vld [vmem:[%s10491_s6 + $0x60] ss:$8 sps:$4 sm:$0xff]   ;;  %s10430_s26 = scalar_lea.vmem %s10495_s10, %s7067_s19 }
   0xf   : > { %v417_v2 = vld [vmem:[%s398_s22] sm:$0xff]  ;;  %v418_v3 = vld [vmem:[%s398_s22 + $0x8] sm:$0xff]  ;;  %v419_v4 = vld [vmem:[%s398_s22 + $0x10] sm:$0xff]  ;;  %1059 = vmatprep.subr.bf16.mxu0 %v7190_v32  ;;  %v8061_v56 = vshrl.u32 %v443_v55, 7 }
  0x10   : > { %v434_v5 = vpack.c.bf16 %v418_v3, %v417_v2  ;;  %v420_v6 = vld [vmem:[%s398_s22 + $0x18] sm:$0xff]  ;;  %v421_v7 = vld [vmem:[%s398_s22 + $0x20] sm:$0xff]  ;;  %v422_v8 = vld [vmem:[%s398_s22 + $0x28] sm:$0xff]  ;;  %6227 = vmatprep.subr.msk.bf16.mxu1 %vm473_vm0, %v6226_v27  ;;  %v657_v29 = vsel %vm473_vm0, %v6225_v28, 0 }
  0x11   : > { %v435_v9 = vpack.c.bf16 %v420_v6, %v419_v4  ;;  %v436_v10 = vpack.c.bf16 %v422_v8, %v421_v7  ;;  %v423_v11 = vld [vmem:[%s398_s22 + $0x30] sm:$0xff]  ;;  %v424_v12 = vld [vmem:[%s398_s22 + $0x38] sm:$0xff]  ;;  %v425_v13 = vld [vmem:[%s398_s22 + $0x40] sm:$0xff]  ;;  %677 = vmatpush1.bf16.msra.mxu1 %v657_v29  ;;  %v8067_v60 = vsub.s32 0, %v8061_v56 }
  0x12   : > { %7144 = vmatprep.mubr.msk.bf16.mxu0 %vm448_vm1, %v434_v5  ;;  %v426_v14 = vld [vmem:[%s398_s22 + $0x48] sm:$0xff]  ;;  %v437_v15 = vpack.c.bf16 %v424_v12, %v423_v11  ;;  %v427_v17 = vld [vmem:[%s398_s22 + $0x50] sm:$0xff]  ;;  %v428_v18 = vld [vmem:[%s398_s22 + $0x58] sm:$0xff] }
  0x13   : > { %7145 = vmatmul.mubr.msk.bf16.vlgmr.msra.gmra.mxu0 %vm448_vm1, %v435_v9  ;;  %v438_v16 = vpack.c.bf16 %v426_v14, %v425_v13  ;;  %v429_v19 = vld [vmem:[%s398_s22 + $0x60] sm:$0xff]  ;;  %v430_v20 = vld [vmem:[%s398_s22 + $0x68] sm:$0xff]  ;;  %v439_v21 = vpack.c.bf16 %v428_v18, %v427_v17  ;;  %v431_v23 = vld [vmem:[%s398_s22 + $0x70] sm:$0xff] }
  0x14   : > { %7148 = vmatprep.mubr.msk.bf16.mxu0 %vm448_vm1, %v436_v10  ;;  %v440_v22 = vpack.c.bf16 %v430_v20, %v429_v19  ;;  %v432_v24 = vld [vmem:[%s398_s22 + $0x78] sm:$0xff]  ;;  %1060 = vmatpush1.bf16.msra.mxu0 %v7188_v31  ;;  %v7199_v37 = vld [vmem:[%s10491_s6 + $0x44] ss:$8 sps:$4 sm:$0xff]   ;;  %v7197_v38 = vld [vmem:[%s10491_s6 + $0x40] ss:$8 sps:$4 sm:$0xff]  }
  0x15   : > { %v441_v25 = vpack.c.bf16 %v432_v24, %v431_v23  ;;  %1061 = vmatprep.subr.bf16.mxu0 %v7193_v33  ;;  %v7196_v35 = vld [vmem:[%s10491_s6 + $0x54] ss:$8 sps:$4 sm:$0xff]   ;;  %v7194_v36 = vld [vmem:[%s10491_s6 + $0x50] ss:$8 sps:$4 sm:$0xff]   ;;  %v7205_v41 = vld [vmem:[%s10491_s6 + $0x24] ss:$8 sps:$4 sm:$0xff]  }
  0x16   : > { %v7202_v39 = vld [vmem:[%s10491_s6 + $0x34] ss:$8 sps:$4 sm:$0xff]   ;;  %v7200_v40 = vld [vmem:[%s10491_s6 + $0x30] ss:$8 sps:$4 sm:$0xff]   ;;  %v7203_v42 = vld [vmem:[%s10491_s6 + $0x20] ss:$8 sps:$4 sm:$0xff]  }
  0x17   : > { %v7208_v43 = vld [vmem:[%s10491_s6 + $0x14] ss:$8 sps:$4 sm:$0xff]   ;;  %v7206_v44 = vld [vmem:[%s10491_s6 + $0x10] ss:$8 sps:$4 sm:$0xff]   ;;  %v7211_v45 = vld [vmem:[%s10491_s6 + $0x4] ss:$8 sps:$4 sm:$0xff]  }
  0x18   : > { %1062 = vmatpush1.bf16.msra.mxu0 %v7191_v34  ;;  %v7209_v46 = vld [vmem:[%s10491_s6] ss:$8 sps:$4 sm:$0xff]   ;;  %v7214_v47 = vld [vmem:[%s10491_s6 + $0xf4] ss:$8 sps:$4 sm:$0xff]   ;;  %v7212_v48 = vld [vmem:[%s10491_s6 + $0xf0] ss:$8 sps:$4 sm:$0xff]  }
  0x19   : > { %1063 = vmatprep.subr.bf16.mxu0 %v7196_v35  ;;  %v7217_v49 = vld [vmem:[%s10491_s6 + $0xe4] ss:$8 sps:$4 sm:$0xff]   ;;  %v7215_v50 = vld [vmem:[%s10491_s6 + $0xe0] ss:$8 sps:$4 sm:$0xff]   ;;  %v7220_v51 = vld [vmem:[%s10491_s6 + $0xd4] ss:$8 sps:$4 sm:$0xff]  }
  0x1a   : > { %v7218_v52 = vld [vmem:[%s10491_s6 + $0xd0] ss:$8 sps:$4 sm:$0xff]   ;;  %v7223_v53 = vld [vmem:[%s10491_s6 + $0xc4] ss:$8 sps:$4 sm:$0xff]   ;;  %v7221_v54 = vld [vmem:[%s10491_s6 + $0xc0] ss:$8 sps:$4 sm:$0xff]  }
  0x1b   : > { %7149 = vmatmul.mubr.msk.bf16.gmra.mxu0 %vm448_vm1, %v437_v15  ;;  %v414_v57 = vld [vmem:[%s10488_s3] sm:$0x1] }
  0x1c   : > { %7152 = vmatprep.mubr.msk.bf16.mxu0 %vm448_vm1, %v438_v16  ;;  %1064 = vmatpush1.bf16.msra.mxu0 %v7194_v36  ;;  %v415_v58 = vld [vmem:[%s402_s30] sm:$0x1] }
  0x1d   : > { %1065 = vmatprep.subr.bf16.mxu0 %v7199_v37  ;;  %v416_v59 = vadd.f32 %v415_v58, %v414_v57 }
  0x1f   : > { %v8070_v62 = vrot.slane %v416_v59, %v8067_v60 }
  0x20   : > { %1066 = vmatpush1.bf16.msra.mxu0 %v7197_v38 }
  0x21   : > { %1067 = vmatprep.subr.bf16.mxu0 %v7202_v39 }
  0x23   : > { %7153 = vmatmul.mubr.msk.bf16.gmra.mxu0 %vm448_vm1, %v439_v21 }
  0x24   : > { %7156 = vmatprep.mubr.msk.bf16.mxu0 %vm448_vm1, %v440_v22  ;;  %1068 = vmatpush1.bf16.msra.mxu0 %v7200_v40 }
  0x25   : > { %1069 = vmatprep.subr.bf16.mxu0 %v7205_v41 }
  0x28   : > { %1070 = vmatpush1.bf16.msra.mxu0 %v7203_v42 }
  0x29   : > { %1071 = vmatprep.subr.bf16.mxu0 %v7208_v43 }
  0x2b   : > { %7157 = vmatmul.mubr.msk.bf16.gmra.mxu0 %vm448_vm1, %v441_v25 }
  0x2c   : > { %1072 = vmatpush1.bf16.msra.mxu0 %v7206_v44 }
  0x2d   : > { %1073 = vmatprep.subr.bf16.mxu0 %v7211_v45 }
  0x30   : > { %1074 = vmatpush1.bf16.msra.mxu0 %v7209_v46 }
  0x31   : > { %1075 = vmatprep.subr.bf16.mxu0 %v7214_v47 }
  0x34   : > { %1076 = vmatpush2.bf16.msra.mxu0 %v7212_v48 }
  0x35   : > { %1077 = vmatprep.subr.bf16.mxu0 %v7217_v49 }
  0x38   : > { %1078 = vmatpush2.bf16.msra.mxu0 %v7215_v50 }
  0x39   : > { %1079 = vmatprep.subr.bf16.mxu0 %v7220_v51 }
  0x3c   : > { %1080 = vmatpush2.bf16.msra.mxu0 %v7218_v52 }
  0x3d   : > { %1081 = vmatprep.subr.bf16.mxu0 %v7223_v53 }
  0x40   : > { %1082 = vmatpush2.bf16.msra.mxu0 %v7221_v54 }
  0xd3   : > { %v7146_v61 = vpop.f32.mrf.mxu0 }
  0xd4   : > { %v520_v9 = vadd.f32 %v7146_v61, %v8070_v62 }
  0xd5   : > { %v511_v63 = vpop.f32.mrf.mxu0 }
  0xd6   : > { %v512_v0 = vadd.f32 %v511_v63, %v8070_v62  ;;  %v576_v16 = vmul.f32 0.2, %v520_v9 }
  0xd7   : > { %v7147_v1 = vpop.f32.mrf.mxu0 }
  0xd8   : > { %v574_v3 = vmul.f32 0.2, %v512_v0  ;;  %v523_v6 = vadd.f32 %v7147_v1, %v8070_v62  ;;  %v592_v21 = vmax.f32 %v520_v9, %v576_v16  ;;  %v7236_v16 = vld [vmem:[%s10491_s6 + $0x170] ss:$8 sps:$4 sm:$0xff]  }
  0xd9   : > { %v514_v2 = vpop.f32.mrf.mxu0 }
  0xda   : > { %v515_v4 = vadd.f32 %v514_v2, %v8070_v62  ;;  %v590_v10 = vmax.f32 %v512_v0, %v574_v3  ;;  %v577_v13 = vmul.f32 0.2, %v523_v6 }
  0xdb   : > { %v7150_v5 = vpop.f32.mrf.mxu0 }
  0xdc   : > { %v575_v7 = vmul.f32 0.2, %v515_v4  ;;  %v593_v17 = vmax.f32 %v523_v6, %v577_v13  ;;  %v536_v26 = vadd.f32 %v7150_v5, %v8070_v62  ;;  %v7230_v13 = vld [vmem:[%s10491_s6 + $0x90] ss:$8 sps:$4 sm:$0xff]  }
  0xdd   : > { %v527_v8 = vpop.f32.mrf.mxu0 }
  0xde   : > { %v591_v11 = vmax.f32 %v515_v4, %v575_v7  ;;  %v528_v18 = vadd.f32 %v527_v8, %v8070_v62  ;;  %v608_v22 = vpack.c.bf16 %v593_v17, %v592_v21  ;;  %v580_v32 = vmul.f32 0.2, %v536_v26  ;;  %v7238_v17 = vld [vmem:[%s10491_s6 + $0x174] ss:$8 sps:$4 sm:$0xff]   ;;  %v7242_v21 = vld [vmem:[%s10491_s6 + $0x150] ss:$8 sps:$4 sm:$0xff]  }
  0xdf   : > { %v7151_v12 = vpop.f32.mrf.mxu0  ;;  %1394 = vmatprep.subr.bf16.mxu1 %v7238_v17 }
  0xe0   : > { %v607_v14 = vpack.c.bf16 %v591_v11, %v590_v10  ;;  %v578_v23 = vmul.f32 0.2, %v528_v18  ;;  %v539_v28 = vadd.f32 %v7151_v12, %v8070_v62  ;;  %v596_v36 = vmax.f32 %v536_v26, %v580_v32  ;;  %v7226_v10 = vld [vmem:[%s10491_s6 + $0xb4] ss:$8 sps:$4 sm:$0xff]   ;;  %v7229_v11 = vld [vmem:[%s10491_s6 + $0xa4] ss:$8 sps:$4 sm:$0xff]  }
  0xe1   : > { %v530_v15 = vpop.f32.mrf.mxu0  ;;  %1083 = vmatprep.subr.bf16.mxu0 %v7226_v10  ;;  %v7232_v12 = vld [vmem:[%s10491_s6 + $0x94] ss:$8 sps:$4 sm:$0xff]   ;;  %v7253_v26 = vld [vmem:[%s10491_s6 + $0x124] ss:$8 sps:$4 sm:$0xff]   ;;  %v7257_v32 = vld [vmem:[%s10491_s6 + $0x100] ss:$8 sps:$4 sm:$0xff]  }
  0xe2   : > { %6228 = vmatmul.mubr.msk.bf16.vlgmr.msra.gmra.mxu1 %vm448_vm1, %v607_v14  ;;  %v531_v19 = vadd.f32 %v530_v15, %v8070_v62  ;;  %v594_v27 = vmax.f32 %v528_v18, %v578_v23  ;;  %v581_v33 = vmul.f32 0.2, %v539_v28  ;;  %v7235_v14 = vld [vmem:[%s10491_s6 + $0x84] ss:$8 sps:$4 sm:$0xff]   ;;  %v7233_v15 = vld [vmem:[%s10491_s6 + $0x80] ss:$8 sps:$4 sm:$0xff]  }
  0xe3   : > { %704 = vmatprep.mubr.bf16.mxu1 %v7884_v30  ;;  %v7154_v20 = vpop.f32.mrf.mxu0  ;;  %v7241_v18 = vld [vmem:[%s10491_s6 + $0x164] ss:$8 sps:$4 sm:$0xff]   ;;  %1395 = vmatpush1.bf16.msra.mxu1 %v7236_v16  ;;  %v7245_v23 = vld [vmem:[%s10491_s6 + $0x140] ss:$8 sps:$4 sm:$0xff]  }
  0xe4   : > { %v579_v24 = vmul.f32 0.2, %v531_v19  ;;  %v597_v37 = vmax.f32 %v539_v28, %v581_v33  ;;  %v552_v45 = vadd.f32 %v7154_v20, %v8070_v62  ;;  %1396 = vmatprep.subr.bf16.mxu1 %v7241_v18  ;;  %v7244_v20 = vld [vmem:[%s10491_s6 + $0x154] ss:$8 sps:$4 sm:$0xff]  }
  0xe5   : > { %v543_v25 = vpop.f32.mrf.mxu0  ;;  %v7256_v28 = vld [vmem:[%s10491_s6 + $0x114] ss:$8 sps:$4 sm:$0xff]  }
  0xe6   : > { %v595_v29 = vmax.f32 %v531_v19, %v579_v24  ;;  %v544_v38 = vadd.f32 %v543_v25, %v8070_v62  ;;  %v610_v41 = vpack.c.bf16 %v597_v37, %v596_v36  ;;  %v584_v50 = vmul.f32 0.2, %v552_v45  ;;  %v7239_v19 = vld [vmem:[%s10491_s6 + $0x160] ss:$8 sps:$4 sm:$0xff]   ;;  %v7250_v24 = vld [vmem:[%s10491_s6 + $0x134] ss:$8 sps:$4 sm:$0xff]  }
  0xe7   : > { %v7155_v31 = vpop.f32.mrf.mxu0  ;;  %1397 = vmatpush1.bf16.msra.mxu1 %v7239_v19  ;;  %v7248_v25 = vld [vmem:[%s10491_s6 + $0x130] ss:$8 sps:$4 sm:$0xff]   ;;  %v7262_v33 = vld [vmem:[%s10491_s6 + $0x1f4] ss:$8 sps:$4 sm:$0xff]   ;;  %v7263_v36 = vld [vmem:[%s10491_s6 + $0x1e0] ss:$8 sps:$4 sm:$0xff]  }
  0xe8   : > { %v609_v34 = vpack.c.bf16 %v595_v29, %v594_v27  ;;  %v582_v42 = vmul.f32 0.2, %v544_v38  ;;  %v555_v47 = vadd.f32 %v7155_v31, %v8070_v62  ;;  %v600_v54 = vmax.f32 %v552_v45, %v584_v50  ;;  %1398 = vmatprep.subr.bf16.mxu1 %v7244_v20  ;;  %v7251_v27 = vld [vmem:[%s10491_s6 + $0x120] ss:$8 sps:$4 sm:$0xff]   ;;  %v7254_v29 = vld [vmem:[%s10491_s6 + $0x110] ss:$8 sps:$4 sm:$0xff]  }
  0xe9   : > { %v546_v35 = vpop.f32.mrf.mxu0  ;;  %v7259_v31 = vld [vmem:[%s10491_s6 + $0x104] ss:$8 sps:$4 sm:$0xff]   ;;  %v7268_v37 = vld [vmem:[%s10491_s6 + $0x1d4] ss:$8 sps:$4 sm:$0xff]   ;;  %v7275_v45 = vld [vmem:[%s10491_s6 + $0x1a0] ss:$8 sps:$4 sm:$0xff]  }
  0xea   : > { %6229 = vmatmul.mubr.msk.bf16.gmra.mxu1 %vm448_vm1, %v608_v22  ;;  %v547_v39 = vadd.f32 %v546_v35, %v8070_v62  ;;  %v598_v46 = vmax.f32 %v544_v38, %v582_v42  ;;  %v585_v51 = vmul.f32 0.2, %v555_v47  ;;  %v7247_v22 = vld [vmem:[%s10491_s6 + $0x144] ss:$8 sps:$4 sm:$0xff]   ;;  %v7266_v38 = vld [vmem:[%s10491_s6 + $0x1d0] ss:$8 sps:$4 sm:$0xff]  }
  0xeb   : > { %714 = vmatprep.mubr.bf16.mxu1 %v7884_v30  ;;  %v7158_v40 = vpop.f32.mrf.mxu0  ;;  %1399 = vmatpush1.bf16.msra.mxu1 %v7242_v21  ;;  %v7265_v35 = vld [vmem:[%s10491_s6 + $0x1e4] ss:$8 sps:$4 sm:$0xff]   ;;  %v7272_v42 = vld [vmem:[%s10491_s6 + $0x1b0] ss:$8 sps:$4 sm:$0xff]  }
  0xec   : > { %v583_v43 = vmul.f32 0.2, %v547_v39  ;;  %v601_v55 = vmax.f32 %v555_v47, %v585_v51  ;;  %v568_v0 = vadd.f32 %v7158_v40, %v8070_v62  ;;  %1400 = vmatprep.subr.bf16.mxu1 %v7247_v22  ;;  %v7269_v40 = vld [vmem:[%s10491_s6 + $0x1c0] ss:$8 sps:$4 sm:$0xff]  }
  0xed   : > { %v559_v44 = vpop.f32.mrf.mxu0 }
  0xee   : > { %v599_v48 = vmax.f32 %v547_v39, %v583_v43  ;;  %v560_v57 = vadd.f32 %v559_v44, %v8070_v62  ;;  %v612_v59 = vpack.c.bf16 %v601_v55, %v600_v54  ;;  %v588_v4 = vmul.f32 0.2, %v568_v0  ;;  %v7271_v39 = vld [vmem:[%s10491_s6 + $0x1c4] ss:$8 sps:$4 sm:$0xff]  }
  0xef   : > { %v7159_v49 = vpop.f32.mrf.mxu0  ;;  %1401 = vmatpush1.bf16.msra.mxu1 %v7245_v23  ;;  %v7277_v43 = vld [vmem:[%s10491_s6 + $0x1a4] ss:$8 sps:$4 sm:$0xff]   ;;  %v8209_v44 = vsub.s32 1, %v8061_v56 }
  0xf0   : > { %v611_v52 = vpack.c.bf16 %v599_v48, %v598_v46  ;;  %v586_v61 = vmul.f32 0.2, %v560_v57  ;;  %v571_v2 = vadd.f32 %v7159_v49, %v8070_v62  ;;  %v604_v7 = vmax.f32 %v568_v0, %v588_v4  ;;  %1402 = vmatprep.subr.bf16.mxu1 %v7250_v24  ;;  %v615_v46 = vld [vmem:[%s10490_s5] sm:$0x3] }
  0xf1   : > { %v562_v53 = vpop.f32.mrf.mxu0  ;;  %v8218_v47 = vrot.slane %v615_v46, %v8209_v44  ;;  %v8221_v48 = vrot.slane %v615_v46, %v8067_v60 }
  0xf2   : > { %6230 = vmatmul.mubr.msk.bf16.gmra.mxu1 %vm448_vm1, %v609_v34  ;;  %v563_v58 = vadd.f32 %v562_v53, %v8070_v62  ;;  %v602_v1 = vmax.f32 %v560_v57, %v586_v61  ;;  %v589_v5 = vmul.f32 0.2, %v571_v2  ;;  %v7224_v62 = vld [vmem:[%s10491_s6 + $0xb0] ss:$8 sps:$4 sm:$0xff]  }
  0xf3   : > { %724 = vmatprep.mubr.bf16.mxu1 %v7884_v30  ;;  %1084 = vmatpush2.bf16.msra.mxu0 %v7224_v62  ;;  %v7260_v34 = vld [vmem:[%s10491_s6 + $0x1f0] ss:$8 sps:$4 sm:$0xff]  }
  0xf4   : > { %v587_v63 = vmul.f32 0.2, %v563_v58  ;;  %v605_v8 = vmax.f32 %v571_v2, %v589_v5  ;;  %1085 = vmatprep.subr.bf16.mxu0 %v7229_v11  ;;  %1403 = vmatpush1.bf16.msra.mxu1 %v7248_v25 }
  0xf5   : > { %1404 = vmatprep.subr.bf16.mxu1 %v7253_v26 }
  0xf6   : > { %v603_v3 = vmax.f32 %v563_v58, %v587_v63  ;;  %v614_v9 = vpack.c.bf16 %v605_v8, %v604_v7 }
  0xf8   : > { %v613_v6 = vpack.c.bf16 %v603_v3, %v602_v1  ;;  %1405 = vmatpush1.bf16.msra.mxu1 %v7251_v27 }
  0xf9   : > { %1406 = vmatprep.subr.bf16.mxu1 %v7256_v28 }
  0xfa   : > { %6231 = vmatmul.mubr.msk.bf16.gmra.mxu1 %vm448_vm1, %v610_v41  ;;  %v7274_v41 = vld [vmem:[%s10491_s6 + $0x1b4] ss:$8 sps:$4 sm:$0xff]  }
  0xfb   : > { %734 = vmatprep.mubr.bf16.mxu1 %v7884_v30 }
  0xfc   : > { %1407 = vmatpush1.bf16.msra.mxu1 %v7254_v29 }
  0xfd   : > { %1408 = vmatprep.subr.bf16.mxu1 %v7259_v31 }
 0x100   : > { %1409 = vmatpush1.bf16.msra.mxu1 %v7257_v32 }
 0x101   : > { %1410 = vmatprep.subr.bf16.mxu1 %v7262_v33 }
 0x102   : > { %6232 = vmatmul.mubr.msk.bf16.gmra.mxu1 %vm448_vm1, %v611_v52 }
 0x103   : > { %744 = vmatprep.mubr.bf16.mxu1 %v7884_v30 }
 0x104   : > { %1411 = vmatpush2.bf16.msra.mxu1 %v7260_v34 }
 0x105   : > { %1412 = vmatprep.subr.bf16.mxu1 %v7265_v35 }
 0x108   : > { %1413 = vmatpush2.bf16.msra.mxu1 %v7263_v36 }
 0x109   : > { %1414 = vmatprep.subr.bf16.mxu1 %v7268_v37 }
 0x10a   : > { %6233 = vmatmul.mubr.msk.bf16.gmra.mxu1 %vm448_vm1, %v612_v59 }
 0x10b   : > { %754 = vmatprep.mubr.bf16.mxu1 %v7884_v30 }
 0x10c   : > { %1415 = vmatpush2.bf16.msra.mxu1 %v7266_v38 }
 0x10d   : > { %1416 = vmatprep.subr.bf16.mxu1 %v7271_v39 }
 0x110   : > { %1417 = vmatpush2.bf16.msra.mxu1 %v7269_v40 }
 0x111   : > { %1418 = vmatprep.subr.bf16.mxu1 %v7274_v41 }
 0x112   : > { %6234 = vmatmul.mubr.msk.bf16.gmra.mxu1 %vm448_vm1, %v613_v6 }
 0x113   : > { %764 = vmatprep.mubr.bf16.mxu1 %v7884_v30  ;;  %v7227_v30 = vld [vmem:[%s10491_s6 + $0xa0] ss:$8 sps:$4 sm:$0xff]  }
 0x114   : > { %1086 = vmatpush2.bf16.msra.mxu0 %v7227_v30  ;;  %1419 = vmatpush2.bf16.msra.mxu1 %v7272_v42 }
 0x115   : > { %1087 = vmatprep.subr.bf16.mxu0 %v7232_v12  ;;  %1420 = vmatprep.subr.bf16.mxu1 %v7277_v43 }
 0x118   : > { %1088 = vmatpush2.bf16.msra.mxu0 %v7230_v13  ;;  %1421 = vmatpush2.bf16.msra.mxu1 %v7275_v45 }
 0x119   : > { %1089 = vmatprep.subr.bf16.mxu0 %v7235_v14 }
 0x11a   : > { %6235 = vmatmul.mubr.msk.bf16.gmra.mxu1 %vm448_vm1, %v614_v9 }
 0x11c   : > { %1090 = vmatpush2.bf16.msra.mxu0 %v7233_v15 }
 0x1a2   : > { %v696_v49 = vpop.f32.mrf.mxu1 }
 0x1a3   : > { %v697_v51 = vadd.f32 %v696_v49, %v8221_v48 }
 0x1a4   : > { %v698_v56 = vpop.f32.mrf.mxu1 }
 0x1a5   : > { %v699_v50 = vadd.f32 %v698_v56, %v8218_v47  ;;  %v775_v59 = vmul.f32 0.2, %v697_v51 }
 0x1a6   : > { %v700_v52 = vpop.f32.mrf.mxu1 }
 0x1a7   : > { %v701_v53 = vadd.f32 %v700_v52, %v8221_v48  ;;  %v776_v55 = vmul.f32 0.2, %v699_v50  ;;  %v807_v5 = vmax.f32 %v697_v51, %v775_v59 }
 0x1a8   : > { %v702_v54 = vpop.f32.mrf.mxu1 }
 0x1a9   : > { %v777_v57 = vmul.f32 0.2, %v701_v53  ;;  %v703_v58 = vadd.f32 %v702_v54, %v8218_v47  ;;  %v808_v2 = vmax.f32 %v699_v50, %v776_v55 }
 0x1aa   : > { %v706_v61 = vpop.f32.mrf.mxu1 }
 0x1ab   : > { %v778_v63 = vmul.f32 0.2, %v703_v58  ;;  %v809_v0 = vmax.f32 %v701_v53, %v777_v57  ;;  %v707_v6 = vadd.f32 %v706_v61, %v8221_v48 }
 0x1ac   : > { %v708_v1 = vpop.f32.mrf.mxu1 }
 0x1ad   : > { %v810_v3 = vmax.f32 %v703_v58, %v778_v63  ;;  %v709_v4 = vadd.f32 %v708_v1, %v8218_v47  ;;  %v871_v10 = vpack.c.bf16 %v809_v0, %v807_v5  ;;  %v779_v13 = vmul.f32 0.2, %v707_v6 }
 0x1ae   : > { %v710_v7 = vpop.f32.mrf.mxu1 }
 0x1af   : > { %v711_v8 = vadd.f32 %v710_v7, %v8221_v48  ;;  %v872_v9 = vpack.c.bf16 %v810_v3, %v808_v2  ;;  %v780_v11 = vmul.f32 0.2, %v709_v4  ;;  %v811_v21 = vmax.f32 %v707_v6, %v779_v13 }
 0x1b0   : > { %v712_v62 = vpop.f32.mrf.mxu1 }
 0x1b1   : > { %v781_v30 = vmul.f32 0.2, %v711_v8  ;;  %v713_v12 = vadd.f32 %v712_v62, %v8218_v47  ;;  %1091 = vmatprep.mubr.bf16.mxu0 %v872_v9  ;;  %v812_v18 = vmax.f32 %v709_v4, %v780_v11 }
 0x1b2   : > { %v716_v14 = vpop.f32.mrf.mxu1  ;;  %1092 = vmatmul.mubr.bf16.vlgmr.msra.gmra.mxu0 %v871_v10 }
 0x1b3   : > { %v782_v15 = vmul.f32 0.2, %v713_v12  ;;  %v813_v16 = vmax.f32 %v711_v8, %v781_v30  ;;  %v717_v22 = vadd.f32 %v716_v14, %v8221_v48 }
 0x1b4   : > { %v718_v17 = vpop.f32.mrf.mxu1 }
 0x1b5   : > { %v814_v19 = vmax.f32 %v713_v12, %v782_v15  ;;  %v719_v20 = vadd.f32 %v718_v17, %v8218_v47  ;;  %v873_v27 = vpack.c.bf16 %v813_v16, %v811_v21  ;;  %v783_v32 = vmul.f32 0.2, %v717_v22 }
 0x1b6   : > { %v720_v23 = vpop.f32.mrf.mxu1 }
 0x1b7   : > { %v721_v24 = vadd.f32 %v720_v23, %v8221_v48  ;;  %v874_v25 = vpack.c.bf16 %v814_v19, %v812_v18  ;;  %v784_v28 = vmul.f32 0.2, %v719_v20  ;;  %v815_v40 = vmax.f32 %v717_v22, %v783_v32 }
 0x1b8   : > { %v722_v26 = vpop.f32.mrf.mxu1 }
 0x1b9   : > { %v785_v29 = vmul.f32 0.2, %v721_v24  ;;  %v723_v31 = vadd.f32 %v722_v26, %v8218_v47  ;;  %1101 = vmatprep.mubr.bf16.mxu0 %v874_v25  ;;  %v816_v37 = vmax.f32 %v719_v20, %v784_v28 }
 0x1ba   : > { %v726_v33 = vpop.f32.mrf.mxu1  ;;  %1102 = vmatmul.mubr.bf16.gmra.mxu0 %v873_v27 }
 0x1bb   : > { %v786_v34 = vmul.f32 0.2, %v723_v31  ;;  %v817_v35 = vmax.f32 %v721_v24, %v785_v29  ;;  %v727_v41 = vadd.f32 %v726_v33, %v8221_v48 }
 0x1bc   : > { %v728_v36 = vpop.f32.mrf.mxu1 }
 0x1bd   : > { %v818_v38 = vmax.f32 %v723_v31, %v786_v34  ;;  %v729_v39 = vadd.f32 %v728_v36, %v8218_v47  ;;  %v875_v49 = vpack.c.bf16 %v817_v35, %v815_v40  ;;  %v787_v52 = vmul.f32 0.2, %v727_v41 }
 0x1be   : > { %v730_v42 = vpop.f32.mrf.mxu1 }
 0x1bf   : > { %v731_v43 = vadd.f32 %v730_v42, %v8221_v48  ;;  %v876_v45 = vpack.c.bf16 %v818_v38, %v816_v37  ;;  %v788_v56 = vmul.f32 0.2, %v729_v39  ;;  %v819_v63 = vmax.f32 %v727_v41, %v787_v52 }
 0x1c0   : > { %v732_v46 = vpop.f32.mrf.mxu1 }
 0x1c1   : > { %v789_v50 = vmul.f32 0.2, %v731_v43  ;;  %v733_v51 = vadd.f32 %v732_v46, %v8218_v47  ;;  %1111 = vmatprep.mubr.bf16.mxu0 %v876_v45  ;;  %v820_v58 = vmax.f32 %v729_v39, %v788_v56 }
 0x1c2   : > { %v736_v53 = vpop.f32.mrf.mxu1  ;;  %1112 = vmatmul.mubr.bf16.gmra.mxu0 %v875_v49 }
 0x1c3   : > { %v790_v54 = vmul.f32 0.2, %v733_v51  ;;  %v821_v55 = vmax.f32 %v731_v43, %v789_v50  ;;  %v737_v0 = vadd.f32 %v736_v53, %v8221_v48 }
 0x1c4   : > { %v738_v57 = vpop.f32.mrf.mxu1 }
 0x1c5   : > { %v822_v59 = vmax.f32 %v733_v51, %v790_v54  ;;  %v739_v61 = vadd.f32 %v738_v57, %v8218_v47  ;;  %v877_v5 = vpack.c.bf16 %v821_v55, %v819_v63  ;;  %v791_v9 = vmul.f32 0.2, %v737_v0 }
 0x1c6   : > { %v740_v1 = vpop.f32.mrf.mxu1 }
 0x1c7   : > { %v741_v2 = vadd.f32 %v740_v1, %v8221_v48  ;;  %v878_v3 = vpack.c.bf16 %v822_v59, %v820_v58  ;;  %v792_v6 = vmul.f32 0.2, %v739_v61  ;;  %v823_v15 = vmax.f32 %v737_v0, %v791_v9 }
 0x1c8   : > { %v742_v4 = vpop.f32.mrf.mxu1 }
 0x1c9   : > { %v793_v7 = vmul.f32 0.2, %v741_v2  ;;  %v743_v8 = vadd.f32 %v742_v4, %v8218_v47  ;;  %1121 = vmatprep.mubr.bf16.mxu0 %v878_v3  ;;  %v824_v12 = vmax.f32 %v739_v61, %v792_v6 }
 0x1ca   : > { %v746_v10 = vpop.f32.mrf.mxu1  ;;  %1122 = vmatmul.mubr.bf16.gmra.mxu0 %v877_v5 }
 0x1cb   : > { %v794_v62 = vmul.f32 0.2, %v743_v8  ;;  %v825_v11 = vmax.f32 %v741_v2, %v793_v7  ;;  %v747_v16 = vadd.f32 %v746_v10, %v8221_v48 }
 0x1cc   : > { %v748_v30 = vpop.f32.mrf.mxu1 }
 0x1cd   : > { %v826_v13 = vmax.f32 %v743_v8, %v794_v62  ;;  %v749_v14 = vadd.f32 %v748_v30, %v8218_v47  ;;  %v879_v21 = vpack.c.bf16 %v825_v11, %v823_v15  ;;  %v795_v25 = vmul.f32 0.2, %v747_v16  ;;  %v7283_v62 = vld [vmem:[%s10491_s6 + $0x184] ss:$8 sps:$4 sm:$0xff]   ;;  %v7281_v11 = vld [vmem:[%s10491_s6 + $0x180] ss:$8 sps:$4 sm:$0xff]  }
 0x1ce   : > { %v750_v17 = vpop.f32.mrf.mxu1  ;;  %v7284_v30 = vld [vmem:[%s10491_s6 + $0x270] ss:$8 sps:$4 sm:$0xff]   ;;  %v7292_v15 = vld [vmem:[%s10491_s6 + $0x254] ss:$8 sps:$4 sm:$0xff]  }
 0x1cf   : > { %v751_v18 = vadd.f32 %v750_v17, %v8221_v48  ;;  %v880_v19 = vpack.c.bf16 %v826_v13, %v824_v12  ;;  %v796_v22 = vmul.f32 0.2, %v749_v14  ;;  %v827_v34 = vmax.f32 %v747_v16, %v795_v25  ;;  %v7286_v12 = vld [vmem:[%s10491_s6 + $0x274] ss:$8 sps:$4 sm:$0xff]   ;;  %v7289_v13 = vld [vmem:[%s10491_s6 + $0x264] ss:$8 sps:$4 sm:$0xff]  }
 0x1d0   : > { %v752_v20 = vpop.f32.mrf.mxu1  ;;  %1793 = vmatprep.subr.bf16.mxu0 %v7286_v12  ;;  %v7290_v16 = vld [vmem:[%s10491_s6 + $0x250] ss:$8 sps:$4 sm:$0xff]   ;;  %v7295_v17 = vld [vmem:[%s10491_s6 + $0x244] ss:$8 sps:$4 sm:$0xff]  }
 0x1d1   : > { %v797_v23 = vmul.f32 0.2, %v751_v18  ;;  %v753_v24 = vadd.f32 %v752_v20, %v8218_v47  ;;  %1131 = vmatprep.mubr.bf16.mxu0 %v880_v19  ;;  %v828_v31 = vmax.f32 %v749_v14, %v796_v22  ;;  %1794 = vmatpush1.bf16.msra.mxu0 %v7284_v30  ;;  %v7287_v14 = vld [vmem:[%s10491_s6 + $0x260] ss:$8 sps:$4 sm:$0xff]   ;;  %v7298_v19 = vld [vmem:[%s10491_s6 + $0x234] ss:$8 sps:$4 sm:$0xff]  }
 0x1d2   : > { %v756_v26 = vpop.f32.mrf.mxu1  ;;  %1132 = vmatmul.mubr.bf16.gmra.mxu0 %v879_v21  ;;  %1795 = vmatprep.subr.bf16.mxu0 %v7289_v13  ;;  %v7296_v20 = vld [vmem:[%s10491_s6 + $0x230] ss:$8 sps:$4 sm:$0xff]   ;;  %v7301_v21 = vld [vmem:[%s10491_s6 + $0x224] ss:$8 sps:$4 sm:$0xff]   ;;  %v7299_v22 = vld [vmem:[%s10491_s6 + $0x220] ss:$8 sps:$4 sm:$0xff]  }
 0x1d3   : > { %v798_v27 = vmul.f32 0.2, %v753_v24  ;;  %v829_v28 = vmax.f32 %v751_v18, %v797_v23  ;;  %v757_v35 = vadd.f32 %v756_v26, %v8221_v48  ;;  %v7293_v18 = vld [vmem:[%s10491_s6 + $0x240] ss:$8 sps:$4 sm:$0xff]   ;;  %v7304_v23 = vld [vmem:[%s10491_s6 + $0x214] ss:$8 sps:$4 sm:$0xff]  }
 0x1d4   : > { %v758_v29 = vpop.f32.mrf.mxu1  ;;  %v7307_v25 = vld [vmem:[%s10491_s6 + $0x204] ss:$8 sps:$4 sm:$0xff]   ;;  %v7305_v26 = vld [vmem:[%s10491_s6 + $0x200] ss:$8 sps:$4 sm:$0xff]  }
 0x1d5   : > { %v830_v32 = vmax.f32 %v753_v24, %v798_v27  ;;  %v759_v33 = vadd.f32 %v758_v29, %v8218_v47  ;;  %v881_v40 = vpack.c.bf16 %v829_v28, %v827_v34  ;;  %v799_v45 = vmul.f32 0.2, %v757_v35  ;;  %1796 = vmatpush1.bf16.msra.mxu0 %v7287_v14  ;;  %v7302_v24 = vld [vmem:[%s10491_s6 + $0x210] ss:$8 sps:$4 sm:$0xff]   ;;  %v7310_v27 = vld [vmem:[%s10491_s6 + $0x2f4] ss:$8 sps:$4 sm:$0xff]  }
 0x1d6   : > { %v760_v36 = vpop.f32.mrf.mxu1  ;;  %1797 = vmatprep.subr.bf16.mxu0 %v7292_v15  ;;  %v7308_v28 = vld [vmem:[%s10491_s6 + $0x2f0] ss:$8 sps:$4 sm:$0xff]   ;;  %v7313_v29 = vld [vmem:[%s10491_s6 + $0x2e4] ss:$8 sps:$4 sm:$0xff]  }
 0x1d7   : > { %v761_v37 = vadd.f32 %v760_v36, %v8221_v48  ;;  %v882_v38 = vpack.c.bf16 %v830_v32, %v828_v31  ;;  %v800_v41 = vmul.f32 0.2, %v759_v33  ;;  %v831_v54 = vmax.f32 %v757_v35, %v799_v45  ;;  %v7311_v31 = vld [vmem:[%s10491_s6 + $0x2e0] ss:$8 sps:$4 sm:$0xff]   ;;  %v7316_v32 = vld [vmem:[%s10491_s6 + $0x2d4] ss:$8 sps:$4 sm:$0xff]  }
 0x1d8   : > { %v762_v39 = vpop.f32.mrf.mxu1  ;;  %v7319_v34 = vld [vmem:[%s10491_s6 + $0x2c4] ss:$8 sps:$4 sm:$0xff]   ;;  %v7317_v35 = vld [vmem:[%s10491_s6 + $0x2c0] ss:$8 sps:$4 sm:$0xff]   ;;  %v7322_v36 = vld [vmem:[%s10491_s6 + $0x2b4] ss:$8 sps:$4 sm:$0xff]  }
 0x1d9   : > { %v801_v42 = vmul.f32 0.2, %v761_v37  ;;  %v763_v43 = vadd.f32 %v762_v39, %v8218_v47  ;;  %1141 = vmatprep.mubr.bf16.mxu0 %v882_v38  ;;  %v832_v51 = vmax.f32 %v759_v33, %v800_v41  ;;  %1798 = vmatpush1.bf16.msra.mxu0 %v7290_v16  ;;  %v7314_v33 = vld [vmem:[%s10491_s6 + $0x2d0] ss:$8 sps:$4 sm:$0xff]   ;;  %v887_v39 = vld [vmem:[%s10492_s7] sm:$0x3] }
 0x1da   : > { %v766_v46 = vpop.f32.mrf.mxu1  ;;  %1142 = vmatmul.mubr.bf16.gmra.mxu0 %v881_v40  ;;  %1799 = vmatprep.subr.bf16.mxu0 %v7295_v17  ;;  %v8349_v41 = vrot.slane %v887_v39, %v8209_v44 }
 0x1db   : > { %v802_v49 = vmul.f32 0.2, %v763_v43  ;;  %v833_v56 = vmax.f32 %v761_v37, %v801_v42  ;;  %v767_v55 = vadd.f32 %v766_v46, %v8221_v48  ;;  %v7320_v37 = vld [vmem:[%s10491_s6 + $0x2b0] ss:$8 sps:$4 sm:$0xff]   ;;  %v8352_v42 = vrot.slane %v887_v39, %v8067_v60 }
 0x1dc   : > { %v768_v50 = vpop.f32.mrf.mxu1 }
 0x1dd   : > { %v834_v52 = vmax.f32 %v763_v43, %v802_v49  ;;  %v769_v53 = vadd.f32 %v768_v50, %v8218_v47  ;;  %v883_v63 = vpack.c.bf16 %v833_v56, %v831_v54  ;;  %v803_v3 = vmul.f32 0.2, %v767_v55  ;;  %1800 = vmatpush1.bf16.msra.mxu0 %v7293_v18 }
 0x1de   : > { %v770_v57 = vpop.f32.mrf.mxu1  ;;  %1801 = vmatprep.subr.bf16.mxu0 %v7298_v19 }
 0x1df   : > { %v771_v58 = vadd.f32 %v770_v57, %v8221_v48  ;;  %v884_v59 = vpack.c.bf16 %v834_v52, %v832_v51  ;;  %v804_v0 = vmul.f32 0.2, %v769_v53  ;;  %v835_v8 = vmax.f32 %v767_v55, %v803_v3  ;;  %v7280_v48 = vld [vmem:[%s10491_s6 + $0x194] ss:$8 sps:$4 sm:$0xff]  }
 0x1e0   : > { %v772_v61 = vpop.f32.mrf.mxu1  ;;  %1422 = vmatprep.subr.bf16.mxu1 %v7280_v48 }
 0x1e1   : > { %v805_v1 = vmul.f32 0.2, %v771_v58  ;;  %v773_v2 = vadd.f32 %v772_v61, %v8218_v47  ;;  %1151 = vmatprep.mubr.bf16.mxu0 %v884_v59  ;;  %v836_v6 = vmax.f32 %v769_v53, %v804_v0  ;;  %v7278_v47 = vld [vmem:[%s10491_s6 + $0x190] ss:$8 sps:$4 sm:$0xff]   ;;  %1802 = vmatpush1.bf16.msra.mxu0 %v7296_v20 }
 0x1e2   : > { %1152 = vmatmul.mubr.bf16.gmra.mxu0 %v883_v63  ;;  %1423 = vmatpush2.bf16.msra.mxu1 %v7278_v47 }
 0x1e3   : > { %v806_v4 = vmul.f32 0.2, %v773_v2  ;;  %v837_v5 = vmax.f32 %v771_v58, %v805_v1  ;;  %1424 = vmatprep.subr.bf16.mxu1 %v7283_v62  ;;  %1803 = vmatprep.subr.bf16.mxu0 %v7301_v21 }
 0x1e5   : > { %v838_v7 = vmax.f32 %v773_v2, %v806_v4  ;;  %v885_v10 = vpack.c.bf16 %v837_v5, %v835_v8  ;;  %1804 = vmatpush1.bf16.msra.mxu0 %v7299_v22 }
 0x1e6   : > { %1425 = vmatpush2.bf16.msra.mxu1 %v7281_v11  ;;  %1805 = vmatprep.subr.bf16.mxu0 %v7304_v23 }
 0x1e7   : > { %v886_v9 = vpack.c.bf16 %v838_v7, %v836_v6 }
 0x1e9   : > { %1161 = vmatprep.mubr.bf16.mxu0 %v886_v9  ;;  %1806 = vmatpush1.bf16.msra.mxu0 %v7302_v24 }
 0x1ea   : > { %1162 = vmatmul.mubr.bf16.gmra.mxu0 %v885_v10  ;;  %1807 = vmatprep.subr.bf16.mxu0 %v7307_v25 }
 0x1ed   : > { %1808 = vmatpush1.bf16.msra.mxu0 %v7305_v26 }
 0x1ee   : > { %1809 = vmatprep.subr.bf16.mxu0 %v7310_v27 }
 0x1f1   : > { %1810 = vmatpush2.bf16.msra.mxu0 %v7308_v28 }
 0x1f2   : > { %1811 = vmatprep.subr.bf16.mxu0 %v7313_v29 }
 0x1f5   : > { %1812 = vmatpush2.bf16.msra.mxu0 %v7311_v31 }
 0x1f6   : > { %1813 = vmatprep.subr.bf16.mxu0 %v7316_v32 }
 0x1f9   : > { %1814 = vmatpush2.bf16.msra.mxu0 %v7314_v33 }
 0x1fa   : > { %1815 = vmatprep.subr.bf16.mxu0 %v7319_v34 }
 0x1fd   : > { %1816 = vmatpush2.bf16.msra.mxu0 %v7317_v35 }
 0x1fe   : > { %1817 = vmatprep.subr.bf16.mxu0 %v7322_v36 }
 0x201   : > { %1818 = vmatpush2.bf16.msra.mxu0 %v7320_v37 }
 0x272   : > { %v1093_v38 = vpop.f32.mrf.mxu0 }
 0x273   : > { %v8364_v50 = vadd.f32 %v1093_v38, %v8352_v42 }
 0x274   : > { %v1095_v40 = vpop.f32.mrf.mxu0 }
 0x275   : > { %v8358_v49 = vadd.f32 %v1095_v40, %v8349_v41 }
 0x276   : > { %v1097_v43 = vpop.f32.mrf.mxu0 }
 0x277   : > { %v8355_v45 = vadd.f32 %v1097_v43, %v8352_v42 }
 0x278   : > { %v1099_v46 = vpop.f32.mrf.mxu0 }
 0x279   : > { %v8361_v56 = vadd.f32 %v1099_v46, %v8349_v41  ;;  %v1205_v53 = vpack.c.bf16 %v8355_v45, %v8364_v50 }
 0x27a   : > { %v1103_v51 = vpop.f32.mrf.mxu0 }
 0x27b   : > { %v1206_v52 = vpack.c.bf16 %v8361_v56, %v8358_v49  ;;  %v8380_v63 = vadd.f32 %v1103_v51, %v8352_v42 }
 0x27c   : > { %v1105_v54 = vpop.f32.mrf.mxu0 }
 0x27d   : > { %1426 = vmatprep.mubr.bf16.mxu1 %v1206_v52  ;;  %v8374_v59 = vadd.f32 %v1105_v54, %v8349_v41 }
 0x27e   : > { %v1107_v55 = vpop.f32.mrf.mxu0  ;;  %1427 = vmatmul.mubr.bf16.vlgmr.msra.gmra.mxu1 %v1205_v53 }
 0x27f   : > { %v8371_v57 = vadd.f32 %v1107_v55, %v8352_v42 }
 0x280   : > { %v1109_v58 = vpop.f32.mrf.mxu0 }
 0x281   : > { %v8377_v61 = vadd.f32 %v1109_v58, %v8349_v41  ;;  %v1207_v2 = vpack.c.bf16 %v8371_v57, %v8380_v63 }
 0x282   : > { %v1113_v0 = vpop.f32.mrf.mxu0 }
 0x283   : > { %v1208_v1 = vpack.c.bf16 %v8377_v61, %v8374_v59  ;;  %v8396_v9 = vadd.f32 %v1113_v0, %v8352_v42 }
 0x284   : > { %v1115_v3 = vpop.f32.mrf.mxu0 }
 0x285   : > { %1436 = vmatprep.mubr.bf16.mxu1 %v1208_v1  ;;  %v8390_v7 = vadd.f32 %v1115_v3, %v8349_v41 }
 0x286   : > { %v1117_v4 = vpop.f32.mrf.mxu0  ;;  %1437 = vmatmul.mubr.bf16.gmra.mxu1 %v1207_v2 }
 0x287   : > { %v8387_v5 = vadd.f32 %v1117_v4, %v8352_v42 }
 0x288   : > { %v1119_v6 = vpop.f32.mrf.mxu0 }
 0x289   : > { %v8393_v8 = vadd.f32 %v1119_v6, %v8349_v41  ;;  %v1209_v47 = vpack.c.bf16 %v8387_v5, %v8396_v9 }
 0x28a   : > { %v1123_v10 = vpop.f32.mrf.mxu0 }
 0x28b   : > { %v1210_v48 = vpack.c.bf16 %v8393_v8, %v8390_v7  ;;  %v8412_v15 = vadd.f32 %v1123_v10, %v8352_v42 }
 0x28c   : > { %v1125_v62 = vpop.f32.mrf.mxu0 }
 0x28d   : > { %1446 = vmatprep.mubr.bf16.mxu1 %v1210_v48  ;;  %v8406_v13 = vadd.f32 %v1125_v62, %v8349_v41 }
 0x28e   : > { %v1127_v11 = vpop.f32.mrf.mxu0  ;;  %1447 = vmatmul.mubr.bf16.gmra.mxu1 %v1209_v47 }
 0x28f   : > { %v8403_v30 = vadd.f32 %v1127_v11, %v8352_v42  ;;  %v7325_v11 = vld [vmem:[%s10491_s6 + $0x2a4] ss:$8 sps:$4 sm:$0xff]  }
 0x290   : > { %v1129_v12 = vpop.f32.mrf.mxu0  ;;  %1819 = vmatprep.subr.bf16.mxu0 %v7325_v11  ;;  %v7370_v11 = vld [vmem:[%s10491_s6 + $0x3b4] ss:$8 sps:$4 sm:$0xff]  }
 0x291   : > { %v8409_v14 = vadd.f32 %v1129_v12, %v8349_v41  ;;  %v1211_v18 = vpack.c.bf16 %v8403_v30, %v8412_v15  ;;  %v7326_v12 = vld [vmem:[%s10491_s6 + $0x290] ss:$8 sps:$4 sm:$0xff]  }
 0x292   : > { %v1133_v16 = vpop.f32.mrf.mxu0 }
 0x293   : > { %v1212_v17 = vpack.c.bf16 %v8409_v14, %v8406_v13  ;;  %v8428_v25 = vadd.f32 %v1133_v16, %v8352_v42  ;;  %v7331_v16 = vld [vmem:[%s10491_s6 + $0x284] ss:$8 sps:$4 sm:$0xff]  }
 0x294   : > { %v1135_v19 = vpop.f32.mrf.mxu0 }
 0x295   : > { %1456 = vmatprep.mubr.bf16.mxu1 %v1212_v17  ;;  %v8422_v23 = vadd.f32 %v1135_v19, %v8349_v41  ;;  %v7329_v17 = vld [vmem:[%s10491_s6 + $0x280] ss:$8 sps:$4 sm:$0xff]   ;;  %v7334_v19 = vld [vmem:[%s10491_s6 + $0x374] ss:$8 sps:$4 sm:$0xff]  }
 0x296   : > { %v1137_v20 = vpop.f32.mrf.mxu0  ;;  %1457 = vmatmul.mubr.bf16.gmra.mxu1 %v1211_v18  ;;  %v7332_v18 = vld [vmem:[%s10491_s6 + $0x370] ss:$8 sps:$4 sm:$0xff]   ;;  %2192 = vmatprep.subr.bf16.mxu1 %v7334_v19 }
 0x297   : > { %v8419_v21 = vadd.f32 %v1137_v20, %v8352_v42  ;;  %v7337_v20 = vld [vmem:[%s10491_s6 + $0x364] ss:$8 sps:$4 sm:$0xff]   ;;  %2193 = vmatpush1.bf16.msra.mxu1 %v7332_v18 }
 0x298   : > { %v1139_v22 = vpop.f32.mrf.mxu0  ;;  %2194 = vmatprep.subr.bf16.mxu1 %v7337_v20 }
 0x299   : > { %v8425_v24 = vadd.f32 %v1139_v22, %v8349_v41  ;;  %v1213_v28 = vpack.c.bf16 %v8419_v21, %v8428_v25  ;;  %v7335_v22 = vld [vmem:[%s10491_s6 + $0x360] ss:$8 sps:$4 sm:$0xff]  }
 0x29a   : > { %v1143_v26 = vpop.f32.mrf.mxu0 }
 0x29b   : > { %v1214_v27 = vpack.c.bf16 %v8425_v24, %v8422_v23  ;;  %v8444_v36 = vadd.f32 %v1143_v26, %v8352_v42  ;;  %v7340_v26 = vld [vmem:[%s10491_s6 + $0x354] ss:$8 sps:$4 sm:$0xff]   ;;  %2195 = vmatpush1.bf16.msra.mxu1 %v7335_v22 }
 0x29c   : > { %v1145_v29 = vpop.f32.mrf.mxu0  ;;  %2196 = vmatprep.subr.bf16.mxu1 %v7340_v26 }
 0x29d   : > { %1466 = vmatprep.mubr.bf16.mxu1 %v1214_v27  ;;  %v8438_v34 = vadd.f32 %v1145_v29, %v8349_v41  ;;  %v7338_v27 = vld [vmem:[%s10491_s6 + $0x350] ss:$8 sps:$4 sm:$0xff]   ;;  %v7341_v29 = vld [vmem:[%s10491_s6 + $0x340] ss:$8 sps:$4 sm:$0xff]  }
 0x29e   : > { %v1147_v31 = vpop.f32.mrf.mxu0  ;;  %1467 = vmatmul.mubr.bf16.gmra.mxu1 %v1213_v28  ;;  %v7343_v28 = vld [vmem:[%s10491_s6 + $0x344] ss:$8 sps:$4 sm:$0xff]  }
 0x29f   : > { %v8435_v32 = vadd.f32 %v1147_v31, %v8352_v42  ;;  %2197 = vmatpush1.bf16.msra.mxu1 %v7338_v27  ;;  %v7346_v31 = vld [vmem:[%s10491_s6 + $0x334] ss:$8 sps:$4 sm:$0xff]  }
 0x2a0   : > { %v1149_v33 = vpop.f32.mrf.mxu0  ;;  %2198 = vmatprep.subr.bf16.mxu1 %v7343_v28 }
 0x2a1   : > { %v8441_v35 = vadd.f32 %v1149_v33, %v8349_v41  ;;  %v1215_v39 = vpack.c.bf16 %v8435_v32, %v8444_v36  ;;  %v7344_v33 = vld [vmem:[%s10491_s6 + $0x330] ss:$8 sps:$4 sm:$0xff]  }
 0x2a2   : > { %v1153_v37 = vpop.f32.mrf.mxu0 }
 0x2a3   : > { %v1216_v38 = vpack.c.bf16 %v8441_v35, %v8438_v34  ;;  %v8460_v54 = vadd.f32 %v1153_v37, %v8352_v42  ;;  %2199 = vmatpush1.bf16.msra.mxu1 %v7341_v29  ;;  %v7349_v37 = vld [vmem:[%s10491_s6 + $0x324] ss:$8 sps:$4 sm:$0xff]  }
 0x2a4   : > { %v1155_v40 = vpop.f32.mrf.mxu0  ;;  %2200 = vmatprep.subr.bf16.mxu1 %v7346_v31 }
 0x2a5   : > { %1476 = vmatprep.mubr.bf16.mxu1 %v1216_v38  ;;  %v8454_v52 = vadd.f32 %v1155_v40, %v8349_v41  ;;  %v7347_v38 = vld [vmem:[%s10491_s6 + $0x320] ss:$8 sps:$4 sm:$0xff]   ;;  %v7350_v40 = vld [vmem:[%s10491_s6 + $0x310] ss:$8 sps:$4 sm:$0xff]  }
 0x2a6   : > { %v1157_v43 = vpop.f32.mrf.mxu0  ;;  %1477 = vmatmul.mubr.bf16.gmra.mxu1 %v1215_v39  ;;  %v7352_v39 = vld [vmem:[%s10491_s6 + $0x314] ss:$8 sps:$4 sm:$0xff]  }
 0x2a7   : > { %v8451_v46 = vadd.f32 %v1157_v43, %v8352_v42  ;;  %2201 = vmatpush1.bf16.msra.mxu1 %v7344_v33  ;;  %v7355_v43 = vld [vmem:[%s10491_s6 + $0x304] ss:$8 sps:$4 sm:$0xff]  }
 0x2a8   : > { %v1159_v51 = vpop.f32.mrf.mxu0  ;;  %2202 = vmatprep.subr.bf16.mxu1 %v7349_v37 }
 0x2a9   : > { %v8457_v53 = vadd.f32 %v1159_v51, %v8349_v41  ;;  %v1217_v0 = vpack.c.bf16 %v8451_v46, %v8460_v54  ;;  %v7353_v51 = vld [vmem:[%s10491_s6 + $0x300] ss:$8 sps:$4 sm:$0xff]  }
 0x2aa   : > { %v1163_v55 = vpop.f32.mrf.mxu0 }
 0x2ab   : > { %v1218_v58 = vpack.c.bf16 %v8457_v53, %v8454_v52  ;;  %v8476_v48 = vadd.f32 %v1163_v55, %v8352_v42  ;;  %2203 = vmatpush1.bf16.msra.mxu1 %v7347_v38  ;;  %v7358_v55 = vld [vmem:[%s10491_s6 + $0x3f4] ss:$8 sps:$4 sm:$0xff]  }
 0x2ac   : > { %v1165_v1 = vpop.f32.mrf.mxu0  ;;  %2204 = vmatprep.subr.bf16.mxu1 %v7352_v39 }
 0x2ad   : > { %1486 = vmatprep.mubr.bf16.mxu1 %v1218_v58  ;;  %v8470_v6 = vadd.f32 %v1165_v1, %v8349_v41  ;;  %v7356_v58 = vld [vmem:[%s10491_s6 + $0x3f0] ss:$8 sps:$4 sm:$0xff]   ;;  %v7359_v1 = vld [vmem:[%s10491_s6 + $0x3e0] ss:$8 sps:$4 sm:$0xff]  }
 0x2ae   : > { %v1167_v2 = vpop.f32.mrf.mxu0  ;;  %1487 = vmatmul.mubr.bf16.gmra.mxu1 %v1217_v0  ;;  %v7361_v0 = vld [vmem:[%s10491_s6 + $0x3e4] ss:$8 sps:$4 sm:$0xff]  }
 0x2af   : > { %v8467_v3 = vadd.f32 %v1167_v2, %v8352_v42  ;;  %v7328_v42 = vld [vmem:[%s10491_s6 + $0x294] ss:$8 sps:$4 sm:$0xff]   ;;  %2205 = vmatpush1.bf16.msra.mxu1 %v7350_v40 }
 0x2b0   : > { %v1169_v4 = vpop.f32.mrf.mxu0  ;;  %2206 = vmatprep.subr.bf16.mxu1 %v7355_v43  ;;  %v7364_v2 = vld [vmem:[%s10491_s6 + $0x3d4] ss:$8 sps:$4 sm:$0xff]  }
 0x2b1   : > { %v8473_v10 = vadd.f32 %v1169_v4, %v8349_v41  ;;  %v1219_v62 = vpack.c.bf16 %v8467_v3, %v8476_v48  ;;  %v7323_v41 = vld [vmem:[%s10491_s6 + $0x2a0] ss:$8 sps:$4 sm:$0xff]   ;;  %v7362_v4 = vld [vmem:[%s10491_s6 + $0x3d0] ss:$8 sps:$4 sm:$0xff]  }
 0x2b2   : > { %1820 = vmatpush2.bf16.msra.mxu0 %v7323_v41  ;;  %v7368_v41 = vld [vmem:[%s10491_s6 + $0x3b0] ss:$8 sps:$4 sm:$0xff]  }
 0x2b3   : > { %v1220_v47 = vpack.c.bf16 %v8473_v10, %v8470_v6  ;;  %1821 = vmatprep.subr.bf16.mxu0 %v7328_v42  ;;  %2207 = vmatpush1.bf16.msra.mxu1 %v7353_v51  ;;  %v6300_v42 = vld [vmem:[%s10492_s7 + $0x2] sm:$0x3] }
 0x2b4   : > { %2208 = vmatprep.subr.bf16.mxu1 %v7358_v55 }
 0x2b5   : > { %1496 = vmatprep.mubr.bf16.mxu1 %v1220_v47  ;;  %v7367_v47 = vld [vmem:[%s10491_s6 + $0x3c4] ss:$8 sps:$4 sm:$0xff]  }
 0x2b6   : > { %1497 = vmatmul.mubr.bf16.gmra.mxu1 %v1219_v62  ;;  %1822 = vmatpush2.bf16.msra.mxu0 %v7326_v12  ;;  %v7365_v62 = vld [vmem:[%s10491_s6 + $0x3c0] ss:$8 sps:$4 sm:$0xff]   ;;  %v8582_v12 = vrot.slane %v6300_v42, %v8209_v44 }
 0x2b7   : > { %1823 = vmatprep.subr.bf16.mxu0 %v7331_v16  ;;  %2209 = vmatpush2.bf16.msra.mxu1 %v7356_v58  ;;  %v8585_v16 = vrot.slane %v6300_v42, %v8067_v60 }
 0x2b8   : > { %2210 = vmatprep.subr.bf16.mxu1 %v7361_v0 }
 0x2ba   : > { %1824 = vmatpush2.bf16.msra.mxu0 %v7329_v17 }
 0x2bb   : > { %2211 = vmatpush2.bf16.msra.mxu1 %v7359_v1 }
 0x2bc   : > { %2212 = vmatprep.subr.bf16.mxu1 %v7364_v2 }
 0x2bf   : > { %2213 = vmatpush2.bf16.msra.mxu1 %v7362_v4 }
 0x2c0   : > { %2214 = vmatprep.subr.bf16.mxu1 %v7367_v47 }
 0x2c3   : > { %2215 = vmatpush2.bf16.msra.mxu1 %v7365_v62 }
 0x2c4   : > { %2216 = vmatprep.subr.bf16.mxu1 %v7370_v11 }
 0x2c7   : > { %2217 = vmatpush2.bf16.msra.mxu1 %v7368_v41 }
 0x33e   : > { %v1428_v17 = vpop.f32.mrf.mxu1 }
 0x33f   : > { %v1429_v20 = vadd.f32 %v1428_v17, %v8585_v16 }
 0x340   : > { %v1430_v18 = vpop.f32.mrf.mxu1 }
 0x341   : > { %v1431_v19 = vadd.f32 %v1430_v18, %v8582_v12  ;;  %v1507_v33 = vmul.f32 0.2, %v1429_v20 }
 0x342   : > { %v1432_v22 = vpop.f32.mrf.mxu1 }
 0x343   : > { %v1433_v26 = vadd.f32 %v1432_v22, %v8585_v16  ;;  %v1508_v28 = vmul.f32 0.2, %v1431_v19  ;;  %v1539_v58 = vmax.f32 %v1429_v20, %v1507_v33 }
 0x344   : > { %v1434_v27 = vpop.f32.mrf.mxu1 }
 0x345   : > { %v1509_v29 = vmul.f32 0.2, %v1433_v26  ;;  %v1435_v31 = vadd.f32 %v1434_v27, %v8582_v12  ;;  %v1540_v43 = vmax.f32 %v1431_v19, %v1508_v28 }
 0x346   : > { %v1438_v37 = vpop.f32.mrf.mxu1 }
 0x347   : > { %v1510_v38 = vmul.f32 0.2, %v1435_v31  ;;  %v1541_v39 = vmax.f32 %v1433_v26, %v1509_v29  ;;  %v1439_v0 = vadd.f32 %v1438_v37, %v8585_v16 }
 0x348   : > { %v1440_v40 = vpop.f32.mrf.mxu1 }
 0x349   : > { %v1542_v51 = vmax.f32 %v1435_v31, %v1510_v38  ;;  %v1441_v55 = vadd.f32 %v1440_v40, %v8582_v12  ;;  %v1604_v47 = vpack.c.bf16 %v1541_v39, %v1539_v58  ;;  %v1511_v17 = vmul.f32 0.2, %v1439_v0 }
 0x34a   : > { %v1442_v1 = vpop.f32.mrf.mxu1 }
 0x34b   : > { %v1443_v2 = vadd.f32 %v1442_v1, %v8585_v16  ;;  %v1605_v4 = vpack.c.bf16 %v1542_v51, %v1540_v43  ;;  %v1512_v11 = vmul.f32 0.2, %v1441_v55  ;;  %v1543_v29 = vmax.f32 %v1439_v0, %v1511_v17 }
 0x34c   : > { %v1444_v62 = vpop.f32.mrf.mxu1 }
 0x34d   : > { %v1513_v41 = vmul.f32 0.2, %v1443_v2  ;;  %v1445_v42 = vadd.f32 %v1444_v62, %v8582_v12  ;;  %1825 = vmatprep.mubr.bf16.mxu0 %v1605_v4  ;;  %v1544_v20 = vmax.f32 %v1441_v55, %v1512_v11 }
 0x34e   : > { %v1448_v18 = vpop.f32.mrf.mxu1  ;;  %1826 = vmatmul.mubr.bf16.vlgmr.msra.gmra.mxu0 %v1604_v47 }
 0x34f   : > { %v1514_v19 = vmul.f32 0.2, %v1445_v42  ;;  %v1545_v22 = vmax.f32 %v1443_v2, %v1513_v41  ;;  %v1449_v31 = vadd.f32 %v1448_v18, %v8585_v16 }
 0x350   : > { %v1450_v26 = vpop.f32.mrf.mxu1 }
 0x351   : > { %v1546_v27 = vmax.f32 %v1445_v42, %v1514_v19  ;;  %v1451_v28 = vadd.f32 %v1450_v26, %v8582_v12  ;;  %v1606_v40 = vpack.c.bf16 %v1545_v22, %v1543_v29  ;;  %v1515_v1 = vmul.f32 0.2, %v1449_v31 }
 0x352   : > { %v1452_v33 = vpop.f32.mrf.mxu1 }
 0x353   : > { %v1453_v37 = vadd.f32 %v1452_v33, %v8585_v16  ;;  %v1607_v38 = vpack.c.bf16 %v1546_v27, %v1544_v20  ;;  %v1516_v43 = vmul.f32 0.2, %v1451_v28  ;;  %v1547_v41 = vmax.f32 %v1449_v31, %v1515_v1 }
 0x354   : > { %v1454_v39 = vpop.f32.mrf.mxu1 }
 0x355   : > { %v1517_v51 = vmul.f32 0.2, %v1453_v37  ;;  %v1455_v58 = vadd.f32 %v1454_v39, %v8582_v12  ;;  %1835 = vmatprep.mubr.bf16.mxu0 %v1607_v38  ;;  %v1548_v0 = vmax.f32 %v1451_v28, %v1516_v43 }
 0x356   : > { %v1458_v2 = vpop.f32.mrf.mxu1  ;;  %1836 = vmatmul.mubr.bf16.gmra.mxu0 %v1606_v40 }
 0x357   : > { %v1518_v55 = vmul.f32 0.2, %v1455_v58  ;;  %v1549_v4 = vmax.f32 %v1453_v37, %v1517_v51  ;;  %v1459_v42 = vadd.f32 %v1458_v2, %v8585_v16 }
 0x358   : > { %v1460_v47 = vpop.f32.mrf.mxu1 }
 0x359   : > { %v1550_v62 = vmax.f32 %v1455_v58, %v1518_v55  ;;  %v1461_v11 = vadd.f32 %v1460_v47, %v8582_v12  ;;  %v1608_v26 = vpack.c.bf16 %v1549_v4, %v1547_v41  ;;  %v1519_v33 = vmul.f32 0.2, %v1459_v42 }
 0x35a   : > { %v1462_v17 = vpop.f32.mrf.mxu1 }
 0x35b   : > { %v1463_v18 = vadd.f32 %v1462_v17, %v8585_v16  ;;  %v1609_v19 = vpack.c.bf16 %v1550_v62, %v1548_v0  ;;  %v1520_v20 = vmul.f32 0.2, %v1461_v11  ;;  %v1551_v51 = vmax.f32 %v1459_v42, %v1519_v33 }
 0x35c   : > { %v1464_v22 = vpop.f32.mrf.mxu1 }
 0x35d   : > { %v1521_v27 = vmul.f32 0.2, %v1463_v18  ;;  %v1465_v29 = vadd.f32 %v1464_v22, %v8582_v12  ;;  %1845 = vmatprep.mubr.bf16.mxu0 %v1609_v19  ;;  %v1552_v31 = vmax.f32 %v1461_v11, %v1520_v20 }
 0x35e   : > { %v1468_v37 = vpop.f32.mrf.mxu1  ;;  %1846 = vmatmul.mubr.bf16.gmra.mxu0 %v1608_v26 }
 0x35f   : > { %v1522_v28 = vmul.f32 0.2, %v1465_v29  ;;  %v1553_v38 = vmax.f32 %v1463_v18, %v1521_v27  ;;  %v1469_v58 = vadd.f32 %v1468_v37, %v8585_v16 }
 0x360   : > { %v1470_v39 = vpop.f32.mrf.mxu1 }
 0x361   : > { %v1554_v40 = vmax.f32 %v1465_v29, %v1522_v28  ;;  %v1471_v43 = vadd.f32 %v1470_v39, %v8582_v12  ;;  %v1610_v47 = vpack.c.bf16 %v1553_v38, %v1551_v51  ;;  %v1523_v17 = vmul.f32 0.2, %v1469_v58 }
 0x362   : > { %v1472_v1 = vpop.f32.mrf.mxu1 }
 0x363   : > { %v1473_v2 = vadd.f32 %v1472_v1, %v8585_v16  ;;  %v1611_v55 = vpack.c.bf16 %v1554_v40, %v1552_v31  ;;  %v1524_v0 = vmul.f32 0.2, %v1471_v43  ;;  %v1555_v27 = vmax.f32 %v1469_v58, %v1523_v17 }
 0x364   : > { %v1474_v4 = vpop.f32.mrf.mxu1 }
 0x365   : > { %v1525_v62 = vmul.f32 0.2, %v1473_v2  ;;  %v1475_v41 = vadd.f32 %v1474_v4, %v8582_v12  ;;  %1855 = vmatprep.mubr.bf16.mxu0 %v1611_v55  ;;  %v1556_v42 = vmax.f32 %v1471_v43, %v1524_v0 }
 0x366   : > { %v1478_v18 = vpop.f32.mrf.mxu1  ;;  %1856 = vmatmul.mubr.bf16.gmra.mxu0 %v1610_v47 }
 0x367   : > { %v1526_v11 = vmul.f32 0.2, %v1475_v41  ;;  %v1557_v19 = vmax.f32 %v1473_v2, %v1525_v62  ;;  %v1479_v29 = vadd.f32 %v1478_v18, %v8585_v16 }
 0x368   : > { %v1480_v22 = vpop.f32.mrf.mxu1 }
 0x369   : > { %v1558_v26 = vmax.f32 %v1475_v41, %v1526_v11  ;;  %v1481_v20 = vadd.f32 %v1480_v22, %v8582_v12  ;;  %v1612_v39 = vpack.c.bf16 %v1557_v19, %v1555_v27  ;;  %v1527_v1 = vmul.f32 0.2, %v1479_v29 }
 0x36a   : > { %v1482_v33 = vpop.f32.mrf.mxu1 }
 0x36b   : > { %v1483_v37 = vadd.f32 %v1482_v33, %v8585_v16  ;;  %v1613_v28 = vpack.c.bf16 %v1558_v26, %v1556_v42  ;;  %v1528_v31 = vmul.f32 0.2, %v1481_v20  ;;  %v1559_v62 = vmax.f32 %v1479_v29, %v1527_v1 }
 0x36c   : > { %v1484_v38 = vpop.f32.mrf.mxu1 }
 0x36d   : > { %v1529_v40 = vmul.f32 0.2, %v1483_v37  ;;  %v1485_v51 = vadd.f32 %v1484_v38, %v8582_v12  ;;  %1865 = vmatprep.mubr.bf16.mxu0 %v1613_v28  ;;  %v1560_v58 = vmax.f32 %v1481_v20, %v1528_v31 }
 0x36e   : > { %v1488_v2 = vpop.f32.mrf.mxu1  ;;  %1866 = vmatmul.mubr.bf16.gmra.mxu0 %v1612_v39 }
 0x36f   : > { %v1530_v43 = vmul.f32 0.2, %v1485_v51  ;;  %v1561_v55 = vmax.f32 %v1483_v37, %v1529_v40  ;;  %v1489_v41 = vadd.f32 %v1488_v2, %v8585_v16 }
 0x370   : > { %v1490_v4 = vpop.f32.mrf.mxu1 }
 0x371   : > { %v1562_v47 = vmax.f32 %v1485_v51, %v1530_v43  ;;  %v1491_v0 = vadd.f32 %v1490_v4, %v8582_v12  ;;  %v1614_v22 = vpack.c.bf16 %v1561_v55, %v1559_v62  ;;  %v1531_v33 = vmul.f32 0.2, %v1489_v41 }
 0x372   : > { %v1492_v17 = vpop.f32.mrf.mxu1 }
 0x373   : > { %v1493_v18 = vadd.f32 %v1492_v17, %v8585_v16  ;;  %v1615_v11 = vpack.c.bf16 %v1562_v47, %v1560_v58  ;;  %v1532_v42 = vmul.f32 0.2, %v1491_v0  ;;  %v1563_v40 = vmax.f32 %v1489_v41, %v1531_v33  ;;  %v7379_v33 = vld [vmem:[%s10491_s6 + $0x384] ss:$8 sps:$4 sm:$0xff]  }
 0x374   : > { %v1494_v19 = vpop.f32.mrf.mxu1 }
 0x375   : > { %v1533_v26 = vmul.f32 0.2, %v1493_v18  ;;  %v1495_v27 = vadd.f32 %v1494_v19, %v8582_v12  ;;  %1875 = vmatprep.mubr.bf16.mxu0 %v1615_v11  ;;  %v1564_v29 = vmax.f32 %v1491_v0, %v1532_v42 }
 0x376   : > { %v1498_v37 = vpop.f32.mrf.mxu1  ;;  %1876 = vmatmul.mubr.bf16.gmra.mxu0 %v1614_v22 }
 0x377   : > { %v1534_v20 = vmul.f32 0.2, %v1495_v27  ;;  %v1565_v28 = vmax.f32 %v1493_v18, %v1533_v26  ;;  %v1499_v51 = vadd.f32 %v1498_v37, %v8585_v16  ;;  %v7376_v26 = vld [vmem:[%s10491_s6 + $0x394] ss:$8 sps:$4 sm:$0xff]   ;;  %v7377_v37 = vld [vmem:[%s10491_s6 + $0x380] ss:$8 sps:$4 sm:$0xff]  }
 0x378   : > { %v1500_v38 = vpop.f32.mrf.mxu1 }
 0x379   : > { %v1566_v39 = vmax.f32 %v1495_v27, %v1534_v20  ;;  %v1501_v31 = vadd.f32 %v1500_v38, %v8582_v12  ;;  %v1616_v4 = vpack.c.bf16 %v1565_v28, %v1563_v40  ;;  %v1535_v17 = vmul.f32 0.2, %v1499_v51  ;;  %v7374_v27 = vld [vmem:[%s10491_s6 + $0x390] ss:$8 sps:$4 sm:$0xff]   ;;  %v7382_v28 = vld [vmem:[%s10491_s6 + $0x474] ss:$8 sps:$4 sm:$0xff]  }
 0x37a   : > { %v1502_v1 = vpop.f32.mrf.mxu1  ;;  %v7380_v20 = vld [vmem:[%s10491_s6 + $0x470] ss:$8 sps:$4 sm:$0xff]   ;;  %v7385_v38 = vld [vmem:[%s10491_s6 + $0x464] ss:$8 sps:$4 sm:$0xff]   ;;  %2559 = vmatprep.subr.bf16.mxu0 %v7382_v28 }
 0x37b   : > { %v1503_v2 = vadd.f32 %v1502_v1, %v8585_v16  ;;  %v1617_v43 = vpack.c.bf16 %v1566_v39, %v1564_v29  ;;  %v1536_v58 = vmul.f32 0.2, %v1501_v31  ;;  %v1567_v41 = vmax.f32 %v1499_v51, %v1535_v17  ;;  %v7373_v16 = vld [vmem:[%s10491_s6 + $0x3a4] ss:$8 sps:$4 sm:$0xff]   ;;  %2560 = vmatpush1.bf16.msra.mxu0 %v7380_v20  ;;  %v7383_v29 = vld [vmem:[%s10491_s6 + $0x460] ss:$8 sps:$4 sm:$0xff]  }
 0x37c   : > { %v1504_v55 = vpop.f32.mrf.mxu1  ;;  %2218 = vmatprep.subr.bf16.mxu1 %v7373_v16  ;;  %2561 = vmatprep.subr.bf16.mxu0 %v7385_v38  ;;  %v7388_v39 = vld [vmem:[%s10491_s6 + $0x454] ss:$8 sps:$4 sm:$0xff]   ;;  %v7391_v40 = vld [vmem:[%s10491_s6 + $0x444] ss:$8 sps:$4 sm:$0xff]   ;;  %v7389_v51 = vld [vmem:[%s10491_s6 + $0x440] ss:$8 sps:$4 sm:$0xff]  }
 0x37d   : > { %v1537_v47 = vmul.f32 0.2, %v1503_v2  ;;  %v1505_v62 = vadd.f32 %v1504_v55, %v8582_v12  ;;  %1885 = vmatprep.mubr.bf16.mxu0 %v1617_v43  ;;  %v1568_v11 = vmax.f32 %v1501_v31, %v1536_v58  ;;  %v7371_v12 = vld [vmem:[%s10491_s6 + $0x3a0] ss:$8 sps:$4 sm:$0xff]   ;;  %v7386_v31 = vld [vmem:[%s10491_s6 + $0x450] ss:$8 sps:$4 sm:$0xff]  }
 0x37e   : > { %1886 = vmatmul.mubr.bf16.gmra.mxu0 %v1616_v4  ;;  %2219 = vmatpush2.bf16.msra.mxu1 %v7371_v12  ;;  %v7394_v1 = vld [vmem:[%s10491_s6 + $0x434] ss:$8 sps:$4 sm:$0xff]   ;;  %v7397_v43 = vld [vmem:[%s10491_s6 + $0x424] ss:$8 sps:$4 sm:$0xff]   ;;  %v7395_v55 = vld [vmem:[%s10491_s6 + $0x420] ss:$8 sps:$4 sm:$0xff]  }
 0x37f   : > { %v1538_v0 = vmul.f32 0.2, %v1505_v62  ;;  %v1569_v18 = vmax.f32 %v1503_v2, %v1537_v47  ;;  %2220 = vmatprep.subr.bf16.mxu1 %v7376_v26  ;;  %2562 = vmatpush1.bf16.msra.mxu0 %v7383_v29  ;;  %v7392_v2 = vld [vmem:[%s10491_s6 + $0x430] ss:$8 sps:$4 sm:$0xff]   ;;  %v7400_v4 = vld [vmem:[%s10491_s6 + $0x414] ss:$8 sps:$4 sm:$0xff]  }
 0x380   : > { %2563 = vmatprep.subr.bf16.mxu0 %v7388_v39  ;;  %v7398_v58 = vld [vmem:[%s10491_s6 + $0x410] ss:$8 sps:$4 sm:$0xff]   ;;  %v7403_v47 = vld [vmem:[%s10491_s6 + $0x404] ss:$8 sps:$4 sm:$0xff]   ;;  %v7406_v17 = vld [vmem:[%s10491_s6 + $0x4f4] ss:$8 sps:$4 sm:$0xff]  }
 0x381   : > { %v1570_v19 = vmax.f32 %v1505_v62, %v1538_v0  ;;  %v1618_v42 = vpack.c.bf16 %v1569_v18, %v1567_v41  ;;  %v7401_v62 = vld [vmem:[%s10491_s6 + $0x400] ss:$8 sps:$4 sm:$0xff]   ;;  %v7404_v0 = vld [vmem:[%s10491_s6 + $0x4f0] ss:$8 sps:$4 sm:$0xff]   ;;  %v7409_v18 = vld [vmem:[%s10491_s6 + $0x4e4] ss:$8 sps:$4 sm:$0xff]  }
 0x382   : > { %2221 = vmatpush2.bf16.msra.mxu1 %v7374_v27  ;;  %v7410_v41 = vld [vmem:[%s10491_s6 + $0x4d0] ss:$8 sps:$4 sm:$0xff]   ;;  %v7418_v16 = vld [vmem:[%s10491_s6 + $0x4b4] ss:$8 sps:$4 sm:$0xff]   ;;  %v6365_v26 = vld [vmem:[%s10492_s7 + $0x4] sm:$0x3] }
 0x383   : > { %v1619_v22 = vpack.c.bf16 %v1570_v19, %v1568_v11  ;;  %2222 = vmatprep.subr.bf16.mxu1 %v7379_v33  ;;  %2564 = vmatpush1.bf16.msra.mxu0 %v7386_v31  ;;  %v7407_v11 = vld [vmem:[%s10491_s6 + $0x4e0] ss:$8 sps:$4 sm:$0xff]   ;;  %v7412_v19 = vld [vmem:[%s10491_s6 + $0x4d4] ss:$8 sps:$4 sm:$0xff]   ;;  %v7416_v12 = vld [vmem:[%s10491_s6 + $0x4b0] ss:$8 sps:$4 sm:$0xff]   ;;  %v8719_v27 = vrot.slane %v6365_v26, %v8209_v44  ;;  %v8722_v33 = vrot.slane %v6365_v26, %v8067_v60 }
 0x384   : > { %2565 = vmatprep.subr.bf16.mxu0 %v7391_v40 }
 0x385   : > { %1895 = vmatprep.mubr.bf16.mxu0 %v1619_v22  ;;  %v7415_v22 = vld [vmem:[%s10491_s6 + $0x4c4] ss:$8 sps:$4 sm:$0xff]  }
 0x386   : > { %1896 = vmatmul.mubr.bf16.gmra.mxu0 %v1618_v42  ;;  %2223 = vmatpush2.bf16.msra.mxu1 %v7377_v37  ;;  %v7413_v42 = vld [vmem:[%s10491_s6 + $0x4c0] ss:$8 sps:$4 sm:$0xff]  }
 0x387   : > { %2566 = vmatpush1.bf16.msra.mxu0 %v7389_v51 }
 0x388   : > { %2567 = vmatprep.subr.bf16.mxu0 %v7394_v1 }
 0x38b   : > { %2568 = vmatpush1.bf16.msra.mxu0 %v7392_v2 }
 0x38c   : > { %2569 = vmatprep.subr.bf16.mxu0 %v7397_v43 }
 0x38f   : > { %2570 = vmatpush1.bf16.msra.mxu0 %v7395_v55 }
 0x390   : > { %2571 = vmatprep.subr.bf16.mxu0 %v7400_v4 }
 0x393   : > { %2572 = vmatpush1.bf16.msra.mxu0 %v7398_v58 }
 0x394   : > { %2573 = vmatprep.subr.bf16.mxu0 %v7403_v47 }
 0x397   : > { %2574 = vmatpush1.bf16.msra.mxu0 %v7401_v62 }
 0x398   : > { %2575 = vmatprep.subr.bf16.mxu0 %v7406_v17 }
 0x39b   : > { %2576 = vmatpush2.bf16.msra.mxu0 %v7404_v0 }
 0x39c   : > { %2577 = vmatprep.subr.bf16.mxu0 %v7409_v18 }
 0x39f   : > { %2578 = vmatpush2.bf16.msra.mxu0 %v7407_v11 }
 0x3a0   : > { %2579 = vmatprep.subr.bf16.mxu0 %v7412_v19 }
 0x3a3   : > { %2580 = vmatpush2.bf16.msra.mxu0 %v7410_v41 }
 0x3a4   : > { %2581 = vmatprep.subr.bf16.mxu0 %v7415_v22 }
 0x3a7   : > { %2582 = vmatpush2.bf16.msra.mxu0 %v7413_v42 }
 0x3a8   : > { %2583 = vmatprep.subr.bf16.mxu0 %v7418_v16 }
 0x3ab   : > { %2584 = vmatpush2.bf16.msra.mxu0 %v7416_v12 }
 0x40e   : > { %v1827_v37 = vpop.f32.mrf.mxu0 }
 0x40f   : > { %v1828_v38 = vadd.f32 %v1827_v37, %v8722_v33 }
 0x410   : > { %v1829_v20 = vpop.f32.mrf.mxu0 }
 0x411   : > { %v1830_v28 = vadd.f32 %v1829_v20, %v8719_v27  ;;  %v1906_v2 = vmul.f32 0.2, %v1828_v38 }
 0x412   : > { %v1831_v29 = vpop.f32.mrf.mxu0 }
 0x413   : > { %v1832_v39 = vadd.f32 %v1831_v29, %v8722_v33  ;;  %v1907_v40 = vmul.f32 0.2, %v1830_v28  ;;  %v1938_v0 = vmax.f32 %v1828_v38, %v1906_v2 }
 0x414   : > { %v1833_v31 = vpop.f32.mrf.mxu0 }
 0x415   : > { %v1908_v51 = vmul.f32 0.2, %v1832_v39  ;;  %v1834_v1 = vadd.f32 %v1833_v31, %v8719_v27  ;;  %v1939_v47 = vmax.f32 %v1830_v28, %v1907_v40 }
 0x416   : > { %v1837_v43 = vpop.f32.mrf.mxu0 }
 0x417   : > { %v1909_v55 = vmul.f32 0.2, %v1834_v1  ;;  %v1940_v4 = vmax.f32 %v1832_v39, %v1908_v51  ;;  %v1838_v18 = vadd.f32 %v1837_v43, %v8722_v33 }
 0x418   : > { %v1839_v58 = vpop.f32.mrf.mxu0 }
 0x419   : > { %v1941_v62 = vmax.f32 %v1834_v1, %v1909_v55  ;;  %v1840_v17 = vadd.f32 %v1839_v58, %v8719_v27  ;;  %v2003_v22 = vpack.c.bf16 %v1940_v4, %v1938_v0  ;;  %v1910_v37 = vmul.f32 0.2, %v1838_v18 }
 0x41a   : > { %v1841_v11 = vpop.f32.mrf.mxu0 }
 0x41b   : > { %v1842_v19 = vadd.f32 %v1841_v11, %v8722_v33  ;;  %v2004_v41 = vpack.c.bf16 %v1941_v62, %v1939_v47  ;;  %v1911_v16 = vmul.f32 0.2, %v1840_v17  ;;  %v1942_v51 = vmax.f32 %v1838_v18, %v1910_v37 }
 0x41c   : > { %v1843_v42 = vpop.f32.mrf.mxu0 }
 0x41d   : > { %v1912_v12 = vmul.f32 0.2, %v1842_v19  ;;  %v1844_v26 = vadd.f32 %v1843_v42, %v8719_v27  ;;  %2224 = vmatprep.mubr.bf16.mxu1 %v2004_v41  ;;  %v1943_v38 = vmax.f32 %v1840_v17, %v1911_v16 }
 0x41e   : > { %v1847_v20 = vpop.f32.mrf.mxu0  ;;  %2225 = vmatmul.mubr.bf16.vlgmr.msra.gmra.mxu1 %v2003_v22 }
 0x41f   : > { %v1913_v28 = vmul.f32 0.2, %v1844_v26  ;;  %v1944_v29 = vmax.f32 %v1842_v19, %v1912_v12  ;;  %v1848_v1 = vadd.f32 %v1847_v20, %v8722_v33 }
 0x420   : > { %v1849_v39 = vpop.f32.mrf.mxu0 }
 0x421   : > { %v1945_v31 = vmax.f32 %v1844_v26, %v1913_v28  ;;  %v1850_v40 = vadd.f32 %v1849_v39, %v8719_v27  ;;  %v2005_v58 = vpack.c.bf16 %v1944_v29, %v1942_v51  ;;  %v1914_v11 = vmul.f32 0.2, %v1848_v1 }
 0x422   : > { %v1851_v2 = vpop.f32.mrf.mxu0 }
 0x423   : > { %v1852_v43 = vadd.f32 %v1851_v2, %v8722_v33  ;;  %v2006_v55 = vpack.c.bf16 %v1945_v31, %v1943_v38  ;;  %v1915_v47 = vmul.f32 0.2, %v1850_v40  ;;  %v1946_v12 = vmax.f32 %v1848_v1, %v1914_v11 }
 0x424   : > { %v1853_v4 = vpop.f32.mrf.mxu0 }
 0x425   : > { %v1916_v62 = vmul.f32 0.2, %v1852_v43  ;;  %v1854_v0 = vadd.f32 %v1853_v4, %v8719_v27  ;;  %2234 = vmatprep.mubr.bf16.mxu1 %v2006_v55  ;;  %v1947_v18 = vmax.f32 %v1850_v40, %v1915_v47 }
 0x426   : > { %v1857_v19 = vpop.f32.mrf.mxu0  ;;  %2235 = vmatmul.mubr.bf16.gmra.mxu1 %v2005_v58 }
 0x427   : > { %v1917_v17 = vmul.f32 0.2, %v1854_v0  ;;  %v1948_v41 = vmax.f32 %v1852_v43, %v1916_v62  ;;  %v1858_v26 = vadd.f32 %v1857_v19, %v8722_v33 }
 0x428   : > { %v1859_v22 = vpop.f32.mrf.mxu0 }
 0x429   : > { %v1949_v42 = vmax.f32 %v1854_v0, %v1917_v17  ;;  %v1860_v16 = vadd.f32 %v1859_v22, %v8719_v27  ;;  %v2007_v39 = vpack.c.bf16 %v1948_v41, %v1946_v12  ;;  %v1918_v2 = vmul.f32 0.2, %v1858_v26 }
 0x42a   : > { %v1861_v37 = vpop.f32.mrf.mxu0 }
 0x42b   : > { %v1862_v20 = vadd.f32 %v1861_v37, %v8722_v33  ;;  %v2008_v28 = vpack.c.bf16 %v1949_v42, %v1947_v18  ;;  %v1919_v38 = vmul.f32 0.2, %v1860_v16  ;;  %v1950_v62 = vmax.f32 %v1858_v26, %v1918_v2 }
 0x42c   : > { %v1863_v29 = vpop.f32.mrf.mxu0 }
 0x42d   : > { %v1920_v31 = vmul.f32 0.2, %v1862_v20  ;;  %v1864_v51 = vadd.f32 %v1863_v29, %v8719_v27  ;;  %2244 = vmatprep.mubr.bf16.mxu1 %v2008_v28  ;;  %v1951_v1 = vmax.f32 %v1860_v16, %v1919_v38 }
 0x42e   : > { %v1867_v43 = vpop.f32.mrf.mxu0  ;;  %2245 = vmatmul.mubr.bf16.gmra.mxu1 %v2007_v39 }
 0x42f   : > { %v1921_v40 = vmul.f32 0.2, %v1864_v51  ;;  %v1952_v55 = vmax.f32 %v1862_v20, %v1920_v31  ;;  %v1868_v0 = vadd.f32 %v1867_v43, %v8722_v33 }
 0x430   : > { %v1869_v4 = vpop.f32.mrf.mxu0 }
 0x431   : > { %v1953_v58 = vmax.f32 %v1864_v51, %v1921_v40  ;;  %v1870_v47 = vadd.f32 %v1869_v4, %v8719_v27  ;;  %v2009_v22 = vpack.c.bf16 %v1952_v55, %v1950_v62  ;;  %v1922_v37 = vmul.f32 0.2, %v1868_v0 }
 0x432   : > { %v1871_v11 = vpop.f32.mrf.mxu0 }
 0x433   : > { %v1872_v19 = vadd.f32 %v1871_v11, %v8722_v33  ;;  %v2010_v17 = vpack.c.bf16 %v1953_v58, %v1951_v1  ;;  %v1923_v18 = vmul.f32 0.2, %v1870_v47  ;;  %v1954_v31 = vmax.f32 %v1868_v0, %v1922_v37 }
 0x434   : > { %v1873_v41 = vpop.f32.mrf.mxu0 }
 0x435   : > { %v1924_v42 = vmul.f32 0.2, %v1872_v19  ;;  %v1874_v12 = vadd.f32 %v1873_v41, %v8719_v27  ;;  %2254 = vmatprep.mubr.bf16.mxu1 %v2010_v17  ;;  %v1955_v26 = vmax.f32 %v1870_v47, %v1923_v18 }
 0x436   : > { %v1877_v20 = vpop.f32.mrf.mxu0  ;;  %2255 = vmatmul.mubr.bf16.gmra.mxu1 %v2009_v22 }
 0x437   : > { %v1925_v16 = vmul.f32 0.2, %v1874_v12  ;;  %v1956_v28 = vmax.f32 %v1872_v19, %v1924_v42  ;;  %v1878_v51 = vadd.f32 %v1877_v20, %v8722_v33 }
 0x438   : > { %v1879_v29 = vpop.f32.mrf.mxu0 }
 0x439   : > { %v1957_v39 = vmax.f32 %v1874_v12, %v1925_v16  ;;  %v1880_v38 = vadd.f32 %v1879_v29, %v8719_v27  ;;  %v2011_v4 = vpack.c.bf16 %v1956_v28, %v1954_v31  ;;  %v1926_v11 = vmul.f32 0.2, %v1878_v51 }
 0x43a   : > { %v1881_v2 = vpop.f32.mrf.mxu0 }
 0x43b   : > { %v1882_v43 = vadd.f32 %v1881_v2, %v8722_v33  ;;  %v2012_v40 = vpack.c.bf16 %v1957_v39, %v1955_v26  ;;  %v1927_v1 = vmul.f32 0.2, %v1880_v38  ;;  %v1958_v42 = vmax.f32 %v1878_v51, %v1926_v11 }
 0x43c   : > { %v1883_v55 = vpop.f32.mrf.mxu0 }
 0x43d   : > { %v1928_v58 = vmul.f32 0.2, %v1882_v43  ;;  %v1884_v62 = vadd.f32 %v1883_v55, %v8719_v27  ;;  %2264 = vmatprep.mubr.bf16.mxu1 %v2012_v40  ;;  %v1959_v0 = vmax.f32 %v1880_v38, %v1927_v1 }
 0x43e   : > { %v1887_v19 = vpop.f32.mrf.mxu0  ;;  %2265 = vmatmul.mubr.bf16.gmra.mxu1 %v2011_v4 }
 0x43f   : > { %v1929_v47 = vmul.f32 0.2, %v1884_v62  ;;  %v1960_v17 = vmax.f32 %v1882_v43, %v1928_v58  ;;  %v1888_v12 = vadd.f32 %v1887_v19, %v8722_v33 }
 0x440   : > { %v1889_v41 = vpop.f32.mrf.mxu0 }
 0x441   : > { %v1961_v22 = vmax.f32 %v1884_v62, %v1929_v47  ;;  %v1890_v18 = vadd.f32 %v1889_v41, %v8719_v27  ;;  %v2013_v29 = vpack.c.bf16 %v1960_v17, %v1958_v42  ;;  %v1930_v2 = vmul.f32 0.2, %v1888_v12 }
 0x442   : > { %v1891_v37 = vpop.f32.mrf.mxu0 }
 0x443   : > { %v1892_v20 = vadd.f32 %v1891_v37, %v8722_v33  ;;  %v2014_v16 = vpack.c.bf16 %v1961_v22, %v1959_v0  ;;  %v1931_v26 = vmul.f32 0.2, %v1890_v18  ;;  %v1962_v58 = vmax.f32 %v1888_v12, %v1930_v2  ;;  %v7427_v2 = vld [vmem:[%s10491_s6 + $0x484] ss:$8 sps:$4 sm:$0xff]  }
 0x444   : > { %v1893_v28 = vpop.f32.mrf.mxu0 }
 0x445   : > { %v1932_v39 = vmul.f32 0.2, %v1892_v20  ;;  %v1894_v31 = vadd.f32 %v1893_v28, %v8719_v27  ;;  %2274 = vmatprep.mubr.bf16.mxu1 %v2014_v16  ;;  %v1963_v51 = vmax.f32 %v1890_v18, %v1931_v26 }
 0x446   : > { %v1897_v43 = vpop.f32.mrf.mxu0  ;;  %2275 = vmatmul.mubr.bf16.gmra.mxu1 %v2013_v29 }
 0x447   : > { %v1933_v38 = vmul.f32 0.2, %v1894_v31  ;;  %v1964_v40 = vmax.f32 %v1892_v20, %v1932_v39  ;;  %v1898_v62 = vadd.f32 %v1897_v43, %v8722_v33  ;;  %v7424_v39 = vld [vmem:[%s10491_s6 + $0x494] ss:$8 sps:$4 sm:$0xff]   ;;  %v7425_v43 = vld [vmem:[%s10491_s6 + $0x480] ss:$8 sps:$4 sm:$0xff]  }
 0x448   : > { %v1899_v55 = vpop.f32.mrf.mxu0 }
 0x449   : > { %v1965_v4 = vmax.f32 %v1894_v31, %v1933_v38  ;;  %v1900_v1 = vadd.f32 %v1899_v55, %v8719_v27  ;;  %v2015_v41 = vpack.c.bf16 %v1964_v40, %v1962_v58  ;;  %v1934_v37 = vmul.f32 0.2, %v1898_v62  ;;  %v7422_v31 = vld [vmem:[%s10491_s6 + $0x490] ss:$8 sps:$4 sm:$0xff]   ;;  %v7430_v40 = vld [vmem:[%s10491_s6 + $0x574] ss:$8 sps:$4 sm:$0xff]  }
 0x44a   : > { %v1901_v11 = vpop.f32.mrf.mxu0  ;;  %v7428_v38 = vld [vmem:[%s10491_s6 + $0x570] ss:$8 sps:$4 sm:$0xff]   ;;  %v7433_v55 = vld [vmem:[%s10491_s6 + $0x564] ss:$8 sps:$4 sm:$0xff]   ;;  %2958 = vmatprep.subr.bf16.mxu1 %v7430_v40 }
 0x44b   : > { %v1902_v19 = vadd.f32 %v1901_v11, %v8722_v33  ;;  %v2016_v47 = vpack.c.bf16 %v1965_v4, %v1963_v51  ;;  %v1935_v0 = vmul.f32 0.2, %v1900_v1  ;;  %v1966_v12 = vmax.f32 %v1898_v62, %v1934_v37  ;;  %v7421_v33 = vld [vmem:[%s10491_s6 + $0x4a4] ss:$8 sps:$4 sm:$0xff]   ;;  %2959 = vmatpush1.bf16.msra.mxu1 %v7428_v38  ;;  %v7431_v51 = vld [vmem:[%s10491_s6 + $0x560] ss:$8 sps:$4 sm:$0xff]  }
 0x44c   : > { %v1903_v17 = vpop.f32.mrf.mxu0  ;;  %2585 = vmatprep.subr.bf16.mxu0 %v7421_v33  ;;  %2960 = vmatprep.subr.bf16.mxu1 %v7433_v55  ;;  %v7436_v4 = vld [vmem:[%s10491_s6 + $0x554] ss:$8 sps:$4 sm:$0xff]   ;;  %v7439_v58 = vld [vmem:[%s10491_s6 + $0x544] ss:$8 sps:$4 sm:$0xff]   ;;  %v7437_v62 = vld [vmem:[%s10491_s6 + $0x540] ss:$8 sps:$4 sm:$0xff]  }
 0x44d   : > { %v1936_v22 = vmul.f32 0.2, %v1902_v19  ;;  %v1904_v42 = vadd.f32 %v1903_v17, %v8719_v27  ;;  %2284 = vmatprep.mubr.bf16.mxu1 %v2016_v47  ;;  %v1967_v16 = vmax.f32 %v1900_v1, %v1935_v0  ;;  %v7419_v27 = vld [vmem:[%s10491_s6 + $0x4a0] ss:$8 sps:$4 sm:$0xff]   ;;  %v7434_v1 = vld [vmem:[%s10491_s6 + $0x550] ss:$8 sps:$4 sm:$0xff]  }
 0x44e   : > { %2285 = vmatmul.mubr.bf16.gmra.mxu1 %v2015_v41  ;;  %2586 = vmatpush2.bf16.msra.mxu0 %v7419_v27  ;;  %v7442_v11 = vld [vmem:[%s10491_s6 + $0x534] ss:$8 sps:$4 sm:$0xff]   ;;  %v7445_v47 = vld [vmem:[%s10491_s6 + $0x524] ss:$8 sps:$4 sm:$0xff]   ;;  %v7443_v17 = vld [vmem:[%s10491_s6 + $0x520] ss:$8 sps:$4 sm:$0xff]  }
 0x44f   : > { %v1937_v18 = vmul.f32 0.2, %v1904_v42  ;;  %v1968_v20 = vmax.f32 %v1902_v19, %v1936_v22  ;;  %2587 = vmatprep.subr.bf16.mxu0 %v7424_v39  ;;  %2961 = vmatpush1.bf16.msra.mxu1 %v7431_v51  ;;  %v7440_v19 = vld [vmem:[%s10491_s6 + $0x530] ss:$8 sps:$4 sm:$0xff]   ;;  %v7448_v41 = vld [vmem:[%s10491_s6 + $0x514] ss:$8 sps:$4 sm:$0xff]  }
 0x450   : > { %2962 = vmatprep.subr.bf16.mxu1 %v7436_v4  ;;  %v7446_v0 = vld [vmem:[%s10491_s6 + $0x510] ss:$8 sps:$4 sm:$0xff]   ;;  %v7451_v22 = vld [vmem:[%s10491_s6 + $0x504] ss:$8 sps:$4 sm:$0xff]   ;;  %v7454_v37 = vld [vmem:[%s10491_s6 + $0x5f4] ss:$8 sps:$4 sm:$0xff]  }
 0x451   : > { %v1969_v28 = vmax.f32 %v1904_v42, %v1937_v18  ;;  %v2017_v26 = vpack.c.bf16 %v1968_v20, %v1966_v12  ;;  %v7449_v42 = vld [vmem:[%s10491_s6 + $0x500] ss:$8 sps:$4 sm:$0xff]   ;;  %v7452_v18 = vld [vmem:[%s10491_s6 + $0x5f0] ss:$8 sps:$4 sm:$0xff]   ;;  %v7457_v20 = vld [vmem:[%s10491_s6 + $0x5e4] ss:$8 sps:$4 sm:$0xff]  }
 0x452   : > { %2588 = vmatpush2.bf16.msra.mxu0 %v7422_v31  ;;  %v7458_v12 = vld [vmem:[%s10491_s6 + $0x5d0] ss:$8 sps:$4 sm:$0xff]   ;;  %v7466_v33 = vld [vmem:[%s10491_s6 + $0x5b4] ss:$8 sps:$4 sm:$0xff]   ;;  %v6430_v39 = vld [vmem:[%s10492_s7 + $0x6] sm:$0x3] }
 0x453   : > { %v2018_v29 = vpack.c.bf16 %v1969_v28, %v1967_v16  ;;  %2589 = vmatprep.subr.bf16.mxu0 %v7427_v2  ;;  %2963 = vmatpush1.bf16.msra.mxu1 %v7434_v1  ;;  %v7455_v16 = vld [vmem:[%s10491_s6 + $0x5e0] ss:$8 sps:$4 sm:$0xff]   ;;  %v7460_v28 = vld [vmem:[%s10491_s6 + $0x5d4] ss:$8 sps:$4 sm:$0xff]   ;;  %v7464_v27 = vld [vmem:[%s10491_s6 + $0x5b0] ss:$8 sps:$4 sm:$0xff]   ;;  %v8856_v2 = vrot.slane %v6430_v39, %v8209_v44 }
 0x454   : > { %2964 = vmatprep.subr.bf16.mxu1 %v7439_v58 }
 0x455   : > { %2294 = vmatprep.mubr.bf16.mxu1 %v2018_v29  ;;  %v7463_v29 = vld [vmem:[%s10491_s6 + $0x5c4] ss:$8 sps:$4 sm:$0xff]  }
 0x456   : > { %2295 = vmatmul.mubr.bf16.gmra.mxu1 %v2017_v26  ;;  %2590 = vmatpush2.bf16.msra.mxu0 %v7425_v43  ;;  %v7461_v26 = vld [vmem:[%s10491_s6 + $0x5c0] ss:$8 sps:$4 sm:$0xff]   ;;  %v8859_v43 = vrot.slane %v6430_v39, %v8067_v60 }
 0x457   : > { %2965 = vmatpush1.bf16.msra.mxu1 %v7437_v62 }
 0x458   : > { %2966 = vmatprep.subr.bf16.mxu1 %v7442_v11 }
 0x45b   : > { %2967 = vmatpush1.bf16.msra.mxu1 %v7440_v19 }
 0x45c   : > { %2968 = vmatprep.subr.bf16.mxu1 %v7445_v47 }
 0x45f   : > { %2969 = vmatpush1.bf16.msra.mxu1 %v7443_v17 }
 0x460   : > { %2970 = vmatprep.subr.bf16.mxu1 %v7448_v41 }
 0x463   : > { %2971 = vmatpush1.bf16.msra.mxu1 %v7446_v0 }
 0x464   : > { %2972 = vmatprep.subr.bf16.mxu1 %v7451_v22 }
 0x467   : > { %2973 = vmatpush1.bf16.msra.mxu1 %v7449_v42 }
 0x468   : > { %2974 = vmatprep.subr.bf16.mxu1 %v7454_v37 }
 0x46b   : > { %2975 = vmatpush2.bf16.msra.mxu1 %v7452_v18 }
 0x46c   : > { %2976 = vmatprep.subr.bf16.mxu1 %v7457_v20 }
 0x46f   : > { %2977 = vmatpush2.bf16.msra.mxu1 %v7455_v16 }
 0x470   : > { %2978 = vmatprep.subr.bf16.mxu1 %v7460_v28 }
 0x473   : > { %2979 = vmatpush2.bf16.msra.mxu1 %v7458_v12 }
 0x474   : > { %2980 = vmatprep.subr.bf16.mxu1 %v7463_v29 }
 0x477   : > { %2981 = vmatpush2.bf16.msra.mxu1 %v7461_v26 }
 0x478   : > { %2982 = vmatprep.subr.bf16.mxu1 %v7466_v33 }
 0x47b   : > { %2983 = vmatpush2.bf16.msra.mxu1 %v7464_v27 }
 0x4de   : > { %v2226_v31 = vpop.f32.mrf.mxu1 }
 0x4df   : > { %v2227_v4 = vadd.f32 %v2226_v31, %v8859_v43 }
 0x4e0   : > { %v2228_v38 = vpop.f32.mrf.mxu1 }
 0x4e1   : > { %v2229_v55 = vadd.f32 %v2228_v38, %v8856_v2  ;;  %v8875_v17 = vadd.f32 %v2227_v4, %v8364_v50 }
 0x4e2   : > { %v2230_v40 = vpop.f32.mrf.mxu1 }
 0x4e3   : > { %v2231_v51 = vadd.f32 %v2230_v40, %v8859_v43  ;;  %v8869_v19 = vadd.f32 %v2229_v55, %v8358_v49 }
 0x4e4   : > { %v2232_v1 = vpop.f32.mrf.mxu1 }
 0x4e5   : > { %v2233_v58 = vadd.f32 %v2232_v1, %v8856_v2  ;;  %v8866_v62 = vadd.f32 %v2231_v51, %v8355_v45 }
 0x4e6   : > { %v2236_v11 = vpop.f32.mrf.mxu1 }
 0x4e7   : > { %v8872_v47 = vadd.f32 %v2233_v58, %v8361_v56  ;;  %v2370_v22 = vpack.c.bf16 %v8866_v62, %v8875_v17  ;;  %v2237_v49 = vadd.f32 %v2236_v11, %v8859_v43 }
 0x4e8   : > { %v2238_v41 = vpop.f32.mrf.mxu1 }
 0x4e9   : > { %v2371_v0 = vpack.c.bf16 %v8872_v47, %v8869_v19  ;;  %v2239_v45 = vadd.f32 %v2238_v41, %v8856_v2  ;;  %v8895_v12 = vadd.f32 %v2237_v49, %v8380_v63 }
 0x4ea   : > { %v2240_v42 = vpop.f32.mrf.mxu1 }
 0x4eb   : > { %v2241_v37 = vadd.f32 %v2240_v42, %v8859_v43  ;;  %2591 = vmatprep.mubr.bf16.mxu0 %v2371_v0  ;;  %v8889_v16 = vadd.f32 %v2239_v45, %v8374_v59 }
 0x4ec   : > { %v2242_v56 = vpop.f32.mrf.mxu1  ;;  %2592 = vmatmul.mubr.bf16.vlgmr.msra.gmra.mxu0 %v2370_v22 }
 0x4ed   : > { %v2243_v50 = vadd.f32 %v2242_v56, %v8856_v2  ;;  %v8886_v18 = vadd.f32 %v2241_v37, %v8371_v57 }
 0x4ee   : > { %v2246_v20 = vpop.f32.mrf.mxu1 }
 0x4ef   : > { %v8892_v28 = vadd.f32 %v2243_v50, %v8377_v61  ;;  %v2372_v27 = vpack.c.bf16 %v8886_v18, %v8895_v12  ;;  %v2247_v59 = vadd.f32 %v2246_v20, %v8859_v43 }
 0x4f0   : > { %v2248_v29 = vpop.f32.mrf.mxu1 }
 0x4f1   : > { %v2373_v26 = vpack.c.bf16 %v8892_v28, %v8889_v16  ;;  %v2249_v57 = vadd.f32 %v2248_v29, %v8856_v2  ;;  %v8915_v51 = vadd.f32 %v2247_v59, %v8396_v9 }
 0x4f2   : > { %v2250_v33 = vpop.f32.mrf.mxu1 }
 0x4f3   : > { %v2251_v39 = vadd.f32 %v2250_v33, %v8859_v43  ;;  %2601 = vmatprep.mubr.bf16.mxu0 %v2373_v26  ;;  %v8909_v40 = vadd.f32 %v2249_v57, %v8390_v7 }
 0x4f4   : > { %v2252_v61 = vpop.f32.mrf.mxu1  ;;  %2602 = vmatmul.mubr.bf16.gmra.mxu0 %v2372_v27 }
 0x4f5   : > { %v2253_v63 = vadd.f32 %v2252_v61, %v8856_v2  ;;  %v8906_v31 = vadd.f32 %v2251_v39, %v8387_v5 }
 0x4f6   : > { %v2256_v38 = vpop.f32.mrf.mxu1 }
 0x4f7   : > { %v8912_v55 = vadd.f32 %v2253_v63, %v8393_v8  ;;  %v2374_v11 = vpack.c.bf16 %v8906_v31, %v8915_v51  ;;  %v2257_v7 = vadd.f32 %v2256_v38, %v8859_v43 }
 0x4f8   : > { %v2258_v4 = vpop.f32.mrf.mxu1 }
 0x4f9   : > { %v2375_v1 = vpack.c.bf16 %v8912_v55, %v8909_v40  ;;  %v2259_v5 = vadd.f32 %v2258_v4, %v8856_v2  ;;  %v8935_v37 = vadd.f32 %v2257_v7, %v8412_v15 }
 0x4fa   : > { %v2260_v58 = vpop.f32.mrf.mxu1 }
 0x4fb   : > { %v2261_v41 = vadd.f32 %v2260_v58, %v8859_v43  ;;  %2611 = vmatprep.mubr.bf16.mxu0 %v2375_v1  ;;  %v8929_v42 = vadd.f32 %v2259_v5, %v8406_v13 }
 0x4fc   : > { %v2262_v8 = vpop.f32.mrf.mxu1  ;;  %2612 = vmatmul.mubr.bf16.gmra.mxu0 %v2374_v11 }
 0x4fd   : > { %v2263_v9 = vadd.f32 %v2262_v8, %v8856_v2  ;;  %v8926_v0 = vadd.f32 %v2261_v41, %v8403_v30 }
 0x4fe   : > { %v2266_v22 = vpop.f32.mrf.mxu1 }
 0x4ff   : > { %v8932_v45 = vadd.f32 %v2263_v9, %v8409_v14  ;;  %v2376_v20 = vpack.c.bf16 %v8926_v0, %v8935_v37  ;;  %v2267_v13 = vadd.f32 %v2266_v22, %v8859_v43 }
 0x500   : > { %v2268_v49 = vpop.f32.mrf.mxu1 }
 0x501   : > { %v2377_v56 = vpack.c.bf16 %v8932_v45, %v8929_v42  ;;  %v2269_v30 = vadd.f32 %v2268_v49, %v8856_v2  ;;  %v8955_v39 = vadd.f32 %v2267_v13, %v8428_v25 }
 0x502   : > { %v2270_v50 = vpop.f32.mrf.mxu1 }
 0x503   : > { %v2271_v29 = vadd.f32 %v2270_v50, %v8859_v43  ;;  %2621 = vmatprep.mubr.bf16.mxu0 %v2377_v56  ;;  %v8949_v27 = vadd.f32 %v2269_v30, %v8422_v23 }
 0x504   : > { %v2272_v14 = vpop.f32.mrf.mxu1  ;;  %2622 = vmatmul.mubr.bf16.gmra.mxu0 %v2376_v20 }
 0x505   : > { %v2273_v15 = vadd.f32 %v2272_v14, %v8856_v2  ;;  %v8946_v26 = vadd.f32 %v2271_v29, %v8419_v21 }
 0x506   : > { %v2276_v33 = vpop.f32.mrf.mxu1 }
 0x507   : > { %v8952_v57 = vadd.f32 %v2273_v15, %v8425_v24  ;;  %v2378_v38 = vpack.c.bf16 %v8946_v26, %v8955_v39  ;;  %v2277_v23 = vadd.f32 %v2276_v33, %v8859_v43 }
 0x508   : > { %v2278_v59 = vpop.f32.mrf.mxu1 }
 0x509   : > { %v2379_v61 = vpack.c.bf16 %v8952_v57, %v8949_v27  ;;  %v2279_v21 = vadd.f32 %v2278_v59, %v8856_v2  ;;  %v8975_v41 = vadd.f32 %v2277_v23, %v8444_v36  ;;  %v7473_v23 = vld [vmem:[%s10491_s6 + $0x580] ss:$8 sps:$4 sm:$0xff]  }
 0x50a   : > { %v2280_v63 = vpop.f32.mrf.mxu1 }
 0x50b   : > { %v2281_v4 = vadd.f32 %v2280_v63, %v8859_v43  ;;  %2631 = vmatprep.mubr.bf16.mxu0 %v2379_v61  ;;  %v8969_v11 = vadd.f32 %v2279_v21, %v8438_v34 }
 0x50c   : > { %v2282_v24 = vpop.f32.mrf.mxu1  ;;  %2632 = vmatmul.mubr.bf16.gmra.mxu0 %v2378_v38 }
 0x50d   : > { %v2283_v25 = vadd.f32 %v2282_v24, %v8856_v2  ;;  %v8966_v1 = vadd.f32 %v2281_v4, %v8435_v32  ;;  %v7476_v24 = vld [vmem:[%s10491_s6 + $0x670] ss:$8 sps:$4 sm:$0xff]  }
 0x50e   : > { %v2286_v58 = vpop.f32.mrf.mxu1 }
 0x50f   : > { %v8972_v5 = vadd.f32 %v2283_v25, %v8441_v35  ;;  %v2380_v22 = vpack.c.bf16 %v8966_v1, %v8975_v41  ;;  %v2287_v34 = vadd.f32 %v2286_v58, %v8859_v43  ;;  %v7478_v25 = vld [vmem:[%s10491_s6 + $0x674] ss:$8 sps:$4 sm:$0xff]   ;;  %v7481_v58 = vld [vmem:[%s10491_s6 + $0x664] ss:$8 sps:$4 sm:$0xff]  }
 0x510   : > { %v2288_v7 = vpop.f32.mrf.mxu1  ;;  %3357 = vmatprep.subr.bf16.mxu0 %v7478_v25 }
 0x511   : > { %v2381_v8 = vpack.c.bf16 %v8972_v5, %v8969_v11  ;;  %v2289_v32 = vadd.f32 %v2288_v7, %v8856_v2  ;;  %v8995_v29 = vadd.f32 %v2287_v34, %v8460_v54  ;;  %3358 = vmatpush1.bf16.msra.mxu0 %v7476_v24  ;;  %v7479_v7 = vld [vmem:[%s10491_s6 + $0x660] ss:$8 sps:$4 sm:$0xff]   ;;  %v7488_v34 = vld [vmem:[%s10491_s6 + $0x630] ss:$8 sps:$4 sm:$0xff]  }
 0x512   : > { %v2290_v9 = vpop.f32.mrf.mxu1  ;;  %3359 = vmatprep.subr.bf16.mxu0 %v7481_v58 }
 0x513   : > { %v2291_v49 = vadd.f32 %v2290_v9, %v8859_v43  ;;  %2641 = vmatprep.mubr.bf16.mxu0 %v2381_v8  ;;  %v8989_v20 = vadd.f32 %v2289_v32, %v8454_v52  ;;  %v7484_v8 = vld [vmem:[%s10491_s6 + $0x654] ss:$8 sps:$4 sm:$0xff]   ;;  %v7482_v9 = vld [vmem:[%s10491_s6 + $0x650] ss:$8 sps:$4 sm:$0xff]   ;;  %v7485_v32 = vld [vmem:[%s10491_s6 + $0x640] ss:$8 sps:$4 sm:$0xff]  }
 0x514   : > { %v2292_v35 = vpop.f32.mrf.mxu1  ;;  %2642 = vmatmul.mubr.bf16.gmra.mxu0 %v2380_v22  ;;  %v7487_v22 = vld [vmem:[%s10491_s6 + $0x644] ss:$8 sps:$4 sm:$0xff]  }
 0x515   : > { %v2293_v36 = vadd.f32 %v2292_v35, %v8856_v2  ;;  %v8986_v56 = vadd.f32 %v2291_v49, %v8451_v46  ;;  %3360 = vmatpush1.bf16.msra.mxu0 %v7479_v7  ;;  %v7490_v49 = vld [vmem:[%s10491_s6 + $0x634] ss:$8 sps:$4 sm:$0xff]   ;;  %v7493_v35 = vld [vmem:[%s10491_s6 + $0x624] ss:$8 sps:$4 sm:$0xff]  }
 0x516   : > { %v2296_v50 = vpop.f32.mrf.mxu1  ;;  %3361 = vmatprep.subr.bf16.mxu0 %v7484_v8 }
 0x517   : > { %v8992_v30 = vadd.f32 %v2293_v36, %v8457_v53  ;;  %v2382_v33 = vpack.c.bf16 %v8986_v56, %v8995_v29  ;;  %v2297_v52 = vadd.f32 %v2296_v50, %v8859_v43  ;;  %v7491_v36 = vld [vmem:[%s10491_s6 + $0x620] ss:$8 sps:$4 sm:$0xff]   ;;  %v7496_v50 = vld [vmem:[%s10491_s6 + $0x614] ss:$8 sps:$4 sm:$0xff]  }
 0x518   : > { %v2298_v13 = vpop.f32.mrf.mxu1 }
 0x519   : > { %v2383_v14 = vpack.c.bf16 %v8992_v30, %v8989_v20  ;;  %v2299_v46 = vadd.f32 %v2298_v13, %v8856_v2  ;;  %v9015_v21 = vadd.f32 %v2297_v52, %v8476_v48  ;;  %v7470_v48 = vld [vmem:[%s10491_s6 + $0x590] ss:$8 sps:$4 sm:$0xff]   ;;  %3362 = vmatpush1.bf16.msra.mxu0 %v7482_v9  ;;  %v7503_v52 = vld [vmem:[%s10491_s6 + $0x6e0] ss:$8 sps:$4 sm:$0xff]  }
 0x51a   : > { %v2300_v15 = vpop.f32.mrf.mxu1  ;;  %3363 = vmatprep.subr.bf16.mxu0 %v7487_v22  ;;  %v7494_v13 = vld [vmem:[%s10491_s6 + $0x610] ss:$8 sps:$4 sm:$0xff]  }
 0x51b   : > { %v2301_v59 = vadd.f32 %v2300_v15, %v8859_v43  ;;  %2651 = vmatprep.mubr.bf16.mxu0 %v2383_v14  ;;  %v9009_v63 = vadd.f32 %v2299_v46, %v8470_v6  ;;  %v7467_v6 = vld [vmem:[%s10491_s6 + $0x5a0] ss:$8 sps:$4 sm:$0xff]   ;;  %v7499_v14 = vld [vmem:[%s10491_s6 + $0x604] ss:$8 sps:$4 sm:$0xff]   ;;  %v7500_v46 = vld [vmem:[%s10491_s6 + $0x6f0] ss:$8 sps:$4 sm:$0xff]  }
 0x51c   : > { %v2302_v53 = vpop.f32.mrf.mxu1  ;;  %2652 = vmatmul.mubr.bf16.gmra.mxu0 %v2382_v33  ;;  %v7497_v15 = vld [vmem:[%s10491_s6 + $0x600] ss:$8 sps:$4 sm:$0xff]   ;;  %v7502_v33 = vld [vmem:[%s10491_s6 + $0x6f4] ss:$8 sps:$4 sm:$0xff]  }
 0x51d   : > { %v2303_v54 = vadd.f32 %v2302_v53, %v8856_v2  ;;  %v9006_v61 = vadd.f32 %v2301_v59, %v8467_v3  ;;  %v7469_v3 = vld [vmem:[%s10491_s6 + $0x5a4] ss:$8 sps:$4 sm:$0xff]   ;;  %3364 = vmatpush1.bf16.msra.mxu0 %v7485_v32  ;;  %v7508_v53 = vld [vmem:[%s10491_s6 + $0x6d4] ss:$8 sps:$4 sm:$0xff]  }
 0x51e   : > { %2984 = vmatprep.subr.bf16.mxu1 %v7469_v3  ;;  %v7475_v2 = vld [vmem:[%s10491_s6 + $0x584] ss:$8 sps:$4 sm:$0xff]   ;;  %3365 = vmatprep.subr.bf16.mxu0 %v7490_v49  ;;  %v7514_v3 = vld [vmem:[%s10491_s6 + $0x6b4] ss:$8 sps:$4 sm:$0xff]  }
 0x51f   : > { %v9012_v38 = vadd.f32 %v2303_v54, %v8473_v10  ;;  %v2384_v43 = vpack.c.bf16 %v9006_v61, %v9015_v21  ;;  %2985 = vmatpush2.bf16.msra.mxu1 %v7467_v6  ;;  %v7472_v10 = vld [vmem:[%s10491_s6 + $0x594] ss:$8 sps:$4 sm:$0xff]   ;;  %v7505_v59 = vld [vmem:[%s10491_s6 + $0x6e4] ss:$8 sps:$4 sm:$0xff]   ;;  %v7506_v54 = vld [vmem:[%s10491_s6 + $0x6d0] ss:$8 sps:$4 sm:$0xff]  }
 0x520   : > { %2986 = vmatprep.subr.bf16.mxu1 %v7472_v10  ;;  %v7512_v6 = vld [vmem:[%s10491_s6 + $0x6b0] ss:$8 sps:$4 sm:$0xff]   ;;  %v6495_v10 = vld [vmem:[%s10492_s7 + $0x8] sm:$0x3] }
 0x521   : > { %v2385_v4 = vpack.c.bf16 %v9012_v38, %v9009_v63  ;;  %3366 = vmatpush1.bf16.msra.mxu0 %v7488_v34 }
 0x522   : > { %3367 = vmatprep.subr.bf16.mxu0 %v7493_v35 }
 0x523   : > { %2661 = vmatprep.mubr.bf16.mxu0 %v2385_v4  ;;  %2987 = vmatpush2.bf16.msra.mxu1 %v7470_v48  ;;  %v7511_v4 = vld [vmem:[%s10491_s6 + $0x6c4] ss:$8 sps:$4 sm:$0xff]   ;;  %v9121_v48 = vrot.slane %v6495_v10, %v8209_v44 }
 0x524   : > { %2662 = vmatmul.mubr.bf16.gmra.mxu0 %v2384_v43  ;;  %2988 = vmatprep.subr.bf16.mxu1 %v7475_v2  ;;  %v7509_v43 = vld [vmem:[%s10491_s6 + $0x6c0] ss:$8 sps:$4 sm:$0xff]   ;;  %v9124_v2 = vrot.slane %v6495_v10, %v8067_v60 }
 0x525   : > { %3368 = vmatpush1.bf16.msra.mxu0 %v7491_v36 }
 0x526   : > { %3369 = vmatprep.subr.bf16.mxu0 %v7496_v50 }
 0x527   : > { %2989 = vmatpush2.bf16.msra.mxu1 %v7473_v23 }
 0x529   : > { %3370 = vmatpush1.bf16.msra.mxu0 %v7494_v13 }
 0x52a   : > { %3371 = vmatprep.subr.bf16.mxu0 %v7499_v14 }
 0x52d   : > { %3372 = vmatpush1.bf16.msra.mxu0 %v7497_v15 }
 0x52e   : > { %3373 = vmatprep.subr.bf16.mxu0 %v7502_v33 }
 0x531   : > { %3374 = vmatpush2.bf16.msra.mxu0 %v7500_v46 }
 0x532   : > { %3375 = vmatprep.subr.bf16.mxu0 %v7505_v59 }
 0x535   : > { %3376 = vmatpush2.bf16.msra.mxu0 %v7503_v52 }
 0x536   : > { %3377 = vmatprep.subr.bf16.mxu0 %v7508_v53 }
 0x539   : > { %3378 = vmatpush2.bf16.msra.mxu0 %v7506_v54 }
 0x53a   : > { %3379 = vmatprep.subr.bf16.mxu0 %v7511_v4 }
 0x53d   : > { %3380 = vmatpush2.bf16.msra.mxu0 %v7509_v43 }
 0x53e   : > { %3381 = vmatprep.subr.bf16.mxu0 %v7514_v3 }
 0x541   : > { %3382 = vmatpush2.bf16.msra.mxu0 %v7512_v6 }
 0x5ac   : > { %v2593_v23 = vpop.f32.mrf.mxu0 }
 0x5ad   : > { %v2594_v58 = vadd.f32 %v2593_v23, %v9124_v2 }
 0x5ae   : > { %v2595_v24 = vpop.f32.mrf.mxu0 }
 0x5af   : > { %v2596_v25 = vadd.f32 %v2595_v24, %v9121_v48  ;;  %v2672_v34 = vmul.f32 0.2, %v2594_v58 }
 0x5b0   : > { %v2597_v7 = vpop.f32.mrf.mxu0 }
 0x5b1   : > { %v2598_v8 = vadd.f32 %v2597_v7, %v9124_v2  ;;  %v2673_v22 = vmul.f32 0.2, %v2596_v25  ;;  %v2704_v46 = vmax.f32 %v2594_v58, %v2672_v34 }
 0x5b2   : > { %v2599_v9 = vpop.f32.mrf.mxu0 }
 0x5b3   : > { %v2674_v32 = vmul.f32 0.2, %v2598_v8  ;;  %v2600_v49 = vadd.f32 %v2599_v9, %v9121_v48  ;;  %v2705_v14 = vmax.f32 %v2596_v25, %v2673_v22 }
 0x5b4   : > { %v2603_v35 = vpop.f32.mrf.mxu0 }
 0x5b5   : > { %v2675_v36 = vmul.f32 0.2, %v2600_v49  ;;  %v2706_v50 = vmax.f32 %v2598_v8, %v2674_v32  ;;  %v2604_v59 = vadd.f32 %v2603_v35, %v9124_v2 }
 0x5b6   : > { %v2605_v13 = vpop.f32.mrf.mxu0 }
 0x5b7   : > { %v2707_v15 = vmax.f32 %v2600_v49, %v2675_v36  ;;  %v2606_v33 = vadd.f32 %v2605_v13, %v9121_v48  ;;  %v2769_v4 = vpack.c.bf16 %v2706_v50, %v2704_v46  ;;  %v2676_v23 = vmul.f32 0.2, %v2604_v59 }
 0x5b8   : > { %v2607_v52 = vpop.f32.mrf.mxu0 }
 0x5b9   : > { %v2608_v53 = vadd.f32 %v2607_v52, %v9124_v2  ;;  %v2770_v54 = vpack.c.bf16 %v2707_v15, %v2705_v14  ;;  %v2677_v3 = vmul.f32 0.2, %v2606_v33  ;;  %v2708_v32 = vmax.f32 %v2604_v59, %v2676_v23 }
 0x5ba   : > { %v2609_v43 = vpop.f32.mrf.mxu0 }
 0x5bb   : > { %v2678_v6 = vmul.f32 0.2, %v2608_v53  ;;  %v2610_v10 = vadd.f32 %v2609_v43, %v9121_v48  ;;  %2990 = vmatprep.mubr.bf16.mxu1 %v2770_v54  ;;  %v2709_v58 = vmax.f32 %v2606_v33, %v2677_v3 }
 0x5bc   : > { %v2613_v24 = vpop.f32.mrf.mxu0  ;;  %2991 = vmatmul.mubr.bf16.vlgmr.msra.gmra.mxu1 %v2769_v4 }
 0x5bd   : > { %v2679_v25 = vmul.f32 0.2, %v2610_v10  ;;  %v2710_v7 = vmax.f32 %v2608_v53, %v2678_v6  ;;  %v2614_v49 = vadd.f32 %v2613_v24, %v9124_v2 }
 0x5be   : > { %v2615_v8 = vpop.f32.mrf.mxu0 }
 0x5bf   : > { %v2711_v9 = vmax.f32 %v2610_v10, %v2679_v25  ;;  %v2616_v22 = vadd.f32 %v2615_v8, %v9121_v48  ;;  %v2771_v13 = vpack.c.bf16 %v2710_v7, %v2708_v32  ;;  %v2680_v52 = vmul.f32 0.2, %v2614_v49 }
 0x5c0   : > { %v2617_v34 = vpop.f32.mrf.mxu0 }
 0x5c1   : > { %v2618_v35 = vadd.f32 %v2617_v34, %v9124_v2  ;;  %v2772_v36 = vpack.c.bf16 %v2711_v9, %v2709_v58  ;;  %v2681_v14 = vmul.f32 0.2, %v2616_v22  ;;  %v2712_v6 = vmax.f32 %v2614_v49, %v2680_v52 }
 0x5c2   : > { %v2619_v50 = vpop.f32.mrf.mxu0 }
 0x5c3   : > { %v2682_v15 = vmul.f32 0.2, %v2618_v35  ;;  %v2620_v46 = vadd.f32 %v2619_v50, %v9121_v48  ;;  %3000 = vmatprep.mubr.bf16.mxu1 %v2772_v36  ;;  %v2713_v59 = vmax.f32 %v2616_v22, %v2681_v14 }
 0x5c4   : > { %v2623_v53 = vpop.f32.mrf.mxu0  ;;  %3001 = vmatmul.mubr.bf16.gmra.mxu1 %v2771_v13 }
 0x5c5   : > { %v2683_v33 = vmul.f32 0.2, %v2620_v46  ;;  %v2714_v54 = vmax.f32 %v2618_v35, %v2682_v15  ;;  %v2624_v10 = vadd.f32 %v2623_v53, %v9124_v2 }
 0x5c6   : > { %v2625_v4 = vpop.f32.mrf.mxu0 }
 0x5c7   : > { %v2715_v43 = vmax.f32 %v2620_v46, %v2683_v33  ;;  %v2626_v3 = vadd.f32 %v2625_v4, %v9121_v48  ;;  %v2773_v8 = vpack.c.bf16 %v2714_v54, %v2712_v6  ;;  %v2684_v34 = vmul.f32 0.2, %v2624_v10 }
 0x5c8   : > { %v2627_v23 = vpop.f32.mrf.mxu0 }
 0x5c9   : > { %v2628_v24 = vadd.f32 %v2627_v23, %v9124_v2  ;;  %v2774_v25 = vpack.c.bf16 %v2715_v43, %v2713_v59  ;;  %v2685_v58 = vmul.f32 0.2, %v2626_v3  ;;  %v2716_v15 = vmax.f32 %v2624_v10, %v2684_v34 }
 0x5ca   : > { %v2629_v7 = vpop.f32.mrf.mxu0 }
 0x5cb   : > { %v2686_v9 = vmul.f32 0.2, %v2628_v24  ;;  %v2630_v32 = vadd.f32 %v2629_v7, %v9121_v48  ;;  %3010 = vmatprep.mubr.bf16.mxu1 %v2774_v25  ;;  %v2717_v49 = vmax.f32 %v2626_v3, %v2685_v58 }
 0x5cc   : > { %v2633_v35 = vpop.f32.mrf.mxu0  ;;  %3011 = vmatmul.mubr.bf16.gmra.mxu1 %v2773_v8 }
 0x5cd   : > { %v2687_v22 = vmul.f32 0.2, %v2630_v32  ;;  %v2718_v36 = vmax.f32 %v2628_v24, %v2686_v9  ;;  %v2634_v46 = vadd.f32 %v2633_v35, %v9124_v2 }
 0x5ce   : > { %v2635_v50 = vpop.f32.mrf.mxu0 }
 0x5cf   : > { %v2719_v13 = vmax.f32 %v2630_v32, %v2687_v22  ;;  %v2636_v14 = vadd.f32 %v2635_v50, %v9121_v48  ;;  %v2775_v4 = vpack.c.bf16 %v2718_v36, %v2716_v15  ;;  %v2688_v23 = vmul.f32 0.2, %v2634_v46 }
 0x5d0   : > { %v2637_v52 = vpop.f32.mrf.mxu0 }
 0x5d1   : > { %v2638_v53 = vadd.f32 %v2637_v52, %v9124_v2  ;;  %v2776_v33 = vpack.c.bf16 %v2719_v13, %v2717_v49  ;;  %v2689_v59 = vmul.f32 0.2, %v2636_v14  ;;  %v2720_v9 = vmax.f32 %v2634_v46, %v2688_v23 }
 0x5d2   : > { %v2639_v54 = vpop.f32.mrf.mxu0 }
 0x5d3   : > { %v2690_v43 = vmul.f32 0.2, %v2638_v53  ;;  %v2640_v6 = vadd.f32 %v2639_v54, %v9121_v48  ;;  %3020 = vmatprep.mubr.bf16.mxu1 %v2776_v33  ;;  %v2721_v10 = vmax.f32 %v2636_v14, %v2689_v59 }
 0x5d4   : > { %v2643_v24 = vpop.f32.mrf.mxu0  ;;  %3021 = vmatmul.mubr.bf16.gmra.mxu1 %v2775_v4 }
 0x5d5   : > { %v2691_v3 = vmul.f32 0.2, %v2640_v6  ;;  %v2722_v25 = vmax.f32 %v2638_v53, %v2690_v43  ;;  %v2644_v32 = vadd.f32 %v2643_v24, %v9124_v2 }
 0x5d6   : > { %v2645_v7 = vpop.f32.mrf.mxu0 }
 0x5d7   : > { %v2723_v8 = vmax.f32 %v2640_v6, %v2691_v3  ;;  %v2646_v58 = vadd.f32 %v2645_v7, %v9121_v48  ;;  %v2777_v36 = vpack.c.bf16 %v2722_v25, %v2720_v9  ;;  %v2692_v52 = vmul.f32 0.2, %v2644_v32 }
 0x5d8   : > { %v2647_v34 = vpop.f32.mrf.mxu0 }
 0x5d9   : > { %v2648_v35 = vadd.f32 %v2647_v34, %v9124_v2  ;;  %v2778_v22 = vpack.c.bf16 %v2723_v8, %v2721_v10  ;;  %v2693_v49 = vmul.f32 0.2, %v2646_v58  ;;  %v2724_v43 = vmax.f32 %v2644_v32, %v2692_v52 }
 0x5da   : > { %v2649_v50 = vpop.f32.mrf.mxu0 }
 0x5db   : > { %v2694_v13 = vmul.f32 0.2, %v2648_v35  ;;  %v2650_v15 = vadd.f32 %v2649_v50, %v9121_v48  ;;  %3030 = vmatprep.mubr.bf16.mxu1 %v2778_v22  ;;  %v2725_v46 = vmax.f32 %v2646_v58, %v2693_v49 }
 0x5dc   : > { %v2653_v53 = vpop.f32.mrf.mxu0  ;;  %3031 = vmatmul.mubr.bf16.gmra.mxu1 %v2777_v36 }
 0x5dd   : > { %v2695_v14 = vmul.f32 0.2, %v2650_v15  ;;  %v2726_v33 = vmax.f32 %v2648_v35, %v2694_v13  ;;  %v2654_v6 = vadd.f32 %v2653_v53, %v9124_v2 }
 0x5de   : > { %v2655_v54 = vpop.f32.mrf.mxu0 }
 0x5df   : > { %v2727_v4 = vmax.f32 %v2650_v15, %v2695_v14  ;;  %v2656_v59 = vadd.f32 %v2655_v54, %v9121_v48  ;;  %v2779_v25 = vpack.c.bf16 %v2726_v33, %v2724_v43  ;;  %v2696_v34 = vmul.f32 0.2, %v2654_v6 }
 0x5e0   : > { %v2657_v23 = vpop.f32.mrf.mxu0 }
 0x5e1   : > { %v2658_v24 = vadd.f32 %v2657_v23, %v9124_v2  ;;  %v2780_v3 = vpack.c.bf16 %v2727_v4, %v2725_v46  ;;  %v2697_v10 = vmul.f32 0.2, %v2656_v59  ;;  %v2728_v13 = vmax.f32 %v2654_v6, %v2696_v34  ;;  %v7523_v34 = vld [vmem:[%s10491_s6 + $0x684] ss:$8 sps:$4 sm:$0xff]  }
 0x5e2   : > { %v2659_v7 = vpop.f32.mrf.mxu0 }
 0x5e3   : > { %v2698_v8 = vmul.f32 0.2, %v2658_v24  ;;  %v2660_v9 = vadd.f32 %v2659_v7, %v9121_v48  ;;  %3040 = vmatprep.mubr.bf16.mxu1 %v2780_v3  ;;  %v2729_v32 = vmax.f32 %v2656_v59, %v2697_v10 }
 0x5e4   : > { %v2663_v35 = vpop.f32.mrf.mxu0  ;;  %3041 = vmatmul.mubr.bf16.gmra.mxu1 %v2779_v25 }
 0x5e5   : > { %v2699_v58 = vmul.f32 0.2, %v2660_v9  ;;  %v2730_v22 = vmax.f32 %v2658_v24, %v2698_v8  ;;  %v2664_v15 = vadd.f32 %v2663_v35, %v9124_v2  ;;  %v7520_v8 = vld [vmem:[%s10491_s6 + $0x694] ss:$8 sps:$4 sm:$0xff]   ;;  %v7521_v35 = vld [vmem:[%s10491_s6 + $0x680] ss:$8 sps:$4 sm:$0xff]  }
 0x5e6   : > { %v2665_v36 = vpop.f32.mrf.mxu0 }
 0x5e7   : > { %v2731_v50 = vmax.f32 %v2660_v9, %v2699_v58  ;;  %v2666_v49 = vadd.f32 %v2665_v36, %v9121_v48  ;;  %v2781_v33 = vpack.c.bf16 %v2730_v22, %v2728_v13  ;;  %v2700_v23 = vmul.f32 0.2, %v2664_v15  ;;  %v7518_v9 = vld [vmem:[%s10491_s6 + $0x690] ss:$8 sps:$4 sm:$0xff]   ;;  %v7526_v22 = vld [vmem:[%s10491_s6 + $0x774] ss:$8 sps:$4 sm:$0xff]  }
 0x5e8   : > { %v2667_v52 = vpop.f32.mrf.mxu0  ;;  %v7524_v58 = vld [vmem:[%s10491_s6 + $0x770] ss:$8 sps:$4 sm:$0xff]   ;;  %v7529_v36 = vld [vmem:[%s10491_s6 + $0x764] ss:$8 sps:$4 sm:$0xff]   ;;  %3724 = vmatprep.subr.bf16.mxu1 %v7526_v22 }
 0x5e9   : > { %v2668_v53 = vadd.f32 %v2667_v52, %v9124_v2  ;;  %v2782_v14 = vpack.c.bf16 %v2731_v50, %v2729_v32  ;;  %v2701_v46 = vmul.f32 0.2, %v2666_v49  ;;  %v2732_v6 = vmax.f32 %v2664_v15, %v2700_v23  ;;  %v7517_v2 = vld [vmem:[%s10491_s6 + $0x6a4] ss:$8 sps:$4 sm:$0xff]   ;;  %3725 = vmatpush1.bf16.msra.mxu1 %v7524_v58  ;;  %v7527_v32 = vld [vmem:[%s10491_s6 + $0x760] ss:$8 sps:$4 sm:$0xff]  }
 0x5ea   : > { %v2669_v54 = vpop.f32.mrf.mxu0  ;;  %3383 = vmatprep.subr.bf16.mxu0 %v7517_v2  ;;  %3726 = vmatprep.subr.bf16.mxu1 %v7529_v36  ;;  %v7532_v50 = vld [vmem:[%s10491_s6 + $0x754] ss:$8 sps:$4 sm:$0xff]   ;;  %v7535_v13 = vld [vmem:[%s10491_s6 + $0x744] ss:$8 sps:$4 sm:$0xff]   ;;  %v7533_v15 = vld [vmem:[%s10491_s6 + $0x740] ss:$8 sps:$4 sm:$0xff]  }
 0x5eb   : > { %v2702_v4 = vmul.f32 0.2, %v2668_v53  ;;  %v2670_v43 = vadd.f32 %v2669_v54, %v9121_v48  ;;  %3050 = vmatprep.mubr.bf16.mxu1 %v2782_v14  ;;  %v2733_v3 = vmax.f32 %v2666_v49, %v2701_v46  ;;  %v7515_v48 = vld [vmem:[%s10491_s6 + $0x6a0] ss:$8 sps:$4 sm:$0xff]   ;;  %v7530_v49 = vld [vmem:[%s10491_s6 + $0x750] ss:$8 sps:$4 sm:$0xff]  }
 0x5ec   : > { %3051 = vmatmul.mubr.bf16.gmra.mxu1 %v2781_v33  ;;  %3384 = vmatpush2.bf16.msra.mxu0 %v7515_v48  ;;  %v7538_v52 = vld [vmem:[%s10491_s6 + $0x734] ss:$8 sps:$4 sm:$0xff]   ;;  %v7541_v14 = vld [vmem:[%s10491_s6 + $0x724] ss:$8 sps:$4 sm:$0xff]   ;;  %v7539_v33 = vld [vmem:[%s10491_s6 + $0x720] ss:$8 sps:$4 sm:$0xff]  }
 0x5ed   : > { %v2703_v59 = vmul.f32 0.2, %v2670_v43  ;;  %v2734_v24 = vmax.f32 %v2668_v53, %v2702_v4  ;;  %3385 = vmatprep.subr.bf16.mxu0 %v7520_v8  ;;  %3727 = vmatpush1.bf16.msra.mxu1 %v7527_v32  ;;  %v7536_v53 = vld [vmem:[%s10491_s6 + $0x730] ss:$8 sps:$4 sm:$0xff]   ;;  %v7544_v54 = vld [vmem:[%s10491_s6 + $0x714] ss:$8 sps:$4 sm:$0xff]  }
 0x5ee   : > { %3728 = vmatprep.subr.bf16.mxu1 %v7532_v50  ;;  %v7542_v46 = vld [vmem:[%s10491_s6 + $0x710] ss:$8 sps:$4 sm:$0xff]   ;;  %v7547_v4 = vld [vmem:[%s10491_s6 + $0x704] ss:$8 sps:$4 sm:$0xff]   ;;  %v7550_v23 = vld [vmem:[%s10491_s6 + $0x7f4] ss:$8 sps:$4 sm:$0xff]  }
 0x5ef   : > { %v2735_v25 = vmax.f32 %v2670_v43, %v2703_v59  ;;  %v2783_v10 = vpack.c.bf16 %v2734_v24, %v2732_v6  ;;  %v7545_v43 = vld [vmem:[%s10491_s6 + $0x700] ss:$8 sps:$4 sm:$0xff]   ;;  %v7548_v59 = vld [vmem:[%s10491_s6 + $0x7f0] ss:$8 sps:$4 sm:$0xff]   ;;  %v7553_v24 = vld [vmem:[%s10491_s6 + $0x7e4] ss:$8 sps:$4 sm:$0xff]  }
 0x5f0   : > { %3386 = vmatpush2.bf16.msra.mxu0 %v7518_v9  ;;  %v7554_v6 = vld [vmem:[%s10491_s6 + $0x7d0] ss:$8 sps:$4 sm:$0xff]   ;;  %v7562_v2 = vld [vmem:[%s10491_s6 + $0x7b4] ss:$8 sps:$4 sm:$0xff]   ;;  %v6560_v8 = vld [vmem:[%s10492_s7 + $0xa] sm:$0x3] }
 0x5f1   : > { %v2784_v7 = vpack.c.bf16 %v2735_v25, %v2733_v3  ;;  %3387 = vmatprep.subr.bf16.mxu0 %v7523_v34  ;;  %3729 = vmatpush1.bf16.msra.mxu1 %v7530_v49  ;;  %v7551_v3 = vld [vmem:[%s10491_s6 + $0x7e0] ss:$8 sps:$4 sm:$0xff]   ;;  %v7556_v25 = vld [vmem:[%s10491_s6 + $0x7d4] ss:$8 sps:$4 sm:$0xff]   ;;  %v7560_v48 = vld [vmem:[%s10491_s6 + $0x7b0] ss:$8 sps:$4 sm:$0xff]   ;;  %v9258_v9 = vrot.slane %v6560_v8, %v8209_v44  ;;  %v9261_v34 = vrot.slane %v6560_v8, %v8067_v60 }
 0x5f2   : > { %3730 = vmatprep.subr.bf16.mxu1 %v7535_v13 }
 0x5f3   : > { %3060 = vmatprep.mubr.bf16.mxu1 %v2784_v7  ;;  %v7559_v7 = vld [vmem:[%s10491_s6 + $0x7c4] ss:$8 sps:$4 sm:$0xff]  }
 0x5f4   : > { %3061 = vmatmul.mubr.bf16.gmra.mxu1 %v2783_v10  ;;  %3388 = vmatpush2.bf16.msra.mxu0 %v7521_v35  ;;  %v7557_v10 = vld [vmem:[%s10491_s6 + $0x7c0] ss:$8 sps:$4 sm:$0xff]  }
 0x5f5   : > { %3731 = vmatpush1.bf16.msra.mxu1 %v7533_v15 }
 0x5f6   : > { %3732 = vmatprep.subr.bf16.mxu1 %v7538_v52 }
 0x5f9   : > { %3733 = vmatpush1.bf16.msra.mxu1 %v7536_v53 }
 0x5fa   : > { %3734 = vmatprep.subr.bf16.mxu1 %v7541_v14 }
 0x5fd   : > { %3735 = vmatpush1.bf16.msra.mxu1 %v7539_v33 }
 0x5fe   : > { %3736 = vmatprep.subr.bf16.mxu1 %v7544_v54 }
 0x601   : > { %3737 = vmatpush1.bf16.msra.mxu1 %v7542_v46 }
 0x602   : > { %3738 = vmatprep.subr.bf16.mxu1 %v7547_v4 }
 0x605   : > { %3739 = vmatpush1.bf16.msra.mxu1 %v7545_v43 }
 0x606   : > { %3740 = vmatprep.subr.bf16.mxu1 %v7550_v23 }
 0x609   : > { %3741 = vmatpush2.bf16.msra.mxu1 %v7548_v59 }
 0x60a   : > { %3742 = vmatprep.subr.bf16.mxu1 %v7553_v24 }
 0x60d   : > { %3743 = vmatpush2.bf16.msra.mxu1 %v7551_v3 }
 0x60e   : > { %3744 = vmatprep.subr.bf16.mxu1 %v7556_v25 }
 0x611   : > { %3745 = vmatpush2.bf16.msra.mxu1 %v7554_v6 }
 0x612   : > { %3746 = vmatprep.subr.bf16.mxu1 %v7559_v7 }
 0x615   : > { %3747 = vmatpush2.bf16.msra.mxu1 %v7557_v10 }
 0x616   : > { %3748 = vmatprep.subr.bf16.mxu1 %v7562_v2 }
 0x619   : > { %3749 = vmatpush2.bf16.msra.mxu1 %v7560_v48 }
 0x67c   : > { %v2992_v35 = vpop.f32.mrf.mxu1 }
 0x67d   : > { %v2993_v36 = vadd.f32 %v2992_v35, %v9261_v34 }
 0x67e   : > { %v2994_v58 = vpop.f32.mrf.mxu1 }
 0x67f   : > { %v2995_v22 = vadd.f32 %v2994_v58, %v9258_v9  ;;  %v3071_v53 = vmul.f32 0.2, %v2993_v36 }
 0x680   : > { %v2996_v32 = vpop.f32.mrf.mxu1 }
 0x681   : > { %v2997_v50 = vadd.f32 %v2996_v32, %v9261_v34  ;;  %v3072_v13 = vmul.f32 0.2, %v2995_v22  ;;  %v3103_v59 = vmax.f32 %v2993_v36, %v3071_v53 }
 0x682   : > { %v2998_v49 = vpop.f32.mrf.mxu1 }
 0x683   : > { %v3073_v15 = vmul.f32 0.2, %v2997_v50  ;;  %v2999_v52 = vadd.f32 %v2998_v49, %v9258_v9  ;;  %v3104_v4 = vmax.f32 %v2995_v22, %v3072_v13 }
 0x684   : > { %v3002_v14 = vpop.f32.mrf.mxu1 }
 0x685   : > { %v3074_v33 = vmul.f32 0.2, %v2999_v52  ;;  %v3105_v54 = vmax.f32 %v2997_v50, %v3073_v15  ;;  %v3003_v24 = vadd.f32 %v3002_v14, %v9261_v34 }
 0x686   : > { %v3004_v46 = vpop.f32.mrf.mxu1 }
 0x687   : > { %v3106_v43 = vmax.f32 %v2999_v52, %v3074_v33  ;;  %v3005_v23 = vadd.f32 %v3004_v46, %v9258_v9  ;;  %v3168_v7 = vpack.c.bf16 %v3105_v54, %v3103_v59  ;;  %v3075_v35 = vmul.f32 0.2, %v3003_v24 }
 0x688   : > { %v3006_v3 = vpop.f32.mrf.mxu1 }
 0x689   : > { %v3007_v25 = vadd.f32 %v3006_v3, %v9261_v34  ;;  %v3169_v6 = vpack.c.bf16 %v3106_v43, %v3104_v4  ;;  %v3076_v2 = vmul.f32 0.2, %v3005_v23  ;;  %v3107_v15 = vmax.f32 %v3003_v24, %v3075_v35 }
 0x68a   : > { %v3008_v10 = vpop.f32.mrf.mxu1 }
 0x68b   : > { %v3077_v48 = vmul.f32 0.2, %v3007_v25  ;;  %v3009_v8 = vadd.f32 %v3008_v10, %v9258_v9  ;;  %3389 = vmatprep.mubr.bf16.mxu0 %v3169_v6  ;;  %v3108_v36 = vmax.f32 %v3005_v23, %v3076_v2 }
 0x68c   : > { %v3012_v58 = vpop.f32.mrf.mxu1  ;;  %3390 = vmatmul.mubr.bf16.vlgmr.msra.gmra.mxu0 %v3168_v7 }
 0x68d   : > { %v3078_v22 = vmul.f32 0.2, %v3009_v8  ;;  %v3109_v32 = vmax.f32 %v3007_v25, %v3077_v48  ;;  %v3013_v52 = vadd.f32 %v3012_v58, %v9261_v34 }
 0x68e   : > { %v3014_v50 = vpop.f32.mrf.mxu1 }
 0x68f   : > { %v3110_v49 = vmax.f32 %v3009_v8, %v3078_v22  ;;  %v3015_v13 = vadd.f32 %v3014_v50, %v9258_v9  ;;  %v3170_v54 = vpack.c.bf16 %v3109_v32, %v3107_v15  ;;  %v3079_v3 = vmul.f32 0.2, %v3013_v52 }
 0x690   : > { %v3016_v53 = vpop.f32.mrf.mxu1 }
 0x691   : > { %v3017_v14 = vadd.f32 %v3016_v53, %v9261_v34  ;;  %v3171_v33 = vpack.c.bf16 %v3110_v49, %v3108_v36  ;;  %v3080_v4 = vmul.f32 0.2, %v3015_v13  ;;  %v3111_v48 = vmax.f32 %v3013_v52, %v3079_v3 }
 0x692   : > { %v3018_v46 = vpop.f32.mrf.mxu1 }
 0x693   : > { %v3081_v43 = vmul.f32 0.2, %v3017_v14  ;;  %v3019_v59 = vadd.f32 %v3018_v46, %v9258_v9  ;;  %3399 = vmatprep.mubr.bf16.mxu0 %v3171_v33  ;;  %v3112_v24 = vmax.f32 %v3015_v13, %v3080_v4 }
 0x694   : > { %v3022_v25 = vpop.f32.mrf.mxu1  ;;  %3400 = vmatmul.mubr.bf16.gmra.mxu0 %v3170_v54 }
 0x695   : > { %v3082_v23 = vmul.f32 0.2, %v3019_v59  ;;  %v3113_v6 = vmax.f32 %v3017_v14, %v3081_v43  ;;  %v3023_v8 = vadd.f32 %v3022_v25, %v9261_v34 }
 0x696   : > { %v3024_v7 = vpop.f32.mrf.mxu1 }
 0x697   : > { %v3114_v10 = vmax.f32 %v3019_v59, %v3082_v23  ;;  %v3025_v2 = vadd.f32 %v3024_v7, %v9258_v9  ;;  %v3172_v32 = vpack.c.bf16 %v3113_v6, %v3111_v48  ;;  %v3083_v53 = vmul.f32 0.2, %v3023_v8 }
 0x698   : > { %v3026_v35 = vpop.f32.mrf.mxu1 }
 0x699   : > { %v3027_v58 = vadd.f32 %v3026_v35, %v9261_v34  ;;  %v3173_v22 = vpack.c.bf16 %v3114_v10, %v3112_v24  ;;  %v3084_v36 = vmul.f32 0.2, %v3025_v2  ;;  %v3115_v43 = vmax.f32 %v3023_v8, %v3083_v53 }
 0x69a   : > { %v3028_v50 = vpop.f32.mrf.mxu1 }
 0x69b   : > { %v3085_v49 = vmul.f32 0.2, %v3027_v58  ;;  %v3029_v15 = vadd.f32 %v3028_v50, %v9258_v9  ;;  %3409 = vmatprep.mubr.bf16.mxu0 %v3173_v22  ;;  %v3116_v52 = vmax.f32 %v3025_v2, %v3084_v36 }
 0x69c   : > { %v3032_v14 = vpop.f32.mrf.mxu1  ;;  %3410 = vmatmul.mubr.bf16.gmra.mxu0 %v3172_v32 }
 0x69d   : > { %v3086_v13 = vmul.f32 0.2, %v3029_v15  ;;  %v3117_v33 = vmax.f32 %v3027_v58, %v3085_v49  ;;  %v3033_v59 = vadd.f32 %v3032_v14, %v9261_v34 }
 0x69e   : > { %v3034_v54 = vpop.f32.mrf.mxu1 }
 0x69f   : > { %v3118_v46 = vmax.f32 %v3029_v15, %v3086_v13  ;;  %v3035_v4 = vadd.f32 %v3034_v54, %v9258_v9  ;;  %v3174_v6 = vpack.c.bf16 %v3117_v33, %v3115_v43  ;;  %v3087_v35 = vmul.f32 0.2, %v3033_v59 }
 0x6a0   : > { %v3036_v3 = vpop.f32.mrf.mxu1 }
 0x6a1   : > { %v3037_v25 = vadd.f32 %v3036_v3, %v9261_v34  ;;  %v3175_v23 = vpack.c.bf16 %v3118_v46, %v3116_v52  ;;  %v3088_v24 = vmul.f32 0.2, %v3035_v4  ;;  %v3119_v49 = vmax.f32 %v3033_v59, %v3087_v35 }
 0x6a2   : > { %v3038_v7 = vpop.f32.mrf.mxu1 }
 0x6a3   : > { %v3089_v10 = vmul.f32 0.2, %v3037_v25  ;;  %v3039_v48 = vadd.f32 %v3038_v7, %v9258_v9  ;;  %3419 = vmatprep.mubr.bf16.mxu0 %v3175_v23  ;;  %v3120_v8 = vmax.f32 %v3035_v4, %v3088_v24 }
 0x6a4   : > { %v3042_v58 = vpop.f32.mrf.mxu1  ;;  %3420 = vmatmul.mubr.bf16.gmra.mxu0 %v3174_v6 }
 0x6a5   : > { %v3090_v2 = vmul.f32 0.2, %v3039_v48  ;;  %v3121_v22 = vmax.f32 %v3037_v25, %v3089_v10  ;;  %v3043_v15 = vadd.f32 %v3042_v58, %v9261_v34 }
 0x6a6   : > { %v3044_v32 = vpop.f32.mrf.mxu1 }
 0x6a7   : > { %v3122_v50 = vmax.f32 %v3039_v48, %v3090_v2  ;;  %v3045_v36 = vadd.f32 %v3044_v32, %v9258_v9  ;;  %v3176_v33 = vpack.c.bf16 %v3121_v22, %v3119_v49  ;;  %v3091_v3 = vmul.f32 0.2, %v3043_v15 }
 0x6a8   : > { %v3046_v53 = vpop.f32.mrf.mxu1 }
 0x6a9   : > { %v3047_v14 = vadd.f32 %v3046_v53, %v9261_v34  ;;  %v3177_v13 = vpack.c.bf16 %v3122_v50, %v3120_v8  ;;  %v3092_v52 = vmul.f32 0.2, %v3045_v36  ;;  %v3123_v10 = vmax.f32 %v3043_v15, %v3091_v3 }
 0x6aa   : > { %v3048_v54 = vpop.f32.mrf.mxu1 }
 0x6ab   : > { %v3093_v46 = vmul.f32 0.2, %v3047_v14  ;;  %v3049_v43 = vadd.f32 %v3048_v54, %v9258_v9  ;;  %3429 = vmatprep.mubr.bf16.mxu0 %v3177_v13  ;;  %v3124_v59 = vmax.f32 %v3045_v36, %v3092_v52 }
 0x6ac   : > { %v3052_v25 = vpop.f32.mrf.mxu1  ;;  %3430 = vmatmul.mubr.bf16.gmra.mxu0 %v3176_v33 }
 0x6ad   : > { %v3094_v4 = vmul.f32 0.2, %v3049_v43  ;;  %v3125_v23 = vmax.f32 %v3047_v14, %v3093_v46  ;;  %v3053_v48 = vadd.f32 %v3052_v25, %v9261_v34 }
 0x6ae   : > { %v3054_v6 = vpop.f32.mrf.mxu1 }
 0x6af   : > { %v3126_v7 = vmax.f32 %v3049_v43, %v3094_v4  ;;  %v3055_v24 = vadd.f32 %v3054_v6, %v9258_v9  ;;  %v3178_v22 = vpack.c.bf16 %v3125_v23, %v3123_v10  ;;  %v3095_v53 = vmul.f32 0.2, %v3053_v48 }
 0x6b0   : > { %v3056_v35 = vpop.f32.mrf.mxu1 }
 0x6b1   : > { %v3057_v58 = vadd.f32 %v3056_v35, %v9261_v34  ;;  %v3179_v2 = vpack.c.bf16 %v3126_v7, %v3124_v59  ;;  %v3096_v8 = vmul.f32 0.2, %v3055_v24  ;;  %v3127_v46 = vmax.f32 %v3053_v48, %v3095_v53  ;;  %v7571_v53 = vld [vmem:[%s10491_s6 + $0x784] ss:$8 sps:$4 sm:$0xff]  }
 0x6b2   : > { %v3058_v32 = vpop.f32.mrf.mxu1 }
 0x6b3   : > { %v3097_v50 = vmul.f32 0.2, %v3057_v58  ;;  %v3059_v49 = vadd.f32 %v3058_v32, %v9258_v9  ;;  %3439 = vmatprep.mubr.bf16.mxu0 %v3179_v2  ;;  %v3128_v15 = vmax.f32 %v3055_v24, %v3096_v8 }
 0x6b4   : > { %v3062_v14 = vpop.f32.mrf.mxu1  ;;  %3440 = vmatmul.mubr.bf16.gmra.mxu0 %v3178_v22 }
 0x6b5   : > { %v3098_v36 = vmul.f32 0.2, %v3059_v49  ;;  %v3129_v13 = vmax.f32 %v3057_v58, %v3097_v50  ;;  %v3063_v43 = vadd.f32 %v3062_v14, %v9261_v34  ;;  %v7568_v50 = vld [vmem:[%s10491_s6 + $0x794] ss:$8 sps:$4 sm:$0xff]   ;;  %v7569_v14 = vld [vmem:[%s10491_s6 + $0x780] ss:$8 sps:$4 sm:$0xff]  }
 0x6b6   : > { %v3064_v33 = vpop.f32.mrf.mxu1 }
 0x6b7   : > { %v3130_v54 = vmax.f32 %v3059_v49, %v3098_v36  ;;  %v3065_v52 = vadd.f32 %v3064_v33, %v9258_v9  ;;  %v3180_v23 = vpack.c.bf16 %v3129_v13, %v3127_v46  ;;  %v3099_v35 = vmul.f32 0.2, %v3063_v43  ;;  %v7566_v49 = vld [vmem:[%s10491_s6 + $0x790] ss:$8 sps:$4 sm:$0xff]   ;;  %v7574_v13 = vld [vmem:[%s10491_s6 + $0x874] ss:$8 sps:$4 sm:$0xff]  }
 0x6b8   : > { %v3066_v3 = vpop.f32.mrf.mxu1  ;;  %v7572_v36 = vld [vmem:[%s10491_s6 + $0x870] ss:$8 sps:$4 sm:$0xff]   ;;  %v7577_v33 = vld [vmem:[%s10491_s6 + $0x864] ss:$8 sps:$4 sm:$0xff]   ;;  %4123 = vmatprep.subr.bf16.mxu0 %v7574_v13 }
 0x6b9   : > { %v3067_v25 = vadd.f32 %v3066_v3, %v9261_v34  ;;  %v3181_v4 = vpack.c.bf16 %v3130_v54, %v3128_v15  ;;  %v3100_v59 = vmul.f32 0.2, %v3065_v52  ;;  %v3131_v48 = vmax.f32 %v3063_v43, %v3099_v35  ;;  %v7565_v34 = vld [vmem:[%s10491_s6 + $0x7a4] ss:$8 sps:$4 sm:$0xff]   ;;  %4124 = vmatpush1.bf16.msra.mxu0 %v7572_v36  ;;  %v7575_v15 = vld [vmem:[%s10491_s6 + $0x860] ss:$8 sps:$4 sm:$0xff]  }
 0x6ba   : > { %v3068_v6 = vpop.f32.mrf.mxu1  ;;  %3750 = vmatprep.subr.bf16.mxu1 %v7565_v34  ;;  %4125 = vmatprep.subr.bf16.mxu0 %v7577_v33  ;;  %v7580_v54 = vld [vmem:[%s10491_s6 + $0x854] ss:$8 sps:$4 sm:$0xff]   ;;  %v7583_v46 = vld [vmem:[%s10491_s6 + $0x844] ss:$8 sps:$4 sm:$0xff]   ;;  %v7581_v43 = vld [vmem:[%s10491_s6 + $0x840] ss:$8 sps:$4 sm:$0xff]  }
 0x6bb   : > { %v3101_v7 = vmul.f32 0.2, %v3067_v25  ;;  %v3069_v10 = vadd.f32 %v3068_v6, %v9258_v9  ;;  %3449 = vmatprep.mubr.bf16.mxu0 %v3181_v4  ;;  %v3132_v2 = vmax.f32 %v3065_v52, %v3100_v59  ;;  %v7563_v9 = vld [vmem:[%s10491_s6 + $0x7a0] ss:$8 sps:$4 sm:$0xff]   ;;  %v7578_v52 = vld [vmem:[%s10491_s6 + $0x850] ss:$8 sps:$4 sm:$0xff]  }
 0x6bc   : > { %3450 = vmatmul.mubr.bf16.gmra.mxu0 %v3180_v23  ;;  %3751 = vmatpush2.bf16.msra.mxu1 %v7563_v9  ;;  %v7586_v3 = vld [vmem:[%s10491_s6 + $0x834] ss:$8 sps:$4 sm:$0xff]   ;;  %v7589_v4 = vld [vmem:[%s10491_s6 + $0x824] ss:$8 sps:$4 sm:$0xff]   ;;  %v7587_v23 = vld [vmem:[%s10491_s6 + $0x820] ss:$8 sps:$4 sm:$0xff]  }
 0x6bd   : > { %v3102_v24 = vmul.f32 0.2, %v3069_v10  ;;  %v3133_v58 = vmax.f32 %v3067_v25, %v3101_v7  ;;  %3752 = vmatprep.subr.bf16.mxu1 %v7568_v50  ;;  %4126 = vmatpush1.bf16.msra.mxu0 %v7575_v15  ;;  %v7584_v25 = vld [vmem:[%s10491_s6 + $0x830] ss:$8 sps:$4 sm:$0xff]   ;;  %v7592_v6 = vld [vmem:[%s10491_s6 + $0x814] ss:$8 sps:$4 sm:$0xff]  }
 0x6be   : > { %4127 = vmatprep.subr.bf16.mxu0 %v7580_v54  ;;  %v7590_v59 = vld [vmem:[%s10491_s6 + $0x810] ss:$8 sps:$4 sm:$0xff]   ;;  %v7595_v7 = vld [vmem:[%s10491_s6 + $0x804] ss:$8 sps:$4 sm:$0xff]   ;;  %v7598_v35 = vld [vmem:[%s10491_s6 + $0x8f4] ss:$8 sps:$4 sm:$0xff]  }
 0x6bf   : > { %v3134_v22 = vmax.f32 %v3069_v10, %v3102_v24  ;;  %v3182_v8 = vpack.c.bf16 %v3133_v58, %v3131_v48  ;;  %v7593_v10 = vld [vmem:[%s10491_s6 + $0x800] ss:$8 sps:$4 sm:$0xff]   ;;  %v7596_v24 = vld [vmem:[%s10491_s6 + $0x8f0] ss:$8 sps:$4 sm:$0xff]   ;;  %v7601_v58 = vld [vmem:[%s10491_s6 + $0x8e4] ss:$8 sps:$4 sm:$0xff]  }
 0x6c0   : > { %3753 = vmatpush2.bf16.msra.mxu1 %v7566_v49  ;;  %v7602_v48 = vld [vmem:[%s10491_s6 + $0x8d0] ss:$8 sps:$4 sm:$0xff]   ;;  %v7610_v34 = vld [vmem:[%s10491_s6 + $0x8b4] ss:$8 sps:$4 sm:$0xff]   ;;  %v6625_v50 = vld [vmem:[%s10492_s7 + $0xc] sm:$0x3] }
 0x6c1   : > { %v3183_v32 = vpack.c.bf16 %v3134_v22, %v3132_v2  ;;  %3754 = vmatprep.subr.bf16.mxu1 %v7571_v53  ;;  %4128 = vmatpush1.bf16.msra.mxu0 %v7578_v52  ;;  %v7599_v2 = vld [vmem:[%s10491_s6 + $0x8e0] ss:$8 sps:$4 sm:$0xff]   ;;  %v7604_v22 = vld [vmem:[%s10491_s6 + $0x8d4] ss:$8 sps:$4 sm:$0xff]   ;;  %v7608_v9 = vld [vmem:[%s10491_s6 + $0x8b0] ss:$8 sps:$4 sm:$0xff]   ;;  %v9395_v53 = vrot.slane %v6625_v50, %v8209_v44 }
 0x6c2   : > { %4129 = vmatprep.subr.bf16.mxu0 %v7583_v46 }
 0x6c3   : > { %3459 = vmatprep.mubr.bf16.mxu0 %v3183_v32  ;;  %v7607_v32 = vld [vmem:[%s10491_s6 + $0x8c4] ss:$8 sps:$4 sm:$0xff]  }
 0x6c4   : > { %3460 = vmatmul.mubr.bf16.gmra.mxu0 %v3182_v8  ;;  %3755 = vmatpush2.bf16.msra.mxu1 %v7569_v14  ;;  %v7605_v8 = vld [vmem:[%s10491_s6 + $0x8c0] ss:$8 sps:$4 sm:$0xff]   ;;  %v9398_v14 = vrot.slane %v6625_v50, %v8067_v60 }
 0x6c5   : > { %4130 = vmatpush1.bf16.msra.mxu0 %v7581_v43 }
 0x6c6   : > { %4131 = vmatprep.subr.bf16.mxu0 %v7586_v3 }
 0x6c9   : > { %4132 = vmatpush1.bf16.msra.mxu0 %v7584_v25 }
 0x6ca   : > { %4133 = vmatprep.subr.bf16.mxu0 %v7589_v4 }
 0x6cd   : > { %4134 = vmatpush1.bf16.msra.mxu0 %v7587_v23 }
 0x6ce   : > { %4135 = vmatprep.subr.bf16.mxu0 %v7592_v6 }
 0x6d1   : > { %4136 = vmatpush1.bf16.msra.mxu0 %v7590_v59 }
 0x6d2   : > { %4137 = vmatprep.subr.bf16.mxu0 %v7595_v7 }
 0x6d5   : > { %4138 = vmatpush1.bf16.msra.mxu0 %v7593_v10 }
 0x6d6   : > { %4139 = vmatprep.subr.bf16.mxu0 %v7598_v35 }
 0x6d9   : > { %4140 = vmatpush2.bf16.msra.mxu0 %v7596_v24 }
 0x6da   : > { %4141 = vmatprep.subr.bf16.mxu0 %v7601_v58 }
 0x6dd   : > { %4142 = vmatpush2.bf16.msra.mxu0 %v7599_v2 }
 0x6de   : > { %4143 = vmatprep.subr.bf16.mxu0 %v7604_v22 }
 0x6e1   : > { %4144 = vmatpush2.bf16.msra.mxu0 %v7602_v48 }
 0x6e2   : > { %4145 = vmatprep.subr.bf16.mxu0 %v7607_v32 }
 0x6e5   : > { %4146 = vmatpush2.bf16.msra.mxu0 %v7605_v8 }
 0x6e6   : > { %4147 = vmatprep.subr.bf16.mxu0 %v7610_v34 }
 0x6e9   : > { %4148 = vmatpush2.bf16.msra.mxu0 %v7608_v9 }
 0x74c   : > { %v3391_v49 = vpop.f32.mrf.mxu0 }
 0x74d   : > { %v3392_v54 = vadd.f32 %v3391_v49, %v9398_v14 }
 0x74e   : > { %v3393_v36 = vpop.f32.mrf.mxu0 }
 0x74f   : > { %v3394_v33 = vadd.f32 %v3393_v36, %v9395_v53  ;;  %v9414_v23 = vadd.f32 %v3392_v54, %v8875_v17 }
 0x750   : > { %v3395_v13 = vpop.f32.mrf.mxu0 }
 0x751   : > { %v3396_v15 = vadd.f32 %v3395_v13, %v9398_v14  ;;  %v9408_v25 = vadd.f32 %v3394_v33, %v8869_v19 }
 0x752   : > { %v3397_v52 = vpop.f32.mrf.mxu0 }
 0x753   : > { %v3398_v46 = vadd.f32 %v3397_v52, %v9395_v53  ;;  %v9405_v43 = vadd.f32 %v3396_v15, %v8866_v62 }
 0x754   : > { %v3401_v3 = vpop.f32.mrf.mxu0 }
 0x755   : > { %v9411_v4 = vadd.f32 %v3398_v46, %v8872_v47  ;;  %v3535_v7 = vpack.c.bf16 %v9405_v43, %v9414_v23  ;;  %v3402_v19 = vadd.f32 %v3401_v3, %v9398_v14 }
 0x756   : > { %v3403_v6 = vpop.f32.mrf.mxu0 }
 0x757   : > { %v3536_v59 = vpack.c.bf16 %v9411_v4, %v9408_v25  ;;  %v3404_v62 = vadd.f32 %v3403_v6, %v9395_v53  ;;  %v9434_v48 = vadd.f32 %v3402_v19, %v8895_v12 }
 0x758   : > { %v3405_v10 = vpop.f32.mrf.mxu0 }
 0x759   : > { %v3406_v35 = vadd.f32 %v3405_v10, %v9398_v14  ;;  %3756 = vmatprep.mubr.bf16.mxu1 %v3536_v59  ;;  %v9428_v2 = vadd.f32 %v3404_v62, %v8889_v16 }
 0x75a   : > { %v3407_v47 = vpop.f32.mrf.mxu0  ;;  %3757 = vmatmul.mubr.bf16.vlgmr.msra.gmra.mxu1 %v3535_v7 }
 0x75b   : > { %v3408_v17 = vadd.f32 %v3407_v47, %v9395_v53  ;;  %v9425_v24 = vadd.f32 %v3406_v35, %v8886_v18 }
 0x75c   : > { %v3411_v58 = vpop.f32.mrf.mxu0 }
 0x75d   : > { %v9431_v22 = vadd.f32 %v3408_v17, %v8892_v28  ;;  %v3537_v34 = vpack.c.bf16 %v9425_v24, %v9434_v48  ;;  %v3412_v16 = vadd.f32 %v3411_v58, %v9398_v14 }
 0x75e   : > { %v3413_v32 = vpop.f32.mrf.mxu0 }
 0x75f   : > { %v3538_v8 = vpack.c.bf16 %v9431_v22, %v9428_v2  ;;  %v3414_v18 = vadd.f32 %v3413_v32, %v9395_v53  ;;  %v9454_v15 = vadd.f32 %v3412_v16, %v8915_v51 }
 0x760   : > { %v3415_v9 = vpop.f32.mrf.mxu0 }
 0x761   : > { %v3416_v50 = vadd.f32 %v3415_v9, %v9398_v14  ;;  %3766 = vmatprep.mubr.bf16.mxu1 %v3538_v8  ;;  %v9448_v13 = vadd.f32 %v3414_v18, %v8909_v40 }
 0x762   : > { %v3417_v28 = vpop.f32.mrf.mxu0  ;;  %3767 = vmatmul.mubr.bf16.gmra.mxu1 %v3537_v34 }
 0x763   : > { %v3418_v12 = vadd.f32 %v3417_v28, %v9395_v53  ;;  %v9445_v49 = vadd.f32 %v3416_v50, %v8906_v31 }
 0x764   : > { %v3421_v36 = vpop.f32.mrf.mxu0 }
 0x765   : > { %v9451_v33 = vadd.f32 %v3418_v12, %v8912_v55  ;;  %v3539_v46 = vpack.c.bf16 %v9445_v49, %v9454_v15  ;;  %v3422_v40 = vadd.f32 %v3421_v36, %v9398_v14 }
 0x766   : > { %v3423_v54 = vpop.f32.mrf.mxu0 }
 0x767   : > { %v3540_v52 = vpack.c.bf16 %v9451_v33, %v9448_v13  ;;  %v3424_v31 = vadd.f32 %v3423_v54, %v9395_v53  ;;  %v9474_v35 = vadd.f32 %v3422_v40, %v8935_v37 }
 0x768   : > { %v3425_v3 = vpop.f32.mrf.mxu0 }
 0x769   : > { %v3426_v6 = vadd.f32 %v3425_v3, %v9398_v14  ;;  %3776 = vmatprep.mubr.bf16.mxu1 %v3540_v52  ;;  %v9468_v10 = vadd.f32 %v3424_v31, %v8929_v42 }
 0x76a   : > { %v3427_v55 = vpop.f32.mrf.mxu0  ;;  %3777 = vmatmul.mubr.bf16.gmra.mxu1 %v3539_v46 }
 0x76b   : > { %v3428_v51 = vadd.f32 %v3427_v55, %v9395_v53  ;;  %v9465_v59 = vadd.f32 %v3426_v6, %v8926_v0 }
 0x76c   : > { %v3431_v7 = vpop.f32.mrf.mxu0 }
 0x76d   : > { %v9471_v62 = vadd.f32 %v3428_v51, %v8932_v45  ;;  %v3541_v17 = vpack.c.bf16 %v9465_v59, %v9474_v35  ;;  %v3432_v42 = vadd.f32 %v3431_v7, %v9398_v14 }
 0x76e   : > { %v3433_v19 = vpop.f32.mrf.mxu0 }
 0x76f   : > { %v3542_v47 = vpack.c.bf16 %v9471_v62, %v9468_v10  ;;  %v3434_v0 = vadd.f32 %v3433_v19, %v9395_v53  ;;  %v9494_v50 = vadd.f32 %v3432_v42, %v8955_v39 }
 0x770   : > { %v3435_v58 = vpop.f32.mrf.mxu0 }
 0x771   : > { %v3436_v32 = vadd.f32 %v3435_v58, %v9398_v14  ;;  %3786 = vmatprep.mubr.bf16.mxu1 %v3542_v47  ;;  %v9488_v9 = vadd.f32 %v3434_v0, %v8949_v27 }
 0x772   : > { %v3437_v45 = vpop.f32.mrf.mxu0  ;;  %3787 = vmatmul.mubr.bf16.gmra.mxu1 %v3541_v17 }
 0x773   : > { %v3438_v37 = vadd.f32 %v3437_v45, %v9395_v53  ;;  %v9485_v8 = vadd.f32 %v3436_v32, %v8946_v26 }
 0x774   : > { %v3441_v34 = vpop.f32.mrf.mxu0 }
 0x775   : > { %v9491_v18 = vadd.f32 %v3438_v37, %v8952_v57  ;;  %v3543_v12 = vpack.c.bf16 %v9485_v8, %v9494_v50  ;;  %v3442_v27 = vadd.f32 %v3441_v34, %v9398_v14 }
 0x776   : > { %v3443_v16 = vpop.f32.mrf.mxu0 }
 0x777   : > { %v3544_v28 = vpack.c.bf16 %v9491_v18, %v9488_v9  ;;  %v3444_v26 = vadd.f32 %v3443_v16, %v9395_v53  ;;  %v9514_v6 = vadd.f32 %v3442_v27, %v8975_v41  ;;  %v7617_v27 = vld [vmem:[%s10491_s6 + $0x880] ss:$8 sps:$4 sm:$0xff]  }
 0x778   : > { %v3445_v36 = vpop.f32.mrf.mxu0 }
 0x779   : > { %v3446_v54 = vadd.f32 %v3445_v36, %v9398_v14  ;;  %3796 = vmatprep.mubr.bf16.mxu1 %v3544_v28  ;;  %v9508_v3 = vadd.f32 %v3444_v26, %v8969_v11 }
 0x77a   : > { %v3447_v57 = vpop.f32.mrf.mxu0  ;;  %3797 = vmatmul.mubr.bf16.gmra.mxu1 %v3543_v12 }
 0x77b   : > { %v3448_v39 = vadd.f32 %v3447_v57, %v9395_v53  ;;  %v9505_v52 = vadd.f32 %v3446_v54, %v8966_v1  ;;  %v7620_v57 = vld [vmem:[%s10491_s6 + $0x970] ss:$8 sps:$4 sm:$0xff]  }
 0x77c   : > { %v3451_v46 = vpop.f32.mrf.mxu0 }
 0x77d   : > { %v9511_v31 = vadd.f32 %v3448_v39, %v8972_v5  ;;  %v3545_v51 = vpack.c.bf16 %v9505_v52, %v9514_v6  ;;  %v3452_v11 = vadd.f32 %v3451_v46, %v9398_v14  ;;  %v7622_v39 = vld [vmem:[%s10491_s6 + $0x974] ss:$8 sps:$4 sm:$0xff]   ;;  %v7625_v46 = vld [vmem:[%s10491_s6 + $0x964] ss:$8 sps:$4 sm:$0xff]  }
 0x77e   : > { %v3453_v40 = vpop.f32.mrf.mxu0  ;;  %4522 = vmatprep.subr.bf16.mxu1 %v7622_v39 }
 0x77f   : > { %v3546_v55 = vpack.c.bf16 %v9511_v31, %v9508_v3  ;;  %v3454_v1 = vadd.f32 %v3453_v40, %v9395_v53  ;;  %v9534_v32 = vadd.f32 %v3452_v11, %v8995_v29  ;;  %4523 = vmatpush1.bf16.msra.mxu1 %v7620_v57  ;;  %v7623_v40 = vld [vmem:[%s10491_s6 + $0x960] ss:$8 sps:$4 sm:$0xff]   ;;  %v7632_v11 = vld [vmem:[%s10491_s6 + $0x930] ss:$8 sps:$4 sm:$0xff]  }
 0x780   : > { %v3455_v7 = vpop.f32.mrf.mxu0  ;;  %4524 = vmatprep.subr.bf16.mxu1 %v7625_v46 }
 0x781   : > { %v3456_v19 = vadd.f32 %v3455_v7, %v9398_v14  ;;  %3806 = vmatprep.mubr.bf16.mxu1 %v3546_v55  ;;  %v9528_v58 = vadd.f32 %v3454_v1, %v8989_v20  ;;  %v7628_v55 = vld [vmem:[%s10491_s6 + $0x954] ss:$8 sps:$4 sm:$0xff]   ;;  %v7631_v7 = vld [vmem:[%s10491_s6 + $0x944] ss:$8 sps:$4 sm:$0xff]   ;;  %v7629_v1 = vld [vmem:[%s10491_s6 + $0x940] ss:$8 sps:$4 sm:$0xff]  }
 0x782   : > { %v3457_v5 = vpop.f32.mrf.mxu0  ;;  %3807 = vmatmul.mubr.bf16.gmra.mxu1 %v3545_v51  ;;  %v7626_v51 = vld [vmem:[%s10491_s6 + $0x950] ss:$8 sps:$4 sm:$0xff]  }
 0x783   : > { %v3458_v41 = vadd.f32 %v3457_v5, %v9395_v53  ;;  %v9525_v47 = vadd.f32 %v3456_v19, %v8986_v56  ;;  %4525 = vmatpush1.bf16.msra.mxu1 %v7623_v40  ;;  %v7634_v19 = vld [vmem:[%s10491_s6 + $0x934] ss:$8 sps:$4 sm:$0xff]   ;;  %v7637_v5 = vld [vmem:[%s10491_s6 + $0x924] ss:$8 sps:$4 sm:$0xff]  }
 0x784   : > { %v3461_v17 = vpop.f32.mrf.mxu0  ;;  %4526 = vmatprep.subr.bf16.mxu1 %v7628_v55 }
 0x785   : > { %v9531_v0 = vadd.f32 %v3458_v41, %v8992_v30  ;;  %v3547_v37 = vpack.c.bf16 %v9525_v47, %v9534_v32  ;;  %v3462_v20 = vadd.f32 %v3461_v17, %v9398_v14  ;;  %v7635_v41 = vld [vmem:[%s10491_s6 + $0x920] ss:$8 sps:$4 sm:$0xff]   ;;  %v7640_v17 = vld [vmem:[%s10491_s6 + $0x914] ss:$8 sps:$4 sm:$0xff]  }
 0x786   : > { %v3463_v42 = vpop.f32.mrf.mxu0 }
 0x787   : > { %v3548_v45 = vpack.c.bf16 %v9531_v0, %v9528_v58  ;;  %v3464_v56 = vadd.f32 %v3463_v42, %v9395_v53  ;;  %v9554_v26 = vadd.f32 %v3462_v20, %v9015_v21  ;;  %v7614_v21 = vld [vmem:[%s10491_s6 + $0x890] ss:$8 sps:$4 sm:$0xff]   ;;  %4527 = vmatpush1.bf16.msra.mxu1 %v7626_v51  ;;  %v7647_v20 = vld [vmem:[%s10491_s6 + $0x9e0] ss:$8 sps:$4 sm:$0xff]  }
 0x788   : > { %v3465_v34 = vpop.f32.mrf.mxu0  ;;  %4528 = vmatprep.subr.bf16.mxu1 %v7631_v7  ;;  %v7638_v42 = vld [vmem:[%s10491_s6 + $0x910] ss:$8 sps:$4 sm:$0xff]  }
 0x789   : > { %v3466_v16 = vadd.f32 %v3465_v34, %v9398_v14  ;;  %3816 = vmatprep.mubr.bf16.mxu1 %v3548_v45  ;;  %v9548_v12 = vadd.f32 %v3464_v56, %v9009_v63  ;;  %v7611_v63 = vld [vmem:[%s10491_s6 + $0x8a0] ss:$8 sps:$4 sm:$0xff]   ;;  %v7643_v45 = vld [vmem:[%s10491_s6 + $0x904] ss:$8 sps:$4 sm:$0xff]   ;;  %v7646_v34 = vld [vmem:[%s10491_s6 + $0x9f4] ss:$8 sps:$4 sm:$0xff]  }
 0x78a   : > { %v3467_v30 = vpop.f32.mrf.mxu0  ;;  %3817 = vmatmul.mubr.bf16.gmra.mxu1 %v3547_v37  ;;  %v7641_v37 = vld [vmem:[%s10491_s6 + $0x900] ss:$8 sps:$4 sm:$0xff]   ;;  %v7644_v56 = vld [vmem:[%s10491_s6 + $0x9f0] ss:$8 sps:$4 sm:$0xff]  }
 0x78b   : > { %v3468_v29 = vadd.f32 %v3467_v30, %v9395_v53  ;;  %v9545_v28 = vadd.f32 %v3466_v16, %v9006_v61  ;;  %v7613_v61 = vld [vmem:[%s10491_s6 + $0x8a4] ss:$8 sps:$4 sm:$0xff]   ;;  %4529 = vmatpush1.bf16.msra.mxu1 %v7629_v1  ;;  %v7652_v30 = vld [vmem:[%s10491_s6 + $0x9d4] ss:$8 sps:$4 sm:$0xff]  }
 0x78c   : > { %4149 = vmatprep.subr.bf16.mxu0 %v7613_v61  ;;  %v7619_v53 = vld [vmem:[%s10491_s6 + $0x884] ss:$8 sps:$4 sm:$0xff]   ;;  %4530 = vmatprep.subr.bf16.mxu1 %v7634_v19  ;;  %v7658_v61 = vld [vmem:[%s10491_s6 + $0x9b4] ss:$8 sps:$4 sm:$0xff]  }
 0x78d   : > { %v9551_v36 = vadd.f32 %v3468_v29, %v9012_v38  ;;  %v3549_v14 = vpack.c.bf16 %v9545_v28, %v9554_v26  ;;  %4150 = vmatpush2.bf16.msra.mxu0 %v7611_v63  ;;  %v7616_v38 = vld [vmem:[%s10491_s6 + $0x894] ss:$8 sps:$4 sm:$0xff]   ;;  %v7649_v16 = vld [vmem:[%s10491_s6 + $0x9e4] ss:$8 sps:$4 sm:$0xff]   ;;  %v7650_v29 = vld [vmem:[%s10491_s6 + $0x9d0] ss:$8 sps:$4 sm:$0xff]  }
 0x78e   : > { %4151 = vmatprep.subr.bf16.mxu0 %v7616_v38  ;;  %v7656_v63 = vld [vmem:[%s10491_s6 + $0x9b0] ss:$8 sps:$4 sm:$0xff]   ;;  %v6690_v38 = vld [vmem:[%s10492_s7 + $0xe] sm:$0x3] }
 0x78f   : > { %v3550_v54 = vpack.c.bf16 %v9551_v36, %v9548_v12  ;;  %4531 = vmatpush1.bf16.msra.mxu1 %v7632_v11 }
 0x790   : > { %4532 = vmatprep.subr.bf16.mxu1 %v7637_v5 }
 0x791   : > { %3826 = vmatprep.mubr.bf16.mxu1 %v3550_v54  ;;  %4152 = vmatpush2.bf16.msra.mxu0 %v7614_v21  ;;  %v7655_v54 = vld [vmem:[%s10491_s6 + $0x9c4] ss:$8 sps:$4 sm:$0xff]   ;;  %v9660_v21 = vrot.slane %v6690_v38, %v8209_v44 }
 0x792   : > { %3827 = vmatmul.mubr.bf16.gmra.mxu1 %v3549_v14  ;;  %4153 = vmatprep.subr.bf16.mxu0 %v7619_v53  ;;  %v7653_v14 = vld [vmem:[%s10491_s6 + $0x9c0] ss:$8 sps:$4 sm:$0xff]   ;;  %v9663_v53 = vrot.slane %v6690_v38, %v8067_v60 }
 0x793   : > { %4533 = vmatpush1.bf16.msra.mxu1 %v7635_v41 }
 0x794   : > { %4534 = vmatprep.subr.bf16.mxu1 %v7640_v17 }
 0x795   : > { %4154 = vmatpush2.bf16.msra.mxu0 %v7617_v27 }
 0x797   : > { %4535 = vmatpush1.bf16.msra.mxu1 %v7638_v42 }
 0x798   : > { %4536 = vmatprep.subr.bf16.mxu1 %v7643_v45 }
 0x79b   : > { %4537 = vmatpush1.bf16.msra.mxu1 %v7641_v37 }
 0x79c   : > { %4538 = vmatprep.subr.bf16.mxu1 %v7646_v34 }
 0x79f   : > { %4539 = vmatpush2.bf16.msra.mxu1 %v7644_v56 }
 0x7a0   : > { %4540 = vmatprep.subr.bf16.mxu1 %v7649_v16 }
 0x7a3   : > { %4541 = vmatpush2.bf16.msra.mxu1 %v7647_v20 }
 0x7a4   : > { %4542 = vmatprep.subr.bf16.mxu1 %v7652_v30 }
 0x7a7   : > { %4543 = vmatpush2.bf16.msra.mxu1 %v7650_v29 }
 0x7a8   : > { %4544 = vmatprep.subr.bf16.mxu1 %v7655_v54 }
 0x7ab   : > { %4545 = vmatpush2.bf16.msra.mxu1 %v7653_v14 }
 0x7ac   : > { %4546 = vmatprep.subr.bf16.mxu1 %v7658_v61 }
 0x7af   : > { %4547 = vmatpush2.bf16.msra.mxu1 %v7656_v63 }
 0x81a   : > { %v3758_v27 = vpop.f32.mrf.mxu1 }
 0x81b   : > { %v3759_v46 = vadd.f32 %v3758_v27, %v9663_v53 }
 0x81c   : > { %v3760_v57 = vpop.f32.mrf.mxu1 }
 0x81d   : > { %v3761_v39 = vadd.f32 %v3760_v57, %v9660_v21  ;;  %v3837_v11 = vmul.f32 0.2, %v3759_v46 }
 0x81e   : > { %v3762_v40 = vpop.f32.mrf.mxu1 }
 0x81f   : > { %v3763_v55 = vadd.f32 %v3762_v40, %v9663_v53  ;;  %v3838_v7 = vmul.f32 0.2, %v3761_v39  ;;  %v3869_v56 = vmax.f32 %v3759_v46, %v3837_v11 }
 0x820   : > { %v3764_v51 = vpop.f32.mrf.mxu1 }
 0x821   : > { %v3839_v1 = vmul.f32 0.2, %v3763_v55  ;;  %v3765_v19 = vadd.f32 %v3764_v51, %v9660_v21  ;;  %v3870_v45 = vmax.f32 %v3761_v39, %v3838_v7 }
 0x822   : > { %v3768_v5 = vpop.f32.mrf.mxu1 }
 0x823   : > { %v3840_v41 = vmul.f32 0.2, %v3765_v19  ;;  %v3871_v17 = vmax.f32 %v3763_v55, %v3839_v1  ;;  %v3769_v16 = vadd.f32 %v3768_v5, %v9663_v53 }
 0x824   : > { %v3770_v42 = vpop.f32.mrf.mxu1 }
 0x825   : > { %v3872_v37 = vmax.f32 %v3765_v19, %v3840_v41  ;;  %v3771_v34 = vadd.f32 %v3770_v42, %v9660_v21  ;;  %v3934_v54 = vpack.c.bf16 %v3871_v17, %v3869_v56  ;;  %v3841_v27 = vmul.f32 0.2, %v3769_v16 }
 0x826   : > { %v3772_v20 = vpop.f32.mrf.mxu1 }
 0x827   : > { %v3773_v30 = vadd.f32 %v3772_v20, %v9663_v53  ;;  %v3935_v29 = vpack.c.bf16 %v3872_v37, %v3870_v45  ;;  %v3842_v61 = vmul.f32 0.2, %v3771_v34  ;;  %v3873_v1 = vmax.f32 %v3769_v16, %v3841_v27 }
 0x828   : > { %v3774_v14 = vpop.f32.mrf.mxu1 }
 0x829   : > { %v3843_v63 = vmul.f32 0.2, %v3773_v30  ;;  %v3775_v38 = vadd.f32 %v3774_v14, %v9660_v21  ;;  %4155 = vmatprep.mubr.bf16.mxu0 %v3935_v29  ;;  %v3874_v46 = vmax.f32 %v3771_v34, %v3842_v61 }
 0x82a   : > { %v3778_v57 = vpop.f32.mrf.mxu1  ;;  %4156 = vmatmul.mubr.bf16.vlgmr.msra.gmra.mxu0 %v3934_v54 }
 0x82b   : > { %v3844_v39 = vmul.f32 0.2, %v3775_v38  ;;  %v3875_v40 = vmax.f32 %v3773_v30, %v3843_v63  ;;  %v3779_v19 = vadd.f32 %v3778_v57, %v9663_v53 }
 0x82c   : > { %v3780_v55 = vpop.f32.mrf.mxu1 }
 0x82d   : > { %v3876_v51 = vmax.f32 %v3775_v38, %v3844_v39  ;;  %v3781_v7 = vadd.f32 %v3780_v55, %v9660_v21  ;;  %v3936_v17 = vpack.c.bf16 %v3875_v40, %v3873_v1  ;;  %v3845_v20 = vmul.f32 0.2, %v3779_v19 }
 0x82e   : > { %v3782_v11 = vpop.f32.mrf.mxu1 }
 0x82f   : > { %v3783_v5 = vadd.f32 %v3782_v11, %v9663_v53  ;;  %v3937_v41 = vpack.c.bf16 %v3876_v51, %v3874_v46  ;;  %v3846_v45 = vmul.f32 0.2, %v3781_v7  ;;  %v3877_v63 = vmax.f32 %v3779_v19, %v3845_v20 }
 0x830   : > { %v3784_v42 = vpop.f32.mrf.mxu1 }
 0x831   : > { %v3847_v37 = vmul.f32 0.2, %v3783_v5  ;;  %v3785_v56 = vadd.f32 %v3784_v42, %v9660_v21  ;;  %4165 = vmatprep.mubr.bf16.mxu0 %v3937_v41  ;;  %v3878_v16 = vmax.f32 %v3781_v7, %v3846_v45 }
 0x832   : > { %v3788_v30 = vpop.f32.mrf.mxu1  ;;  %4166 = vmatmul.mubr.bf16.gmra.mxu0 %v3936_v17 }
 0x833   : > { %v3848_v34 = vmul.f32 0.2, %v3785_v56  ;;  %v3879_v29 = vmax.f32 %v3783_v5, %v3847_v37  ;;  %v3789_v38 = vadd.f32 %v3788_v30, %v9663_v53 }
 0x834   : > { %v3790_v54 = vpop.f32.mrf.mxu1 }
 0x835   : > { %v3880_v14 = vmax.f32 %v3785_v56, %v3848_v34  ;;  %v3791_v61 = vadd.f32 %v3790_v54, %v9660_v21  ;;  %v3938_v40 = vpack.c.bf16 %v3879_v29, %v3877_v63  ;;  %v3849_v11 = vmul.f32 0.2, %v3789_v38 }
 0x836   : > { %v3792_v27 = vpop.f32.mrf.mxu1 }
 0x837   : > { %v3793_v57 = vadd.f32 %v3792_v27, %v9663_v53  ;;  %v3939_v39 = vpack.c.bf16 %v3880_v14, %v3878_v16  ;;  %v3850_v46 = vmul.f32 0.2, %v3791_v61  ;;  %v3881_v37 = vmax.f32 %v3789_v38, %v3849_v11 }
 0x838   : > { %v3794_v55 = vpop.f32.mrf.mxu1 }
 0x839   : > { %v3851_v51 = vmul.f32 0.2, %v3793_v57  ;;  %v3795_v1 = vadd.f32 %v3794_v55, %v9660_v21  ;;  %4175 = vmatprep.mubr.bf16.mxu0 %v3939_v39  ;;  %v3882_v19 = vmax.f32 %v3791_v61, %v3850_v46 }
 0x83a   : > { %v3798_v5 = vpop.f32.mrf.mxu1  ;;  %4176 = vmatmul.mubr.bf16.gmra.mxu0 %v3938_v40 }
 0x83b   : > { %v3852_v7 = vmul.f32 0.2, %v3795_v1  ;;  %v3883_v41 = vmax.f32 %v3793_v57, %v3851_v51  ;;  %v3799_v56 = vadd.f32 %v3798_v5, %v9663_v53 }
 0x83c   : > { %v3800_v17 = vpop.f32.mrf.mxu1 }
 0x83d   : > { %v3884_v42 = vmax.f32 %v3795_v1, %v3852_v7  ;;  %v3801_v45 = vadd.f32 %v3800_v17, %v9660_v21  ;;  %v3940_v29 = vpack.c.bf16 %v3883_v41, %v3881_v37  ;;  %v3853_v27 = vmul.f32 0.2, %v3799_v56 }
 0x83e   : > { %v3802_v20 = vpop.f32.mrf.mxu1 }
 0x83f   : > { %v3803_v30 = vadd.f32 %v3802_v20, %v9663_v53  ;;  %v3941_v34 = vpack.c.bf16 %v3884_v42, %v3882_v19  ;;  %v3854_v16 = vmul.f32 0.2, %v3801_v45  ;;  %v3885_v51 = vmax.f32 %v3799_v56, %v3853_v27 }
 0x840   : > { %v3804_v54 = vpop.f32.mrf.mxu1 }
 0x841   : > { %v3855_v14 = vmul.f32 0.2, %v3803_v30  ;;  %v3805_v63 = vadd.f32 %v3804_v54, %v9660_v21  ;;  %4185 = vmatprep.mubr.bf16.mxu0 %v3941_v34  ;;  %v3886_v38 = vmax.f32 %v3801_v45, %v3854_v16 }
 0x842   : > { %v3808_v57 = vpop.f32.mrf.mxu1  ;;  %4186 = vmatmul.mubr.bf16.gmra.mxu0 %v3940_v29 }
 0x843   : > { %v3856_v61 = vmul.f32 0.2, %v3805_v63  ;;  %v3887_v39 = vmax.f32 %v3803_v30, %v3855_v14  ;;  %v3809_v1 = vadd.f32 %v3808_v57, %v9663_v53 }
 0x844   : > { %v3810_v40 = vpop.f32.mrf.mxu1 }
 0x845   : > { %v3888_v55 = vmax.f32 %v3805_v63, %v3856_v61  ;;  %v3811_v46 = vadd.f32 %v3810_v40, %v9660_v21  ;;  %v3942_v41 = vpack.c.bf16 %v3887_v39, %v3885_v51  ;;  %v3857_v20 = vmul.f32 0.2, %v3809_v1 }
 0x846   : > { %v3812_v11 = vpop.f32.mrf.mxu1 }
 0x847   : > { %v3813_v5 = vadd.f32 %v3812_v11, %v9663_v53  ;;  %v3943_v7 = vpack.c.bf16 %v3888_v55, %v3886_v38  ;;  %v3858_v19 = vmul.f32 0.2, %v3811_v46  ;;  %v3889_v14 = vmax.f32 %v3809_v1, %v3857_v20 }
 0x848   : > { %v3814_v17 = vpop.f32.mrf.mxu1 }
 0x849   : > { %v3859_v42 = vmul.f32 0.2, %v3813_v5  ;;  %v3815_v37 = vadd.f32 %v3814_v17, %v9660_v21  ;;  %4195 = vmatprep.mubr.bf16.mxu0 %v3943_v7  ;;  %v3890_v56 = vmax.f32 %v3811_v46, %v3858_v19 }
 0x84a   : > { %v3818_v30 = vpop.f32.mrf.mxu1  ;;  %4196 = vmatmul.mubr.bf16.gmra.mxu0 %v3942_v41 }
 0x84b   : > { %v3860_v45 = vmul.f32 0.2, %v3815_v37  ;;  %v3891_v34 = vmax.f32 %v3813_v5, %v3859_v42  ;;  %v3819_v63 = vadd.f32 %v3818_v30, %v9663_v53 }
 0x84c   : > { %v3820_v29 = vpop.f32.mrf.mxu1 }
 0x84d   : > { %v3892_v54 = vmax.f32 %v3815_v37, %v3860_v45  ;;  %v3821_v16 = vadd.f32 %v3820_v29, %v9660_v21  ;;  %v3944_v39 = vpack.c.bf16 %v3891_v34, %v3889_v14  ;;  %v3861_v11 = vmul.f32 0.2, %v3819_v63 }
 0x84e   : > { %v3822_v27 = vpop.f32.mrf.mxu1 }
 0x84f   : > { %v3823_v57 = vadd.f32 %v3822_v27, %v9663_v53  ;;  %v3945_v61 = vpack.c.bf16 %v3892_v54, %v3890_v56  ;;  %v3862_v38 = vmul.f32 0.2, %v3821_v16  ;;  %v3893_v42 = vmax.f32 %v3819_v63, %v3861_v11  ;;  %v7667_v11 = vld [vmem:[%s10491_s6 + $0x984] ss:$8 sps:$4 sm:$0xff]  }
 0x850   : > { %v3824_v40 = vpop.f32.mrf.mxu1 }
 0x851   : > { %v3863_v55 = vmul.f32 0.2, %v3823_v57  ;;  %v3825_v51 = vadd.f32 %v3824_v40, %v9660_v21  ;;  %4205 = vmatprep.mubr.bf16.mxu0 %v3945_v61  ;;  %v3894_v1 = vmax.f32 %v3821_v16, %v3862_v38 }
 0x852   : > { %v3828_v5 = vpop.f32.mrf.mxu1  ;;  %4206 = vmatmul.mubr.bf16.gmra.mxu0 %v3944_v39 }
 0x853   : > { %v3864_v46 = vmul.f32 0.2, %v3825_v51  ;;  %v3895_v7 = vmax.f32 %v3823_v57, %v3863_v55  ;;  %v3829_v37 = vadd.f32 %v3828_v5, %v9663_v53  ;;  %v7664_v55 = vld [vmem:[%s10491_s6 + $0x994] ss:$8 sps:$4 sm:$0xff]   ;;  %v7665_v5 = vld [vmem:[%s10491_s6 + $0x980] ss:$8 sps:$4 sm:$0xff]  }
 0x854   : > { %v3830_v41 = vpop.f32.mrf.mxu1 }
 0x855   : > { %v3896_v17 = vmax.f32 %v3825_v51, %v3864_v46  ;;  %v3831_v19 = vadd.f32 %v3830_v41, %v9660_v21  ;;  %v3946_v34 = vpack.c.bf16 %v3895_v7, %v3893_v42  ;;  %v3865_v27 = vmul.f32 0.2, %v3829_v37  ;;  %v7662_v51 = vld [vmem:[%s10491_s6 + $0x990] ss:$8 sps:$4 sm:$0xff]   ;;  %v7670_v7 = vld [vmem:[%s10491_s6 + $0xa74] ss:$8 sps:$4 sm:$0xff]  }
 0x856   : > { %v3832_v20 = vpop.f32.mrf.mxu1  ;;  %v7668_v46 = vld [vmem:[%s10491_s6 + $0xa70] ss:$8 sps:$4 sm:$0xff]   ;;  %v7673_v41 = vld [vmem:[%s10491_s6 + $0xa64] ss:$8 sps:$4 sm:$0xff]   ;;  %4889 = vmatprep.subr.bf16.mxu0 %v7670_v7 }
 0x857   : > { %v3833_v30 = vadd.f32 %v3832_v20, %v9663_v53  ;;  %v3947_v45 = vpack.c.bf16 %v3896_v17, %v3894_v1  ;;  %v3866_v56 = vmul.f32 0.2, %v3831_v19  ;;  %v3897_v63 = vmax.f32 %v3829_v37, %v3865_v27  ;;  %v7661_v53 = vld [vmem:[%s10491_s6 + $0x9a4] ss:$8 sps:$4 sm:$0xff]   ;;  %4890 = vmatpush1.bf16.msra.mxu0 %v7668_v46  ;;  %v7671_v1 = vld [vmem:[%s10491_s6 + $0xa60] ss:$8 sps:$4 sm:$0xff]  }
 0x858   : > { %v3834_v29 = vpop.f32.mrf.mxu1  ;;  %4548 = vmatprep.subr.bf16.mxu1 %v7661_v53  ;;  %4891 = vmatprep.subr.bf16.mxu0 %v7673_v41  ;;  %v7676_v17 = vld [vmem:[%s10491_s6 + $0xa54] ss:$8 sps:$4 sm:$0xff]   ;;  %v7679_v42 = vld [vmem:[%s10491_s6 + $0xa44] ss:$8 sps:$4 sm:$0xff]   ;;  %v7677_v37 = vld [vmem:[%s10491_s6 + $0xa40] ss:$8 sps:$4 sm:$0xff]  }
 0x859   : > { %v3867_v54 = vmul.f32 0.2, %v3833_v30  ;;  %v3835_v14 = vadd.f32 %v3834_v29, %v9660_v21  ;;  %4215 = vmatprep.mubr.bf16.mxu0 %v3947_v45  ;;  %v3898_v61 = vmax.f32 %v3831_v19, %v3866_v56  ;;  %v7659_v21 = vld [vmem:[%s10491_s6 + $0x9a0] ss:$8 sps:$4 sm:$0xff]   ;;  %v7674_v19 = vld [vmem:[%s10491_s6 + $0xa50] ss:$8 sps:$4 sm:$0xff]  }
 0x85a   : > { %4216 = vmatmul.mubr.bf16.gmra.mxu0 %v3946_v34  ;;  %4549 = vmatpush2.bf16.msra.mxu1 %v7659_v21  ;;  %v7682_v20 = vld [vmem:[%s10491_s6 + $0xa34] ss:$8 sps:$4 sm:$0xff]   ;;  %v7685_v45 = vld [vmem:[%s10491_s6 + $0xa24] ss:$8 sps:$4 sm:$0xff]   ;;  %v7683_v34 = vld [vmem:[%s10491_s6 + $0xa20] ss:$8 sps:$4 sm:$0xff]  }
 0x85b   : > { %v3868_v16 = vmul.f32 0.2, %v3835_v14  ;;  %v3899_v57 = vmax.f32 %v3833_v30, %v3867_v54  ;;  %4550 = vmatprep.subr.bf16.mxu1 %v7664_v55  ;;  %4892 = vmatpush1.bf16.msra.mxu0 %v7671_v1  ;;  %v7680_v30 = vld [vmem:[%s10491_s6 + $0xa30] ss:$8 sps:$4 sm:$0xff]   ;;  %v7688_v29 = vld [vmem:[%s10491_s6 + $0xa14] ss:$8 sps:$4 sm:$0xff]  }
 0x85c   : > { %4893 = vmatprep.subr.bf16.mxu0 %v7676_v17  ;;  %v7686_v56 = vld [vmem:[%s10491_s6 + $0xa10] ss:$8 sps:$4 sm:$0xff]   ;;  %v7691_v54 = vld [vmem:[%s10491_s6 + $0xa04] ss:$8 sps:$4 sm:$0xff]   ;;  %v7694_v27 = vld [vmem:[%s10491_s6 + $0xaf4] ss:$8 sps:$4 sm:$0xff]  }
 0x85d   : > { %v3900_v39 = vmax.f32 %v3835_v14, %v3868_v16  ;;  %v3948_v38 = vpack.c.bf16 %v3899_v57, %v3897_v63  ;;  %v7689_v14 = vld [vmem:[%s10491_s6 + $0xa00] ss:$8 sps:$4 sm:$0xff]   ;;  %v7692_v16 = vld [vmem:[%s10491_s6 + $0xaf0] ss:$8 sps:$4 sm:$0xff]   ;;  %v7697_v57 = vld [vmem:[%s10491_s6 + $0xae4] ss:$8 sps:$4 sm:$0xff]  }
 0x85e   : > { %4551 = vmatpush2.bf16.msra.mxu1 %v7662_v51  ;;  %v7698_v63 = vld [vmem:[%s10491_s6 + $0xad0] ss:$8 sps:$4 sm:$0xff]   ;;  %v7706_v53 = vld [vmem:[%s10491_s6 + $0xab4] ss:$8 sps:$4 sm:$0xff]  }
 0x85f   : > { %v3949_v40 = vpack.c.bf16 %v3900_v39, %v3898_v61  ;;  %4552 = vmatprep.subr.bf16.mxu1 %v7667_v11  ;;  %4894 = vmatpush1.bf16.msra.mxu0 %v7674_v19  ;;  %v7695_v61 = vld [vmem:[%s10491_s6 + $0xae0] ss:$8 sps:$4 sm:$0xff]   ;;  %v7700_v39 = vld [vmem:[%s10491_s6 + $0xad4] ss:$8 sps:$4 sm:$0xff]   ;;  %v7704_v21 = vld [vmem:[%s10491_s6 + $0xab0] ss:$8 sps:$4 sm:$0xff]  }
 0x860   : > { %4895 = vmatprep.subr.bf16.mxu0 %v7679_v42  ;;  %v6755_v55 = vld [vmem:[%s10492_s7 + $0x10] sm:$0x3] }
 0x861   : > { %4225 = vmatprep.mubr.bf16.mxu0 %v3949_v40  ;;  %v7703_v40 = vld [vmem:[%s10491_s6 + $0xac4] ss:$8 sps:$4 sm:$0xff]   ;;  %v9797_v51 = vrot.slane %v6755_v55, %v8209_v44  ;;  %v9800_v11 = vrot.slane %v6755_v55, %v8067_v60 }
 0x862   : > { %4226 = vmatmul.mubr.bf16.gmra.mxu0 %v3948_v38  ;;  %4553 = vmatpush2.bf16.msra.mxu1 %v7665_v5  ;;  %v7701_v38 = vld [vmem:[%s10491_s6 + $0xac0] ss:$8 sps:$4 sm:$0xff]  }
 0x863   : > { %4896 = vmatpush1.bf16.msra.mxu0 %v7677_v37 }
 0x864   : > { %4897 = vmatprep.subr.bf16.mxu0 %v7682_v20 }
 0x867   : > { %4898 = vmatpush1.bf16.msra.mxu0 %v7680_v30 }
 0x868   : > { %4899 = vmatprep.subr.bf16.mxu0 %v7685_v45 }
 0x86b   : > { %4900 = vmatpush1.bf16.msra.mxu0 %v7683_v34 }
 0x86c   : > { %4901 = vmatprep.subr.bf16.mxu0 %v7688_v29 }
 0x86f   : > { %4902 = vmatpush1.bf16.msra.mxu0 %v7686_v56 }
 0x870   : > { %4903 = vmatprep.subr.bf16.mxu0 %v7691_v54 }
 0x873   : > { %4904 = vmatpush1.bf16.msra.mxu0 %v7689_v14 }
 0x874   : > { %4905 = vmatprep.subr.bf16.mxu0 %v7694_v27 }
 0x877   : > { %4906 = vmatpush2.bf16.msra.mxu0 %v7692_v16 }
 0x878   : > { %4907 = vmatprep.subr.bf16.mxu0 %v7697_v57 }
 0x87b   : > { %4908 = vmatpush2.bf16.msra.mxu0 %v7695_v61 }
 0x87c   : > { %4909 = vmatprep.subr.bf16.mxu0 %v7700_v39 }
 0x87f   : > { %4910 = vmatpush2.bf16.msra.mxu0 %v7698_v63 }
 0x880   : > { %4911 = vmatprep.subr.bf16.mxu0 %v7703_v40 }
 0x883   : > { %4912 = vmatpush2.bf16.msra.mxu0 %v7701_v38 }
 0x884   : > { %4913 = vmatprep.subr.bf16.mxu0 %v7706_v53 }
 0x887   : > { %4914 = vmatpush2.bf16.msra.mxu0 %v7704_v21 }
 0x8ea   : > { %v4157_v5 = vpop.f32.mrf.mxu0 }
 0x8eb   : > { %v4158_v41 = vadd.f32 %v4157_v5, %v9800_v11 }
 0x8ec   : > { %v4159_v46 = vpop.f32.mrf.mxu0 }
 0x8ed   : > { %v4160_v7 = vadd.f32 %v4159_v46, %v9797_v51  ;;  %v4236_v30 = vmul.f32 0.2, %v4158_v41 }
 0x8ee   : > { %v4161_v1 = vpop.f32.mrf.mxu0 }
 0x8ef   : > { %v4162_v17 = vadd.f32 %v4161_v1, %v9800_v11  ;;  %v4237_v42 = vmul.f32 0.2, %v4160_v7  ;;  %v4268_v16 = vmax.f32 %v4158_v41, %v4236_v30 }
 0x8f0   : > { %v4163_v19 = vpop.f32.mrf.mxu0 }
 0x8f1   : > { %v4238_v37 = vmul.f32 0.2, %v4162_v17  ;;  %v4164_v20 = vadd.f32 %v4163_v19, %v9797_v51  ;;  %v4269_v54 = vmax.f32 %v4160_v7, %v4237_v42 }
 0x8f2   : > { %v4167_v45 = vpop.f32.mrf.mxu0 }
 0x8f3   : > { %v4239_v34 = vmul.f32 0.2, %v4164_v20  ;;  %v4270_v29 = vmax.f32 %v4162_v17, %v4238_v37  ;;  %v4168_v57 = vadd.f32 %v4167_v45, %v9800_v11 }
 0x8f4   : > { %v4169_v56 = vpop.f32.mrf.mxu0 }
 0x8f5   : > { %v4271_v14 = vmax.f32 %v4164_v20, %v4239_v34  ;;  %v4170_v27 = vadd.f32 %v4169_v56, %v9797_v51  ;;  %v4333_v40 = vpack.c.bf16 %v4270_v29, %v4268_v16  ;;  %v4240_v5 = vmul.f32 0.2, %v4168_v57 }
 0x8f6   : > { %v4171_v61 = vpop.f32.mrf.mxu0 }
 0x8f7   : > { %v4172_v39 = vadd.f32 %v4171_v61, %v9800_v11  ;;  %v4334_v63 = vpack.c.bf16 %v4271_v14, %v4269_v54  ;;  %v4241_v53 = vmul.f32 0.2, %v4170_v27  ;;  %v4272_v37 = vmax.f32 %v4168_v57, %v4240_v5 }
 0x8f8   : > { %v4173_v38 = vpop.f32.mrf.mxu0 }
 0x8f9   : > { %v4242_v21 = vmul.f32 0.2, %v4172_v39  ;;  %v4174_v55 = vadd.f32 %v4173_v38, %v9797_v51  ;;  %4554 = vmatprep.mubr.bf16.mxu1 %v4334_v63  ;;  %v4273_v41 = vmax.f32 %v4170_v27, %v4241_v53 }
 0x8fa   : > { %v4177_v46 = vpop.f32.mrf.mxu0  ;;  %4555 = vmatmul.mubr.bf16.vlgmr.msra.gmra.mxu1 %v4333_v40 }
 0x8fb   : > { %v4243_v7 = vmul.f32 0.2, %v4174_v55  ;;  %v4274_v1 = vmax.f32 %v4172_v39, %v4242_v21  ;;  %v4178_v20 = vadd.f32 %v4177_v46, %v9800_v11 }
 0x8fc   : > { %v4179_v17 = vpop.f32.mrf.mxu0 }
 0x8fd   : > { %v4275_v19 = vmax.f32 %v4174_v55, %v4243_v7  ;;  %v4180_v42 = vadd.f32 %v4179_v17, %v9797_v51  ;;  %v4335_v29 = vpack.c.bf16 %v4274_v1, %v4272_v37  ;;  %v4244_v61 = vmul.f32 0.2, %v4178_v20 }
 0x8fe   : > { %v4181_v30 = vpop.f32.mrf.mxu0 }
 0x8ff   : > { %v4182_v45 = vadd.f32 %v4181_v30, %v9800_v11  ;;  %v4336_v34 = vpack.c.bf16 %v4275_v19, %v4273_v41  ;;  %v4245_v54 = vmul.f32 0.2, %v4180_v42  ;;  %v4276_v21 = vmax.f32 %v4178_v20, %v4244_v61 }
 0x900   : > { %v4183_v56 = vpop.f32.mrf.mxu0 }
 0x901   : > { %v4246_v14 = vmul.f32 0.2, %v4182_v45  ;;  %v4184_v16 = vadd.f32 %v4183_v56, %v9797_v51  ;;  %4564 = vmatprep.mubr.bf16.mxu1 %v4336_v34  ;;  %v4277_v57 = vmax.f32 %v4180_v42, %v4245_v54 }
 0x902   : > { %v4187_v39 = vpop.f32.mrf.mxu0  ;;  %4565 = vmatmul.mubr.bf16.gmra.mxu1 %v4335_v29 }
 0x903   : > { %v4247_v27 = vmul.f32 0.2, %v4184_v16  ;;  %v4278_v63 = vmax.f32 %v4182_v45, %v4246_v14  ;;  %v4188_v55 = vadd.f32 %v4187_v39, %v9800_v11 }
 0x904   : > { %v4189_v40 = vpop.f32.mrf.mxu0 }
 0x905   : > { %v4279_v38 = vmax.f32 %v4184_v16, %v4247_v27  ;;  %v4190_v53 = vadd.f32 %v4189_v40, %v9797_v51  ;;  %v4337_v1 = vpack.c.bf16 %v4278_v63, %v4276_v21  ;;  %v4248_v30 = vmul.f32 0.2, %v4188_v55 }
 0x906   : > { %v4191_v5 = vpop.f32.mrf.mxu0 }
 0x907   : > { %v4192_v46 = vadd.f32 %v4191_v5, %v9800_v11  ;;  %v4338_v7 = vpack.c.bf16 %v4279_v38, %v4277_v57  ;;  %v4249_v41 = vmul.f32 0.2, %v4190_v53  ;;  %v4280_v14 = vmax.f32 %v4188_v55, %v4248_v30 }
 0x908   : > { %v4193_v17 = vpop.f32.mrf.mxu0 }
 0x909   : > { %v4250_v19 = vmul.f32 0.2, %v4192_v46  ;;  %v4194_v37 = vadd.f32 %v4193_v17, %v9797_v51  ;;  %4574 = vmatprep.mubr.bf16.mxu1 %v4338_v7  ;;  %v4281_v20 = vmax.f32 %v4190_v53, %v4249_v41 }
 0x90a   : > { %v4197_v45 = vpop.f32.mrf.mxu0  ;;  %4575 = vmatmul.mubr.bf16.gmra.mxu1 %v4337_v1 }
 0x90b   : > { %v4251_v42 = vmul.f32 0.2, %v4194_v37  ;;  %v4282_v34 = vmax.f32 %v4192_v46, %v4250_v19  ;;  %v4198_v16 = vadd.f32 %v4197_v45, %v9800_v11 }
 0x90c   : > { %v4199_v29 = vpop.f32.mrf.mxu0 }
 0x90d   : > { %v4283_v56 = vmax.f32 %v4194_v37, %v4251_v42  ;;  %v4200_v54 = vadd.f32 %v4199_v29, %v9797_v51  ;;  %v4339_v63 = vpack.c.bf16 %v4282_v34, %v4280_v14  ;;  %v4252_v5 = vmul.f32 0.2, %v4198_v16 }
 0x90e   : > { %v4201_v61 = vpop.f32.mrf.mxu0 }
 0x90f   : > { %v4202_v39 = vadd.f32 %v4201_v61, %v9800_v11  ;;  %v4340_v27 = vpack.c.bf16 %v4283_v56, %v4281_v20  ;;  %v4253_v57 = vmul.f32 0.2, %v4200_v54  ;;  %v4284_v19 = vmax.f32 %v4198_v16, %v4252_v5 }
 0x910   : > { %v4203_v40 = vpop.f32.mrf.mxu0 }
 0x911   : > { %v4254_v38 = vmul.f32 0.2, %v4202_v39  ;;  %v4204_v21 = vadd.f32 %v4203_v40, %v9797_v51  ;;  %4584 = vmatprep.mubr.bf16.mxu1 %v4340_v27  ;;  %v4285_v55 = vmax.f32 %v4200_v54, %v4253_v57 }
 0x912   : > { %v4207_v46 = vpop.f32.mrf.mxu0  ;;  %4585 = vmatmul.mubr.bf16.gmra.mxu1 %v4339_v63 }
 0x913   : > { %v4255_v53 = vmul.f32 0.2, %v4204_v21  ;;  %v4286_v7 = vmax.f32 %v4202_v39, %v4254_v38  ;;  %v4208_v37 = vadd.f32 %v4207_v46, %v9800_v11 }
 0x914   : > { %v4209_v1 = vpop.f32.mrf.mxu0 }
 0x915   : > { %v4287_v17 = vmax.f32 %v4204_v21, %v4255_v53  ;;  %v4210_v41 = vadd.f32 %v4209_v1, %v9797_v51  ;;  %v4341_v34 = vpack.c.bf16 %v4286_v7, %v4284_v19  ;;  %v4256_v61 = vmul.f32 0.2, %v4208_v37 }
 0x916   : > { %v4211_v30 = vpop.f32.mrf.mxu0 }
 0x917   : > { %v4212_v45 = vadd.f32 %v4211_v30, %v9800_v11  ;;  %v4342_v42 = vpack.c.bf16 %v4287_v17, %v4285_v55  ;;  %v4257_v20 = vmul.f32 0.2, %v4210_v41  ;;  %v4288_v38 = vmax.f32 %v4208_v37, %v4256_v61 }
 0x918   : > { %v4213_v29 = vpop.f32.mrf.mxu0 }
 0x919   : > { %v4258_v56 = vmul.f32 0.2, %v4212_v45  ;;  %v4214_v14 = vadd.f32 %v4213_v29, %v9797_v51  ;;  %4594 = vmatprep.mubr.bf16.mxu1 %v4342_v42  ;;  %v4289_v16 = vmax.f32 %v4210_v41, %v4257_v20 }
 0x91a   : > { %v4217_v39 = vpop.f32.mrf.mxu0  ;;  %4595 = vmatmul.mubr.bf16.gmra.mxu1 %v4341_v34 }
 0x91b   : > { %v4259_v54 = vmul.f32 0.2, %v4214_v14  ;;  %v4290_v27 = vmax.f32 %v4212_v45, %v4258_v56  ;;  %v4218_v21 = vadd.f32 %v4217_v39, %v9800_v11 }
 0x91c   : > { %v4219_v63 = vpop.f32.mrf.mxu0 }
 0x91d   : > { %v4291_v40 = vmax.f32 %v4214_v14, %v4259_v54  ;;  %v4220_v57 = vadd.f32 %v4219_v63, %v9797_v51  ;;  %v4343_v7 = vpack.c.bf16 %v4290_v27, %v4288_v38  ;;  %v4260_v30 = vmul.f32 0.2, %v4218_v21 }
 0x91e   : > { %v4221_v5 = vpop.f32.mrf.mxu0 }
 0x91f   : > { %v4222_v46 = vadd.f32 %v4221_v5, %v9800_v11  ;;  %v4344_v53 = vpack.c.bf16 %v4291_v40, %v4289_v16  ;;  %v4261_v55 = vmul.f32 0.2, %v4220_v57  ;;  %v4292_v56 = vmax.f32 %v4218_v21, %v4260_v30  ;;  %v7715_v30 = vld [vmem:[%s10491_s6 + $0xa84] ss:$8 sps:$4 sm:$0xff]  }
 0x920   : > { %v4223_v1 = vpop.f32.mrf.mxu0 }
 0x921   : > { %v4262_v17 = vmul.f32 0.2, %v4222_v46  ;;  %v4224_v19 = vadd.f32 %v4223_v1, %v9797_v51  ;;  %4604 = vmatprep.mubr.bf16.mxu1 %v4344_v53  ;;  %v4293_v37 = vmax.f32 %v4220_v57, %v4261_v55 }
 0x922   : > { %v4227_v45 = vpop.f32.mrf.mxu0  ;;  %4605 = vmatmul.mubr.bf16.gmra.mxu1 %v4343_v7 }
 0x923   : > { %v4263_v41 = vmul.f32 0.2, %v4224_v19  ;;  %v4294_v42 = vmax.f32 %v4222_v46, %v4262_v17  ;;  %v4228_v14 = vadd.f32 %v4227_v45, %v9800_v11  ;;  %v7712_v17 = vld [vmem:[%s10491_s6 + $0xa94] ss:$8 sps:$4 sm:$0xff]   ;;  %v7713_v45 = vld [vmem:[%s10491_s6 + $0xa80] ss:$8 sps:$4 sm:$0xff]  }
 0x924   : > { %v4229_v34 = vpop.f32.mrf.mxu0 }
 0x925   : > { %v4295_v29 = vmax.f32 %v4224_v19, %v4263_v41  ;;  %v4230_v20 = vadd.f32 %v4229_v34, %v9797_v51  ;;  %v4345_v27 = vpack.c.bf16 %v4294_v42, %v4292_v56  ;;  %v4264_v5 = vmul.f32 0.2, %v4228_v14  ;;  %v7710_v19 = vld [vmem:[%s10491_s6 + $0xa90] ss:$8 sps:$4 sm:$0xff]   ;;  %v7718_v42 = vld [vmem:[%s10491_s6 + $0xb74] ss:$8 sps:$4 sm:$0xff]  }
 0x926   : > { %v4231_v61 = vpop.f32.mrf.mxu0  ;;  %v7716_v41 = vld [vmem:[%s10491_s6 + $0xb70] ss:$8 sps:$4 sm:$0xff]   ;;  %v7721_v34 = vld [vmem:[%s10491_s6 + $0xb64] ss:$8 sps:$4 sm:$0xff]   ;;  %5288 = vmatprep.subr.bf16.mxu1 %v7718_v42 }
 0x927   : > { %v4232_v39 = vadd.f32 %v4231_v61, %v9800_v11  ;;  %v4346_v54 = vpack.c.bf16 %v4295_v29, %v4293_v37  ;;  %v4265_v16 = vmul.f32 0.2, %v4230_v20  ;;  %v4296_v21 = vmax.f32 %v4228_v14, %v4264_v5  ;;  %v7709_v11 = vld [vmem:[%s10491_s6 + $0xaa4] ss:$8 sps:$4 sm:$0xff]   ;;  %5289 = vmatpush1.bf16.msra.mxu1 %v7716_v41  ;;  %v7719_v37 = vld [vmem:[%s10491_s6 + $0xb60] ss:$8 sps:$4 sm:$0xff]  }
 0x928   : > { %v4233_v63 = vpop.f32.mrf.mxu0  ;;  %4915 = vmatprep.subr.bf16.mxu0 %v7709_v11  ;;  %5290 = vmatprep.subr.bf16.mxu1 %v7721_v34  ;;  %v7724_v29 = vld [vmem:[%s10491_s6 + $0xb54] ss:$8 sps:$4 sm:$0xff]   ;;  %v7727_v56 = vld [vmem:[%s10491_s6 + $0xb44] ss:$8 sps:$4 sm:$0xff]   ;;  %v7725_v14 = vld [vmem:[%s10491_s6 + $0xb40] ss:$8 sps:$4 sm:$0xff]  }
 0x929   : > { %v4266_v40 = vmul.f32 0.2, %v4232_v39  ;;  %v4234_v38 = vadd.f32 %v4233_v63, %v9797_v51  ;;  %4614 = vmatprep.mubr.bf16.mxu1 %v4346_v54  ;;  %v4297_v53 = vmax.f32 %v4230_v20, %v4265_v16  ;;  %v7707_v51 = vld [vmem:[%s10491_s6 + $0xaa0] ss:$8 sps:$4 sm:$0xff]   ;;  %v7722_v20 = vld [vmem:[%s10491_s6 + $0xb50] ss:$8 sps:$4 sm:$0xff]  }
 0x92a   : > { %4615 = vmatmul.mubr.bf16.gmra.mxu1 %v4345_v27  ;;  %4916 = vmatpush2.bf16.msra.mxu0 %v7707_v51  ;;  %v7730_v61 = vld [vmem:[%s10491_s6 + $0xb34] ss:$8 sps:$4 sm:$0xff]   ;;  %v7733_v54 = vld [vmem:[%s10491_s6 + $0xb24] ss:$8 sps:$4 sm:$0xff]   ;;  %v7731_v27 = vld [vmem:[%s10491_s6 + $0xb20] ss:$8 sps:$4 sm:$0xff]  }
 0x92b   : > { %v4267_v57 = vmul.f32 0.2, %v4234_v38  ;;  %v4298_v46 = vmax.f32 %v4232_v39, %v4266_v40  ;;  %4917 = vmatprep.subr.bf16.mxu0 %v7712_v17  ;;  %5291 = vmatpush1.bf16.msra.mxu1 %v7719_v37  ;;  %v7728_v39 = vld [vmem:[%s10491_s6 + $0xb30] ss:$8 sps:$4 sm:$0xff]   ;;  %v7736_v63 = vld [vmem:[%s10491_s6 + $0xb14] ss:$8 sps:$4 sm:$0xff]  }
 0x92c   : > { %5292 = vmatprep.subr.bf16.mxu1 %v7724_v29  ;;  %v7734_v16 = vld [vmem:[%s10491_s6 + $0xb10] ss:$8 sps:$4 sm:$0xff]   ;;  %v7739_v40 = vld [vmem:[%s10491_s6 + $0xb04] ss:$8 sps:$4 sm:$0xff]   ;;  %v7742_v5 = vld [vmem:[%s10491_s6 + $0xbf4] ss:$8 sps:$4 sm:$0xff]  }
 0x92d   : > { %v4299_v7 = vmax.f32 %v4234_v38, %v4267_v57  ;;  %v4347_v55 = vpack.c.bf16 %v4298_v46, %v4296_v21  ;;  %v7737_v38 = vld [vmem:[%s10491_s6 + $0xb00] ss:$8 sps:$4 sm:$0xff]   ;;  %v7740_v57 = vld [vmem:[%s10491_s6 + $0xbf0] ss:$8 sps:$4 sm:$0xff]   ;;  %v7745_v46 = vld [vmem:[%s10491_s6 + $0xbe4] ss:$8 sps:$4 sm:$0xff]  }
 0x92e   : > { %4918 = vmatpush2.bf16.msra.mxu0 %v7710_v19  ;;  %v7746_v21 = vld [vmem:[%s10491_s6 + $0xbd0] ss:$8 sps:$4 sm:$0xff]   ;;  %v7754_v11 = vld [vmem:[%s10491_s6 + $0xbb4] ss:$8 sps:$4 sm:$0xff]  }
 0x92f   : > { %v4348_v1 = vpack.c.bf16 %v4299_v7, %v4297_v53  ;;  %4919 = vmatprep.subr.bf16.mxu0 %v7715_v30  ;;  %5293 = vmatpush1.bf16.msra.mxu1 %v7722_v20  ;;  %v7743_v53 = vld [vmem:[%s10491_s6 + $0xbe0] ss:$8 sps:$4 sm:$0xff]   ;;  %v7748_v7 = vld [vmem:[%s10491_s6 + $0xbd4] ss:$8 sps:$4 sm:$0xff]   ;;  %v7752_v51 = vld [vmem:[%s10491_s6 + $0xbb0] ss:$8 sps:$4 sm:$0xff]  }
 0x930   : > { %5294 = vmatprep.subr.bf16.mxu1 %v7727_v56  ;;  %v6820_v17 = vld [vmem:[%s10492_s7 + $0x12] sm:$0x3] }
 0x931   : > { %4624 = vmatprep.mubr.bf16.mxu1 %v4348_v1  ;;  %v7751_v1 = vld [vmem:[%s10491_s6 + $0xbc4] ss:$8 sps:$4 sm:$0xff]   ;;  %v9934_v30 = vrot.slane %v6820_v17, %v8209_v44 }
 0x932   : > { %4625 = vmatmul.mubr.bf16.gmra.mxu1 %v4347_v55  ;;  %4920 = vmatpush2.bf16.msra.mxu0 %v7713_v45  ;;  %v7749_v55 = vld [vmem:[%s10491_s6 + $0xbc0] ss:$8 sps:$4 sm:$0xff]   ;;  %v9937_v45 = vrot.slane %v6820_v17, %v8067_v60 }
 0x933   : > { %5295 = vmatpush1.bf16.msra.mxu1 %v7725_v14 }
 0x934   : > { %5296 = vmatprep.subr.bf16.mxu1 %v7730_v61 }
 0x937   : > { %5297 = vmatpush1.bf16.msra.mxu1 %v7728_v39 }
 0x938   : > { %5298 = vmatprep.subr.bf16.mxu1 %v7733_v54 }
 0x93b   : > { %5299 = vmatpush1.bf16.msra.mxu1 %v7731_v27 }
 0x93c   : > { %5300 = vmatprep.subr.bf16.mxu1 %v7736_v63 }
 0x93f   : > { %5301 = vmatpush1.bf16.msra.mxu1 %v7734_v16 }
 0x940   : > { %5302 = vmatprep.subr.bf16.mxu1 %v7739_v40 }
 0x943   : > { %5303 = vmatpush1.bf16.msra.mxu1 %v7737_v38 }
 0x944   : > { %5304 = vmatprep.subr.bf16.mxu1 %v7742_v5 }
 0x947   : > { %5305 = vmatpush2.bf16.msra.mxu1 %v7740_v57 }
 0x948   : > { %5306 = vmatprep.subr.bf16.mxu1 %v7745_v46 }
 0x94b   : > { %5307 = vmatpush2.bf16.msra.mxu1 %v7743_v53 }
 0x94c   : > { %5308 = vmatprep.subr.bf16.mxu1 %v7748_v7 }
 0x94f   : > { %5309 = vmatpush2.bf16.msra.mxu1 %v7746_v21 }
 0x950   : > { %5310 = vmatprep.subr.bf16.mxu1 %v7751_v1 }
 0x953   : > { %5311 = vmatpush2.bf16.msra.mxu1 %v7749_v55 }
 0x954   : > { %5312 = vmatprep.subr.bf16.mxu1 %v7754_v11 }
 0x957   : > { %5313 = vmatpush2.bf16.msra.mxu1 %v7752_v51 }
 0x9ba   : > { %v4556_v19 = vpop.f32.mrf.mxu1 }
 0x9bb   : > { %v4557_v29 = vadd.f32 %v4556_v19, %v9937_v45 }
 0x9bc   : > { %v4558_v41 = vpop.f32.mrf.mxu1 }
 0x9bd   : > { %v4559_v34 = vadd.f32 %v4558_v41, %v9934_v30  ;;  %v9953_v27 = vadd.f32 %v4557_v29, %v9414_v23 }
 0x9be   : > { %v4560_v42 = vpop.f32.mrf.mxu1 }
 0x9bf   : > { %v4561_v37 = vadd.f32 %v4560_v42, %v9937_v45  ;;  %v9947_v39 = vadd.f32 %v4559_v34, %v9408_v25 }
 0x9c0   : > { %v4562_v20 = vpop.f32.mrf.mxu1 }
 0x9c1   : > { %v4563_v56 = vadd.f32 %v4562_v20, %v9934_v30  ;;  %v9944_v14 = vadd.f32 %v4561_v37, %v9405_v43 }
 0x9c2   : > { %v4566_v61 = vpop.f32.mrf.mxu1 }
 0x9c3   : > { %v9950_v54 = vadd.f32 %v4563_v56, %v9411_v4  ;;  %v4700_v40 = vpack.c.bf16 %v9944_v14, %v9953_v27  ;;  %v4567_v25 = vadd.f32 %v4566_v61, %v9937_v45 }
 0x9c4   : > { %v4568_v63 = vpop.f32.mrf.mxu1 }
 0x9c5   : > { %v4701_v16 = vpack.c.bf16 %v9950_v54, %v9947_v39  ;;  %v4569_v43 = vadd.f32 %v4568_v63, %v9934_v30  ;;  %v9973_v21 = vadd.f32 %v4567_v25, %v9434_v48 }
 0x9c6   : > { %v4570_v38 = vpop.f32.mrf.mxu1 }
 0x9c7   : > { %v4571_v5 = vadd.f32 %v4570_v38, %v9937_v45  ;;  %4921 = vmatprep.mubr.bf16.mxu0 %v4701_v16  ;;  %v9967_v53 = vadd.f32 %v4569_v43, %v9428_v2 }
 0x9c8   : > { %v4572_v4 = vpop.f32.mrf.mxu1  ;;  %4922 = vmatmul.mubr.bf16.vlgmr.msra.gmra.mxu0 %v4700_v40 }
 0x9c9   : > { %v4573_v23 = vadd.f32 %v4572_v4, %v9934_v30  ;;  %v9964_v57 = vadd.f32 %v4571_v5, %v9425_v24 }
 0x9ca   : > { %v4576_v46 = vpop.f32.mrf.mxu1 }
 0x9cb   : > { %v9970_v7 = vadd.f32 %v4573_v23, %v9431_v22  ;;  %v4702_v11 = vpack.c.bf16 %v9964_v57, %v9973_v21  ;;  %v4577_v2 = vadd.f32 %v4576_v46, %v9937_v45 }
 0x9cc   : > { %v4578_v1 = vpop.f32.mrf.mxu1 }
 0x9cd   : > { %v4703_v55 = vpack.c.bf16 %v9970_v7, %v9967_v53  ;;  %v4579_v24 = vadd.f32 %v4578_v1, %v9934_v30  ;;  %v9993_v37 = vadd.f32 %v4577_v2, %v9454_v15 }
 0x9ce   : > { %v4580_v51 = vpop.f32.mrf.mxu1 }
 0x9cf   : > { %v4581_v17 = vadd.f32 %v4580_v51, %v9937_v45  ;;  %4931 = vmatprep.mubr.bf16.mxu0 %v4703_v55  ;;  %v9987_v42 = vadd.f32 %v4579_v24, %v9448_v13 }
 0x9d0   : > { %v4582_v22 = vpop.f32.mrf.mxu1  ;;  %4932 = vmatmul.mubr.bf16.gmra.mxu0 %v4702_v11 }
 0x9d1   : > { %v4583_v48 = vadd.f32 %v4582_v22, %v9934_v30  ;;  %v9984_v19 = vadd.f32 %v4581_v17, %v9445_v49 }
 0x9d2   : > { %v4586_v41 = vpop.f32.mrf.mxu1 }
 0x9d3   : > { %v9990_v34 = vadd.f32 %v4583_v48, %v9451_v33  ;;  %v4704_v56 = vpack.c.bf16 %v9984_v19, %v9993_v37  ;;  %v4587_v13 = vadd.f32 %v4586_v41, %v9937_v45 }
 0x9d4   : > { %v4588_v29 = vpop.f32.mrf.mxu1 }
 0x9d5   : > { %v4705_v20 = vpack.c.bf16 %v9990_v34, %v9987_v42  ;;  %v4589_v49 = vadd.f32 %v4588_v29, %v9934_v30  ;;  %v10013_v5 = vadd.f32 %v4587_v13, %v9474_v35 }
 0x9d6   : > { %v4590_v61 = vpop.f32.mrf.mxu1 }
 0x9d7   : > { %v4591_v63 = vadd.f32 %v4590_v61, %v9937_v45  ;;  %4941 = vmatprep.mubr.bf16.mxu0 %v4705_v20  ;;  %v10007_v38 = vadd.f32 %v4589_v49, %v9468_v10 }
 0x9d8   : > { %v4592_v33 = vpop.f32.mrf.mxu1  ;;  %4942 = vmatmul.mubr.bf16.gmra.mxu0 %v4704_v56 }
 0x9d9   : > { %v4593_v15 = vadd.f32 %v4592_v33, %v9934_v30  ;;  %v10004_v16 = vadd.f32 %v4591_v63, %v9465_v59 }
 0x9da   : > { %v4596_v40 = vpop.f32.mrf.mxu1 }
 0x9db   : > { %v10010_v43 = vadd.f32 %v4593_v15, %v9471_v62  ;;  %v4706_v23 = vpack.c.bf16 %v10004_v16, %v10013_v5  ;;  %v4597_v10 = vadd.f32 %v4596_v40, %v9937_v45 }
 0x9dc   : > { %v4598_v25 = vpop.f32.mrf.mxu1 }
 0x9dd   : > { %v4707_v4 = vpack.c.bf16 %v10010_v43, %v10007_v38  ;;  %v4599_v59 = vadd.f32 %v4598_v25, %v9934_v30  ;;  %v10033_v17 = vadd.f32 %v4597_v10, %v9494_v50 }
 0x9de   : > { %v4600_v46 = vpop.f32.mrf.mxu1 }
 0x9df   : > { %v4601_v1 = vadd.f32 %v4600_v46, %v9937_v45  ;;  %4951 = vmatprep.mubr.bf16.mxu0 %v4707_v4  ;;  %v10027_v51 = vadd.f32 %v4599_v59, %v9488_v9 }
 0x9e0   : > { %v4602_v62 = vpop.f32.mrf.mxu1  ;;  %4952 = vmatmul.mubr.bf16.gmra.mxu0 %v4706_v23 }
 0x9e1   : > { %v4603_v35 = vadd.f32 %v4602_v62, %v9934_v30  ;;  %v10024_v55 = vadd.f32 %v4601_v1, %v9485_v8 }
 0x9e2   : > { %v4606_v11 = vpop.f32.mrf.mxu1 }
 0x9e3   : > { %v10030_v24 = vadd.f32 %v4603_v35, %v9491_v18  ;;  %v4708_v48 = vpack.c.bf16 %v10024_v55, %v10033_v17  ;;  %v4607_v9 = vadd.f32 %v4606_v11, %v9937_v45 }
 0x9e4   : > { %v4608_v2 = vpop.f32.mrf.mxu1 }
 0x9e5   : > { %v4709_v22 = vpack.c.bf16 %v10030_v24, %v10027_v51  ;;  %v4609_v8 = vadd.f32 %v4608_v2, %v9934_v30  ;;  %v10053_v63 = vadd.f32 %v4607_v9, %v9514_v6  ;;  %v7761_v9 = vld [vmem:[%s10491_s6 + $0xb80] ss:$8 sps:$4 sm:$0xff]  }
 0x9e6   : > { %v4610_v41 = vpop.f32.mrf.mxu1 }
 0x9e7   : > { %v4611_v29 = vadd.f32 %v4610_v41, %v9937_v45  ;;  %4961 = vmatprep.mubr.bf16.mxu0 %v4709_v22  ;;  %v10047_v61 = vadd.f32 %v4609_v8, %v9508_v3 }
 0x9e8   : > { %v4612_v18 = vpop.f32.mrf.mxu1  ;;  %4962 = vmatmul.mubr.bf16.gmra.mxu0 %v4708_v48 }
 0x9e9   : > { %v4613_v50 = vadd.f32 %v4612_v18, %v9934_v30  ;;  %v10044_v20 = vadd.f32 %v4611_v29, %v9505_v52  ;;  %v7764_v18 = vld [vmem:[%s10491_s6 + $0xc70] ss:$8 sps:$4 sm:$0xff]  }
 0x9ea   : > { %v4616_v56 = vpop.f32.mrf.mxu1 }
 0x9eb   : > { %v10050_v49 = vadd.f32 %v4613_v50, %v9511_v31  ;;  %v4710_v15 = vpack.c.bf16 %v10044_v20, %v10053_v63  ;;  %v4617_v3 = vadd.f32 %v4616_v56, %v9937_v45  ;;  %v7766_v50 = vld [vmem:[%s10491_s6 + $0xc74] ss:$8 sps:$4 sm:$0xff]   ;;  %v7769_v56 = vld [vmem:[%s10491_s6 + $0xc64] ss:$8 sps:$4 sm:$0xff]  }
 0x9ec   : > { %v4618_v13 = vpop.f32.mrf.mxu1  ;;  %5687 = vmatprep.subr.bf16.mxu0 %v7766_v50 }
 0x9ed   : > { %v4711_v33 = vpack.c.bf16 %v10050_v49, %v10047_v61  ;;  %v4619_v52 = vadd.f32 %v4618_v13, %v9934_v30  ;;  %v10073_v1 = vadd.f32 %v4617_v3, %v9534_v32  ;;  %5688 = vmatpush1.bf16.msra.mxu0 %v7764_v18  ;;  %v7767_v13 = vld [vmem:[%s10491_s6 + $0xc60] ss:$8 sps:$4 sm:$0xff]   ;;  %v7776_v3 = vld [vmem:[%s10491_s6 + $0xc30] ss:$8 sps:$4 sm:$0xff]  }
 0x9ee   : > { %v4620_v40 = vpop.f32.mrf.mxu1  ;;  %5689 = vmatprep.subr.bf16.mxu0 %v7769_v56 }
 0x9ef   : > { %v4621_v25 = vadd.f32 %v4620_v40, %v9937_v45  ;;  %4971 = vmatprep.mubr.bf16.mxu0 %v4711_v33  ;;  %v10067_v46 = vadd.f32 %v4619_v52, %v9528_v58  ;;  %v7772_v33 = vld [vmem:[%s10491_s6 + $0xc54] ss:$8 sps:$4 sm:$0xff]   ;;  %v7775_v40 = vld [vmem:[%s10491_s6 + $0xc44] ss:$8 sps:$4 sm:$0xff]   ;;  %v7773_v52 = vld [vmem:[%s10491_s6 + $0xc40] ss:$8 sps:$4 sm:$0xff]  }
 0x9f0   : > { %v4622_v31 = vpop.f32.mrf.mxu1  ;;  %4972 = vmatmul.mubr.bf16.gmra.mxu0 %v4710_v15  ;;  %v7770_v15 = vld [vmem:[%s10491_s6 + $0xc50] ss:$8 sps:$4 sm:$0xff]  }
 0x9f1   : > { %v4623_v6 = vadd.f32 %v4622_v31, %v9934_v30  ;;  %v10064_v4 = vadd.f32 %v4621_v25, %v9525_v47  ;;  %5690 = vmatpush1.bf16.msra.mxu0 %v7767_v13  ;;  %v7778_v25 = vld [vmem:[%s10491_s6 + $0xc34] ss:$8 sps:$4 sm:$0xff]   ;;  %v7781_v31 = vld [vmem:[%s10491_s6 + $0xc24] ss:$8 sps:$4 sm:$0xff]  }
 0x9f2   : > { %v4626_v23 = vpop.f32.mrf.mxu1  ;;  %5691 = vmatprep.subr.bf16.mxu0 %v7772_v33 }
 0x9f3   : > { %v10070_v59 = vadd.f32 %v4623_v6, %v9531_v0  ;;  %v4712_v35 = vpack.c.bf16 %v10064_v4, %v10073_v1  ;;  %v4627_v58 = vadd.f32 %v4626_v23, %v9937_v45  ;;  %v7779_v6 = vld [vmem:[%s10491_s6 + $0xc20] ss:$8 sps:$4 sm:$0xff]   ;;  %v7784_v23 = vld [vmem:[%s10491_s6 + $0xc14] ss:$8 sps:$4 sm:$0xff]  }
 0x9f4   : > { %v4628_v10 = vpop.f32.mrf.mxu1 }
 0x9f5   : > { %v4713_v62 = vpack.c.bf16 %v10070_v59, %v10067_v46  ;;  %v4629_v47 = vadd.f32 %v4628_v10, %v9934_v30  ;;  %v10093_v8 = vadd.f32 %v4627_v58, %v9554_v26  ;;  %v7758_v26 = vld [vmem:[%s10491_s6 + $0xb90] ss:$8 sps:$4 sm:$0xff]   ;;  %5692 = vmatpush1.bf16.msra.mxu0 %v7770_v15  ;;  %v7791_v58 = vld [vmem:[%s10491_s6 + $0xce0] ss:$8 sps:$4 sm:$0xff]  }
 0x9f6   : > { %v4630_v11 = vpop.f32.mrf.mxu1  ;;  %5693 = vmatprep.subr.bf16.mxu0 %v7775_v40  ;;  %v7782_v10 = vld [vmem:[%s10491_s6 + $0xc10] ss:$8 sps:$4 sm:$0xff]  }
 0x9f7   : > { %v4631_v2 = vadd.f32 %v4630_v11, %v9937_v45  ;;  %4981 = vmatprep.mubr.bf16.mxu0 %v4713_v62  ;;  %v10087_v48 = vadd.f32 %v4629_v47, %v9548_v12  ;;  %v7755_v12 = vld [vmem:[%s10491_s6 + $0xba0] ss:$8 sps:$4 sm:$0xff]   ;;  %v7787_v62 = vld [vmem:[%s10491_s6 + $0xc04] ss:$8 sps:$4 sm:$0xff]   ;;  %v7790_v11 = vld [vmem:[%s10491_s6 + $0xcf4] ss:$8 sps:$4 sm:$0xff]  }
 0x9f8   : > { %v4632_v0 = vpop.f32.mrf.mxu1  ;;  %4982 = vmatmul.mubr.bf16.gmra.mxu0 %v4712_v35  ;;  %v7785_v35 = vld [vmem:[%s10491_s6 + $0xc00] ss:$8 sps:$4 sm:$0xff]   ;;  %v7788_v47 = vld [vmem:[%s10491_s6 + $0xcf0] ss:$8 sps:$4 sm:$0xff]  }
 0x9f9   : > { %v4633_v32 = vadd.f32 %v4632_v0, %v9934_v30  ;;  %v10084_v22 = vadd.f32 %v4631_v2, %v9545_v28  ;;  %v7757_v28 = vld [vmem:[%s10491_s6 + $0xba4] ss:$8 sps:$4 sm:$0xff]   ;;  %5694 = vmatpush1.bf16.msra.mxu0 %v7773_v52  ;;  %v7796_v0 = vld [vmem:[%s10491_s6 + $0xcd4] ss:$8 sps:$4 sm:$0xff]  }
 0x9fa   : > { %5314 = vmatprep.subr.bf16.mxu1 %v7757_v28  ;;  %v7763_v30 = vld [vmem:[%s10491_s6 + $0xb84] ss:$8 sps:$4 sm:$0xff]   ;;  %5695 = vmatprep.subr.bf16.mxu0 %v7778_v25  ;;  %v7802_v28 = vld [vmem:[%s10491_s6 + $0xcb4] ss:$8 sps:$4 sm:$0xff]  }
 0x9fb   : > { %v10090_v41 = vadd.f32 %v4633_v32, %v9551_v36  ;;  %v4714_v45 = vpack.c.bf16 %v10084_v22, %v10093_v8  ;;  %5315 = vmatpush2.bf16.msra.mxu1 %v7755_v12  ;;  %v7760_v36 = vld [vmem:[%s10491_s6 + $0xb94] ss:$8 sps:$4 sm:$0xff]   ;;  %v7793_v2 = vld [vmem:[%s10491_s6 + $0xce4] ss:$8 sps:$4 sm:$0xff]   ;;  %v7794_v32 = vld [vmem:[%s10491_s6 + $0xcd0] ss:$8 sps:$4 sm:$0xff]  }
 0x9fc   : > { %5316 = vmatprep.subr.bf16.mxu1 %v7760_v36  ;;  %v7800_v12 = vld [vmem:[%s10491_s6 + $0xcb0] ss:$8 sps:$4 sm:$0xff]   ;;  %v6885_v36 = vld [vmem:[%s10492_s7 + $0x14] sm:$0x3] }
 0x9fd   : > { %v4715_v29 = vpack.c.bf16 %v10090_v41, %v10087_v48  ;;  %5696 = vmatpush1.bf16.msra.mxu0 %v7776_v3 }
 0x9fe   : > { %5697 = vmatprep.subr.bf16.mxu0 %v7781_v31 }
 0x9ff   : > { %4991 = vmatprep.mubr.bf16.mxu0 %v4715_v29  ;;  %5317 = vmatpush2.bf16.msra.mxu1 %v7758_v26  ;;  %v7799_v29 = vld [vmem:[%s10491_s6 + $0xcc4] ss:$8 sps:$4 sm:$0xff]   ;;  %v10199_v26 = vrot.slane %v6885_v36, %v8209_v44 }
 0xa00   : > { %4992 = vmatmul.mubr.bf16.gmra.mxu0 %v4714_v45  ;;  %5318 = vmatprep.subr.bf16.mxu1 %v7763_v30  ;;  %v7797_v45 = vld [vmem:[%s10491_s6 + $0xcc0] ss:$8 sps:$4 sm:$0xff]   ;;  %v10202_v30 = vrot.slane %v6885_v36, %v8067_v60 }
 0xa01   : > { %5698 = vmatpush1.bf16.msra.mxu0 %v7779_v6 }
 0xa02   : > { %5699 = vmatprep.subr.bf16.mxu0 %v7784_v23 }
 0xa03   : > { %5319 = vmatpush2.bf16.msra.mxu1 %v7761_v9 }
 0xa05   : > { %5700 = vmatpush1.bf16.msra.mxu0 %v7782_v10 }
 0xa06   : > { %5701 = vmatprep.subr.bf16.mxu0 %v7787_v62 }
 0xa09   : > { %5702 = vmatpush1.bf16.msra.mxu0 %v7785_v35 }
 0xa0a   : > { %5703 = vmatprep.subr.bf16.mxu0 %v7790_v11 }
 0xa0d   : > { %5704 = vmatpush2.bf16.msra.mxu0 %v7788_v47 }
 0xa0e   : > { %5705 = vmatprep.subr.bf16.mxu0 %v7793_v2 }
 0xa11   : > { %5706 = vmatpush2.bf16.msra.mxu0 %v7791_v58 }
 0xa12   : > { %5707 = vmatprep.subr.bf16.mxu0 %v7796_v0 }
 0xa15   : > { %5708 = vmatpush2.bf16.msra.mxu0 %v7794_v32 }
 0xa16   : > { %5709 = vmatprep.subr.bf16.mxu0 %v7799_v29 }
 0xa19   : > { %5710 = vmatpush2.bf16.msra.mxu0 %v7797_v45 }
 0xa1a   : > { %5711 = vmatprep.subr.bf16.mxu0 %v7802_v28 }
 0xa1d   : > { %5712 = vmatpush2.bf16.msra.mxu0 %v7800_v12 }
 0xa88   : > { %v4923_v9 = vpop.f32.mrf.mxu0 }
 0xa89   : > { %v4924_v56 = vadd.f32 %v4923_v9, %v10202_v30 }
 0xa8a   : > { %v4925_v18 = vpop.f32.mrf.mxu0 }
 0xa8b   : > { %v4926_v50 = vadd.f32 %v4925_v18, %v10199_v26  ;;  %v5002_v3 = vmul.f32 0.2, %v4924_v56 }
 0xa8c   : > { %v4927_v13 = vpop.f32.mrf.mxu0 }
 0xa8d   : > { %v4928_v33 = vadd.f32 %v4927_v13, %v10202_v30  ;;  %v5003_v40 = vmul.f32 0.2, %v4926_v50  ;;  %v5034_v47 = vmax.f32 %v4924_v56, %v5002_v3 }
 0xa8e   : > { %v4929_v15 = vpop.f32.mrf.mxu0 }
 0xa8f   : > { %v5004_v52 = vmul.f32 0.2, %v4928_v33  ;;  %v4930_v25 = vadd.f32 %v4929_v15, %v10199_v26  ;;  %v5035_v62 = vmax.f32 %v4926_v50, %v5003_v40 }
 0xa90   : > { %v4933_v31 = vpop.f32.mrf.mxu0 }
 0xa91   : > { %v5005_v6 = vmul.f32 0.2, %v4930_v25  ;;  %v5036_v23 = vmax.f32 %v4928_v33, %v5004_v52  ;;  %v4934_v2 = vadd.f32 %v4933_v31, %v10202_v30 }
 0xa92   : > { %v4935_v10 = vpop.f32.mrf.mxu0 }
 0xa93   : > { %v5037_v35 = vmax.f32 %v4930_v25, %v5005_v6  ;;  %v4936_v11 = vadd.f32 %v4935_v10, %v10199_v26  ;;  %v5099_v29 = vpack.c.bf16 %v5036_v23, %v5034_v47  ;;  %v5006_v9 = vmul.f32 0.2, %v4934_v2 }
 0xa94   : > { %v4937_v58 = vpop.f32.mrf.mxu0 }
 0xa95   : > { %v4938_v0 = vadd.f32 %v4937_v58, %v10202_v30  ;;  %v5100_v32 = vpack.c.bf16 %v5037_v35, %v5035_v62  ;;  %v5007_v28 = vmul.f32 0.2, %v4936_v11  ;;  %v5038_v52 = vmax.f32 %v4934_v2, %v5006_v9 }
 0xa96   : > { %v4939_v45 = vpop.f32.mrf.mxu0 }
 0xa97   : > { %v5008_v12 = vmul.f32 0.2, %v4938_v0  ;;  %v4940_v36 = vadd.f32 %v4939_v45, %v10199_v26  ;;  %5320 = vmatprep.mubr.bf16.mxu1 %v5100_v32  ;;  %v5039_v56 = vmax.f32 %v4936_v11, %v5007_v28 }
 0xa98   : > { %v4943_v18 = vpop.f32.mrf.mxu0  ;;  %5321 = vmatmul.mubr.bf16.vlgmr.msra.gmra.mxu1 %v5099_v29 }
 0xa99   : > { %v5009_v50 = vmul.f32 0.2, %v4940_v36  ;;  %v5040_v13 = vmax.f32 %v4938_v0, %v5008_v12  ;;  %v4944_v25 = vadd.f32 %v4943_v18, %v10202_v30 }
 0xa9a   : > { %v4945_v33 = vpop.f32.mrf.mxu0 }
 0xa9b   : > { %v5041_v15 = vmax.f32 %v4940_v36, %v5009_v50  ;;  %v4946_v40 = vadd.f32 %v4945_v33, %v10199_v26  ;;  %v5101_v23 = vpack.c.bf16 %v5040_v13, %v5038_v52  ;;  %v5010_v58 = vmul.f32 0.2, %v4944_v25 }
 0xa9c   : > { %v4947_v3 = vpop.f32.mrf.mxu0 }
 0xa9d   : > { %v4948_v31 = vadd.f32 %v4947_v3, %v10202_v30  ;;  %v5102_v6 = vpack.c.bf16 %v5041_v15, %v5039_v56  ;;  %v5011_v62 = vmul.f32 0.2, %v4946_v40  ;;  %v5042_v12 = vmax.f32 %v4944_v25, %v5010_v58 }
 0xa9e   : > { %v4949_v10 = vpop.f32.mrf.mxu0 }
 0xa9f   : > { %v5012_v35 = vmul.f32 0.2, %v4948_v31  ;;  %v4950_v47 = vadd.f32 %v4949_v10, %v10199_v26  ;;  %5330 = vmatprep.mubr.bf16.mxu1 %v5102_v6  ;;  %v5043_v2 = vmax.f32 %v4946_v40, %v5011_v62 }
 0xaa0   : > { %v4953_v0 = vpop.f32.mrf.mxu0  ;;  %5331 = vmatmul.mubr.bf16.gmra.mxu1 %v5101_v23 }
 0xaa1   : > { %v5013_v11 = vmul.f32 0.2, %v4950_v47  ;;  %v5044_v32 = vmax.f32 %v4948_v31, %v5012_v35  ;;  %v4954_v36 = vadd.f32 %v4953_v0, %v10202_v30 }
 0xaa2   : > { %v4955_v29 = vpop.f32.mrf.mxu0 }
 0xaa3   : > { %v5045_v45 = vmax.f32 %v4950_v47, %v5013_v11  ;;  %v4956_v28 = vadd.f32 %v4955_v29, %v10199_v26  ;;  %v5103_v13 = vpack.c.bf16 %v5044_v32, %v5042_v12  ;;  %v5014_v3 = vmul.f32 0.2, %v4954_v36 }
 0xaa4   : > { %v4957_v9 = vpop.f32.mrf.mxu0 }
 0xaa5   : > { %v4958_v18 = vadd.f32 %v4957_v9, %v10202_v30  ;;  %v5104_v50 = vpack.c.bf16 %v5045_v45, %v5043_v2  ;;  %v5015_v56 = vmul.f32 0.2, %v4956_v28  ;;  %v5046_v35 = vmax.f32 %v4954_v36, %v5014_v3 }
 0xaa6   : > { %v4959_v33 = vpop.f32.mrf.mxu0 }
 0xaa7   : > { %v5016_v15 = vmul.f32 0.2, %v4958_v18  ;;  %v4960_v52 = vadd.f32 %v4959_v33, %v10199_v26  ;;  %5340 = vmatprep.mubr.bf16.mxu1 %v5104_v50  ;;  %v5047_v25 = vmax.f32 %v4956_v28, %v5015_v56 }
 0xaa8   : > { %v4963_v31 = vpop.f32.mrf.mxu0  ;;  %5341 = vmatmul.mubr.bf16.gmra.mxu1 %v5103_v13 }
 0xaa9   : > { %v5017_v40 = vmul.f32 0.2, %v4960_v52  ;;  %v5048_v6 = vmax.f32 %v4958_v18, %v5016_v15  ;;  %v4964_v47 = vadd.f32 %v4963_v31, %v10202_v30 }
 0xaaa   : > { %v4965_v23 = vpop.f32.mrf.mxu0 }
 0xaab   : > { %v5049_v10 = vmax.f32 %v4960_v52, %v5017_v40  ;;  %v4966_v62 = vadd.f32 %v4965_v23, %v10199_v26  ;;  %v5105_v32 = vpack.c.bf16 %v5048_v6, %v5046_v35  ;;  %v5018_v9 = vmul.f32 0.2, %v4964_v47 }
 0xaac   : > { %v4967_v58 = vpop.f32.mrf.mxu0 }
 0xaad   : > { %v4968_v0 = vadd.f32 %v4967_v58, %v10202_v30  ;;  %v5106_v11 = vpack.c.bf16 %v5049_v10, %v5047_v25  ;;  %v5019_v2 = vmul.f32 0.2, %v4966_v62  ;;  %v5050_v15 = vmax.f32 %v4964_v47, %v5018_v9 }
 0xaae   : > { %v4969_v29 = vpop.f32.mrf.mxu0 }
 0xaaf   : > { %v5020_v45 = vmul.f32 0.2, %v4968_v0  ;;  %v4970_v12 = vadd.f32 %v4969_v29, %v10199_v26  ;;  %5350 = vmatprep.mubr.bf16.mxu1 %v5106_v11  ;;  %v5051_v36 = vmax.f32 %v4966_v62, %v5019_v2 }
 0xab0   : > { %v4973_v18 = vpop.f32.mrf.mxu0  ;;  %5351 = vmatmul.mubr.bf16.gmra.mxu1 %v5105_v32 }
 0xab1   : > { %v5021_v28 = vmul.f32 0.2, %v4970_v12  ;;  %v5052_v50 = vmax.f32 %v4968_v0, %v5020_v45  ;;  %v4974_v52 = vadd.f32 %v4973_v18, %v10202_v30 }
 0xab2   : > { %v4975_v13 = vpop.f32.mrf.mxu0 }
 0xab3   : > { %v5053_v33 = vmax.f32 %v4970_v12, %v5021_v28  ;;  %v4976_v56 = vadd.f32 %v4975_v13, %v10199_v26  ;;  %v5107_v6 = vpack.c.bf16 %v5052_v50, %v5050_v15  ;;  %v5022_v58 = vmul.f32 0.2, %v4974_v52 }
 0xab4   : > { %v4977_v3 = vpop.f32.mrf.mxu0 }
 0xab5   : > { %v4978_v31 = vadd.f32 %v4977_v3, %v10202_v30  ;;  %v5108_v40 = vpack.c.bf16 %v5053_v33, %v5051_v36  ;;  %v5023_v25 = vmul.f32 0.2, %v4976_v56  ;;  %v5054_v45 = vmax.f32 %v4974_v52, %v5022_v58 }
 0xab6   : > { %v4979_v23 = vpop.f32.mrf.mxu0 }
 0xab7   : > { %v5024_v10 = vmul.f32 0.2, %v4978_v31  ;;  %v4980_v35 = vadd.f32 %v4979_v23, %v10199_v26  ;;  %5360 = vmatprep.mubr.bf16.mxu1 %v5108_v40  ;;  %v5055_v47 = vmax.f32 %v4976_v56, %v5023_v25 }
 0xab8   : > { %v4983_v0 = vpop.f32.mrf.mxu0  ;;  %5361 = vmatmul.mubr.bf16.gmra.mxu1 %v5107_v6 }
 0xab9   : > { %v5025_v62 = vmul.f32 0.2, %v4980_v35  ;;  %v5056_v11 = vmax.f32 %v4978_v31, %v5024_v10  ;;  %v4984_v12 = vadd.f32 %v4983_v0, %v10202_v30 }
 0xaba   : > { %v4985_v32 = vpop.f32.mrf.mxu0 }
 0xabb   : > { %v5057_v29 = vmax.f32 %v4980_v35, %v5025_v62  ;;  %v4986_v2 = vadd.f32 %v4985_v32, %v10199_v26  ;;  %v5109_v50 = vpack.c.bf16 %v5056_v11, %v5054_v45  ;;  %v5026_v3 = vmul.f32 0.2, %v4984_v12 }
 0xabc   : > { %v4987_v9 = vpop.f32.mrf.mxu0 }
 0xabd   : > { %v4988_v18 = vadd.f32 %v4987_v9, %v10202_v30  ;;  %v5110_v28 = vpack.c.bf16 %v5057_v29, %v5055_v47  ;;  %v5027_v36 = vmul.f32 0.2, %v4986_v2  ;;  %v5058_v10 = vmax.f32 %v4984_v12, %v5026_v3  ;;  %v7811_v3 = vld [vmem:[%s10491_s6 + $0xc84] ss:$8 sps:$4 sm:$0xff]  }
 0xabe   : > { %v4989_v13 = vpop.f32.mrf.mxu0 }
 0xabf   : > { %v5028_v33 = vmul.f32 0.2, %v4988_v18  ;;  %v4990_v15 = vadd.f32 %v4989_v13, %v10199_v26  ;;  %5370 = vmatprep.mubr.bf16.mxu1 %v5110_v28  ;;  %v5059_v52 = vmax.f32 %v4986_v2, %v5027_v36 }
 0xac0   : > { %v4993_v31 = vpop.f32.mrf.mxu0  ;;  %5371 = vmatmul.mubr.bf16.gmra.mxu1 %v5109_v50 }
 0xac1   : > { %v5029_v56 = vmul.f32 0.2, %v4990_v15  ;;  %v5060_v40 = vmax.f32 %v4988_v18, %v5028_v33  ;;  %v4994_v35 = vadd.f32 %v4993_v31, %v10202_v30  ;;  %v7808_v33 = vld [vmem:[%s10491_s6 + $0xc94] ss:$8 sps:$4 sm:$0xff]   ;;  %v7809_v31 = vld [vmem:[%s10491_s6 + $0xc80] ss:$8 sps:$4 sm:$0xff]  }
 0xac2   : > { %v4995_v6 = vpop.f32.mrf.mxu0 }
 0xac3   : > { %v5061_v23 = vmax.f32 %v4990_v15, %v5029_v56  ;;  %v4996_v25 = vadd.f32 %v4995_v6, %v10199_v26  ;;  %v5111_v11 = vpack.c.bf16 %v5060_v40, %v5058_v10  ;;  %v5030_v9 = vmul.f32 0.2, %v4994_v35  ;;  %v7806_v15 = vld [vmem:[%s10491_s6 + $0xc90] ss:$8 sps:$4 sm:$0xff]   ;;  %v7818_v10 = vld [vmem:[%s10493_s8 + $0x60] sm:$0xff]  }
 0xac4   : > { %v4997_v58 = vpop.f32.mrf.mxu0  ;;  %v7812_v56 = vld [vmem:[%s10493_s8 + $0x78] sm:$0xff]   ;;  %v7814_v6 = vld [vmem:[%s10493_s8 + $0x70] sm:$0xff]  }
 0xac5   : > { %v4998_v0 = vadd.f32 %v4997_v58, %v10202_v30  ;;  %v5112_v62 = vpack.c.bf16 %v5061_v23, %v5059_v52  ;;  %v5031_v47 = vmul.f32 0.2, %v4996_v25  ;;  %v5062_v12 = vmax.f32 %v4994_v35, %v5030_v9  ;;  %v7805_v30 = vld [vmem:[%s10491_s6 + $0xca4] ss:$8 sps:$4 sm:$0xff]   ;;  %v7813_v40 = vld [vmem:[%s10493_s8 + $0x38] sm:$0xff]   ;;  %7078 = vmatprep.subr.bf16.mxu1 %v7812_v56  ;;  %v7815_v52 = vld [vmem:[%s10493_s8 + $0x30] sm:$0xff]  }
 0xac6   : > { %v4999_v32 = vpop.f32.mrf.mxu0  ;;  %5713 = vmatprep.subr.bf16.mxu0 %v7805_v30  ;;  %7079 = vmatpush3.bf16.msra.mxu1 %v7813_v40  ;;  %v7816_v23 = vld [vmem:[%s10493_s8 + $0x68] sm:$0xff]   ;;  %v7819_v35 = vld [vmem:[%s10493_s8 + $0x20] sm:$0xff]   ;;  %v7820_v58 = vld [vmem:[%s10493_s8 + $0x58] sm:$0xff]  }
 0xac7   : > { %v5032_v29 = vmul.f32 0.2, %v4998_v0  ;;  %v5000_v45 = vadd.f32 %v4999_v32, %v10199_v26  ;;  %5380 = vmatprep.mubr.bf16.mxu1 %v5112_v62  ;;  %v5063_v28 = vmax.f32 %v4996_v25, %v5031_v47  ;;  %v7803_v26 = vld [vmem:[%s10491_s6 + $0xca0] ss:$8 sps:$4 sm:$0xff]   ;;  %7080 = vmatprep.subr.bf16.mxu1 %v7814_v6  ;;  %v7822_v62 = vld [vmem:[%s10493_s8 + $0x50] sm:$0xff]  }
 0xac8   : > { %5381 = vmatmul.mubr.bf16.gmra.mxu1 %v5111_v11  ;;  %5714 = vmatpush2.bf16.msra.mxu0 %v7803_v26  ;;  %v7817_v25 = vld [vmem:[%s10493_s8 + $0x28] sm:$0xff]   ;;  %v7823_v11 = vld [vmem:[%s10493_s8 + $0x10] sm:$0xff]  }
 0xac9   : > { %v5033_v2 = vmul.f32 0.2, %v5000_v45  ;;  %v5064_v18 = vmax.f32 %v4998_v0, %v5032_v29  ;;  %5715 = vmatprep.subr.bf16.mxu0 %v7808_v33  ;;  %v7821_v0 = vld [vmem:[%s10493_s8 + $0x18] sm:$0xff]   ;;  %v7824_v32 = vld [vmem:[%s10493_s8 + $0x48] sm:$0xff]   ;;  %v6950_v29 = vld [vmem:[%s10492_s7 + $0x16] sm:$0x3] }
 0xaca   : > { %7081 = vmatpush3.bf16.msra.mxu1 %v7815_v52  ;;  %v7825_v47 = vld [vmem:[%s10493_s8 + $0x8] sm:$0xff]   ;;  %v10303_v9 = vrot.slane %v6950_v29, %v8067_v60 }
 0xacb   : > { %v5065_v50 = vmax.f32 %v5000_v45, %v5033_v2  ;;  %v5113_v36 = vpack.c.bf16 %v5064_v18, %v5062_v12  ;;  %7082 = vmatprep.subr.bf16.mxu1 %v7816_v23  ;;  %v10300_v45 = vrot.slane %v6950_v29, %v8209_v44 }
 0xacc   : > { %5716 = vmatpush2.bf16.msra.mxu0 %v7806_v15 }
 0xacd   : > { %v5114_v13 = vpack.c.bf16 %v5065_v50, %v5063_v28  ;;  %5717 = vmatprep.subr.bf16.mxu0 %v7811_v3 }
 0xace   : > { %7083 = vmatpush3.bf16.msra.mxu1 %v7817_v25 }
 0xacf   : > { %5390 = vmatprep.mubr.bf16.mxu1 %v5114_v13  ;;  %7084 = vmatprep.subr.bf16.mxu1 %v7818_v10 }
 0xad0   : > { %5391 = vmatmul.mubr.bf16.gmra.mxu1 %v5113_v36  ;;  %5718 = vmatpush2.bf16.msra.mxu0 %v7809_v31 }
 0xad2   : > { %7085 = vmatpush3.bf16.msra.mxu1 %v7819_v35 }
 0xad3   : > { %7086 = vmatprep.subr.bf16.mxu1 %v7820_v58 }
 0xad6   : > { %7087 = vmatpush3.bf16.msra.mxu1 %v7821_v0 }
 0xad7   : > { %7088 = vmatprep.subr.bf16.mxu1 %v7822_v62 }
 0xada   : > { %7089 = vmatpush3.bf16.msra.mxu1 %v7823_v11 }
 0xadb   : > { %7090 = vmatprep.subr.bf16.mxu1 %v7824_v32 }
 0xade   : > { %7091 = vmatpush3.bf16.msra.mxu1 %v7825_v47 }
 0xb58   : > { %v5322_v2 = vpop.f32.mrf.mxu1 }
 0xb59   : > { %v5323_v50 = vadd.f32 %v5322_v2, %v10303_v9 }
 0xb5a   : > { %v5324_v18 = vpop.f32.mrf.mxu1 }
 0xb5b   : > { %v5325_v28 = vadd.f32 %v5324_v18, %v10300_v45  ;;  %v5401_v15 = vmul.f32 0.2, %v5323_v50 }
 0xb5c   : > { %v5326_v12 = vpop.f32.mrf.mxu1 }
 0xb5d   : > { %v5327_v13 = vadd.f32 %v5326_v12, %v10303_v9  ;;  %v5402_v30 = vmul.f32 0.2, %v5325_v28  ;;  %v5433_v25 = vmax.f32 %v5323_v50, %v5401_v15 }
 0xb5e   : > { %v5328_v36 = vpop.f32.mrf.mxu1 }
 0xb5f   : > { %v5403_v26 = vmul.f32 0.2, %v5327_v13  ;;  %v5329_v33 = vadd.f32 %v5328_v36, %v10300_v45  ;;  %v5434_v6 = vmax.f32 %v5325_v28, %v5402_v30 }
 0xb60   : > { %v5332_v3 = vpop.f32.mrf.mxu1 }
 0xb61   : > { %v5404_v31 = vmul.f32 0.2, %v5329_v33  ;;  %v5435_v56 = vmax.f32 %v5327_v13, %v5403_v26  ;;  %v5333_v10 = vadd.f32 %v5332_v3, %v10303_v9 }
 0xb62   : > { %v5334_v40 = vpop.f32.mrf.mxu1 }
 0xb63   : > { %v5436_v52 = vmax.f32 %v5329_v33, %v5404_v31  ;;  %v5335_v23 = vadd.f32 %v5334_v40, %v10300_v45  ;;  %v5498_v62 = vpack.c.bf16 %v5435_v56, %v5433_v25  ;;  %v5405_v2 = vmul.f32 0.2, %v5333_v10 }
 0xb64   : > { %v5336_v35 = vpop.f32.mrf.mxu1 }
 0xb65   : > { %v5337_v58 = vadd.f32 %v5336_v35, %v10303_v9  ;;  %v5499_v0 = vpack.c.bf16 %v5436_v52, %v5434_v6  ;;  %v5406_v32 = vmul.f32 0.2, %v5335_v23  ;;  %v5437_v26 = vmax.f32 %v5333_v10, %v5405_v2 }
 0xb66   : > { %v5338_v11 = vpop.f32.mrf.mxu1 }
 0xb67   : > { %v5407_v47 = vmul.f32 0.2, %v5337_v58  ;;  %v5339_v29 = vadd.f32 %v5338_v11, %v10300_v45  ;;  %5719 = vmatprep.mubr.bf16.mxu0 %v5499_v0  ;;  %v5438_v50 = vmax.f32 %v5335_v23, %v5406_v32 }
 0xb68   : > { %v5342_v18 = vpop.f32.mrf.mxu1  ;;  %5720 = vmatmul.mubr.bf16.vlgmr.msra.gmra.mxu0 %v5498_v62 }
 0xb69   : > { %v5408_v28 = vmul.f32 0.2, %v5339_v29  ;;  %v5439_v12 = vmax.f32 %v5337_v58, %v5407_v47  ;;  %v5343_v33 = vadd.f32 %v5342_v18, %v10303_v9 }
 0xb6a   : > { %v5344_v13 = vpop.f32.mrf.mxu1 }
 0xb6b   : > { %v5440_v36 = vmax.f32 %v5339_v29, %v5408_v28  ;;  %v5345_v30 = vadd.f32 %v5344_v13, %v10300_v45  ;;  %v5500_v56 = vpack.c.bf16 %v5439_v12, %v5437_v26  ;;  %v5409_v35 = vmul.f32 0.2, %v5343_v33 }
 0xb6c   : > { %v5346_v15 = vpop.f32.mrf.mxu1 }
 0xb6d   : > { %v5347_v3 = vadd.f32 %v5346_v15, %v10303_v9  ;;  %v5501_v31 = vpack.c.bf16 %v5440_v36, %v5438_v50  ;;  %v5410_v6 = vmul.f32 0.2, %v5345_v30  ;;  %v5441_v47 = vmax.f32 %v5343_v33, %v5409_v35 }
 0xb6e   : > { %v5348_v40 = vpop.f32.mrf.mxu1 }
 0xb6f   : > { %v5411_v52 = vmul.f32 0.2, %v5347_v3  ;;  %v5349_v25 = vadd.f32 %v5348_v40, %v10300_v45  ;;  %5729 = vmatprep.mubr.bf16.mxu0 %v5501_v31  ;;  %v5442_v10 = vmax.f32 %v5345_v30, %v5410_v6 }
 0xb70   : > { %v5352_v58 = vpop.f32.mrf.mxu1  ;;  %5730 = vmatmul.mubr.bf16.gmra.mxu0 %v5500_v56 }
 0xb71   : > { %v5412_v23 = vmul.f32 0.2, %v5349_v25  ;;  %v5443_v0 = vmax.f32 %v5347_v3, %v5411_v52  ;;  %v5353_v29 = vadd.f32 %v5352_v58, %v10303_v9 }
 0xb72   : > { %v5354_v62 = vpop.f32.mrf.mxu1 }
 0xb73   : > { %v5444_v11 = vmax.f32 %v5349_v25, %v5412_v23  ;;  %v5355_v32 = vadd.f32 %v5354_v62, %v10300_v45  ;;  %v5502_v12 = vpack.c.bf16 %v5443_v0, %v5441_v47  ;;  %v5413_v15 = vmul.f32 0.2, %v5353_v29 }
 0xb74   : > { %v5356_v2 = vpop.f32.mrf.mxu1 }
 0xb75   : > { %v5357_v18 = vadd.f32 %v5356_v2, %v10303_v9  ;;  %v5503_v28 = vpack.c.bf16 %v5444_v11, %v5442_v10  ;;  %v5414_v50 = vmul.f32 0.2, %v5355_v32  ;;  %v5445_v52 = vmax.f32 %v5353_v29, %v5413_v15 }
 0xb76   : > { %v5358_v13 = vpop.f32.mrf.mxu1 }
 0xb77   : > { %v5415_v36 = vmul.f32 0.2, %v5357_v18  ;;  %v5359_v26 = vadd.f32 %v5358_v13, %v10300_v45  ;;  %5739 = vmatprep.mubr.bf16.mxu0 %v5503_v28  ;;  %v5446_v33 = vmax.f32 %v5355_v32, %v5414_v50 }
 0xb78   : > { %v5362_v3 = vpop.f32.mrf.mxu1  ;;  %5740 = vmatmul.mubr.bf16.gmra.mxu0 %v5502_v12 }
 0xb79   : > { %v5416_v30 = vmul.f32 0.2, %v5359_v26  ;;  %v5447_v31 = vmax.f32 %v5357_v18, %v5415_v36  ;;  %v5363_v25 = vadd.f32 %v5362_v3, %v10303_v9 }
 0xb7a   : > { %v5364_v56 = vpop.f32.mrf.mxu1 }
 0xb7b   : > { %v5448_v40 = vmax.f32 %v5359_v26, %v5416_v30  ;;  %v5365_v6 = vadd.f32 %v5364_v56, %v10300_v45  ;;  %v5504_v0 = vpack.c.bf16 %v5447_v31, %v5445_v52  ;;  %v5417_v2 = vmul.f32 0.2, %v5363_v25 }
 0xb7c   : > { %v5366_v35 = vpop.f32.mrf.mxu1 }
 0xb7d   : > { %v5367_v58 = vadd.f32 %v5366_v35, %v10303_v9  ;;  %v5505_v23 = vpack.c.bf16 %v5448_v40, %v5446_v33  ;;  %v5418_v10 = vmul.f32 0.2, %v5365_v6  ;;  %v5449_v36 = vmax.f32 %v5363_v25, %v5417_v2 }
 0xb7e   : > { %v5368_v62 = vpop.f32.mrf.mxu1 }
 0xb7f   : > { %v5419_v11 = vmul.f32 0.2, %v5367_v58  ;;  %v5369_v47 = vadd.f32 %v5368_v62, %v10300_v45  ;;  %5749 = vmatprep.mubr.bf16.mxu0 %v5505_v23  ;;  %v5450_v29 = vmax.f32 %v5365_v6, %v5418_v10 }
 0xb80   : > { %v5372_v18 = vpop.f32.mrf.mxu1  ;;  %5750 = vmatmul.mubr.bf16.gmra.mxu0 %v5504_v0 }
 0xb81   : > { %v5420_v32 = vmul.f32 0.2, %v5369_v47  ;;  %v5451_v28 = vmax.f32 %v5367_v58, %v5419_v11  ;;  %v5373_v26 = vadd.f32 %v5372_v18, %v10303_v9 }
 0xb82   : > { %v5374_v12 = vpop.f32.mrf.mxu1 }
 0xb83   : > { %v5452_v13 = vmax.f32 %v5369_v47, %v5420_v32  ;;  %v5375_v50 = vadd.f32 %v5374_v12, %v10300_v45  ;;  %v5506_v31 = vpack.c.bf16 %v5451_v28, %v5449_v36  ;;  %v5421_v35 = vmul.f32 0.2, %v5373_v26 }
 0xb84   : > { %v5376_v15 = vpop.f32.mrf.mxu1 }
 0xb85   : > { %v5377_v3 = vadd.f32 %v5376_v15, %v10303_v9  ;;  %v5507_v30 = vpack.c.bf16 %v5452_v13, %v5450_v29  ;;  %v5422_v33 = vmul.f32 0.2, %v5375_v50  ;;  %v5453_v11 = vmax.f32 %v5373_v26, %v5421_v35 }
 0xb86   : > { %v5378_v56 = vpop.f32.mrf.mxu1 }
 0xb87   : > { %v5423_v40 = vmul.f32 0.2, %v5377_v3  ;;  %v5379_v52 = vadd.f32 %v5378_v56, %v10300_v45  ;;  %5759 = vmatprep.mubr.bf16.mxu0 %v5507_v30  ;;  %v5454_v25 = vmax.f32 %v5375_v50, %v5422_v33 }
 0xb88   : > { %v5382_v58 = vpop.f32.mrf.mxu1  ;;  %5760 = vmatmul.mubr.bf16.gmra.mxu0 %v5506_v31 }
 0xb89   : > { %v5424_v6 = vmul.f32 0.2, %v5379_v52  ;;  %v5455_v23 = vmax.f32 %v5377_v3, %v5423_v40  ;;  %v5383_v47 = vadd.f32 %v5382_v58, %v10303_v9 }
 0xb8a   : > { %v5384_v0 = vpop.f32.mrf.mxu1 }
 0xb8b   : > { %v5456_v62 = vmax.f32 %v5379_v52, %v5424_v6  ;;  %v5385_v10 = vadd.f32 %v5384_v0, %v10300_v45  ;;  %v5508_v28 = vpack.c.bf16 %v5455_v23, %v5453_v11  ;;  %v5425_v15 = vmul.f32 0.2, %v5383_v47 }
 0xb8c   : > { %v5386_v2 = vpop.f32.mrf.mxu1 }
 0xb8d   : > { %v5387_v18 = vadd.f32 %v5386_v2, %v10303_v9  ;;  %v5509_v32 = vpack.c.bf16 %v5456_v62, %v5454_v25  ;;  %v5426_v29 = vmul.f32 0.2, %v5385_v10  ;;  %v5457_v40 = vmax.f32 %v5383_v47, %v5425_v15 }
 0xb8e   : > { %v5388_v12 = vpop.f32.mrf.mxu1 }
 0xb8f   : > { %v5427_v13 = vmul.f32 0.2, %v5387_v18  ;;  %v5389_v36 = vadd.f32 %v5388_v12, %v10300_v45  ;;  %5769 = vmatprep.mubr.bf16.mxu0 %v5509_v32  ;;  %v5458_v26 = vmax.f32 %v5385_v10, %v5426_v29 }
 0xb90   : > { %v5392_v3 = vpop.f32.mrf.mxu1  ;;  %5770 = vmatmul.mubr.bf16.gmra.mxu0 %v5508_v28 }
 0xb91   : > { %v5428_v50 = vmul.f32 0.2, %v5389_v36  ;;  %v5459_v30 = vmax.f32 %v5387_v18, %v5427_v13  ;;  %v5393_v52 = vadd.f32 %v5392_v3, %v10303_v9  ;;  %v7015_v13 = vld [vmem:[%s10492_s7 + $0x18] sm:$0x3] }
 0xb92   : > { %v5394_v31 = vpop.f32.mrf.mxu1  ;;  %v10347_v15 = vrot.slane %v7015_v13, %v8209_v44  ;;  %v10350_v3 = vrot.slane %v7015_v13, %v8067_v60 }
 0xb93   : > { %v5460_v56 = vmax.f32 %v5389_v36, %v5428_v50  ;;  %v5395_v33 = vadd.f32 %v5394_v31, %v10300_v45  ;;  %v5510_v23 = vpack.c.bf16 %v5459_v30, %v5457_v40  ;;  %v5429_v2 = vmul.f32 0.2, %v5393_v52 }
 0xb94   : > { %v5396_v35 = vpop.f32.mrf.mxu1 }
 0xb95   : > { %v5397_v58 = vadd.f32 %v5396_v35, %v10303_v9  ;;  %v5511_v6 = vpack.c.bf16 %v5460_v56, %v5458_v26  ;;  %v5430_v25 = vmul.f32 0.2, %v5395_v33  ;;  %v5461_v47 = vmax.f32 %v5393_v52, %v5429_v2  ;;  %v7826_v9 = vld [vmem:[%s10493_s8 + $0x40] sm:$0xff]  }
 0xb96   : > { %v5398_v0 = vpop.f32.mrf.mxu1  ;;  %7092 = vmatprep.subr.bf16.mxu1 %v7826_v9 }
 0xb97   : > { %v5431_v62 = vmul.f32 0.2, %v5397_v58  ;;  %v5399_v11 = vadd.f32 %v5398_v0, %v10300_v45  ;;  %5779 = vmatprep.mubr.bf16.mxu0 %v5511_v6  ;;  %v5462_v32 = vmax.f32 %v5395_v33, %v5430_v25  ;;  %v7827_v45 = vld [vmem:[%s10493_s8] sm:$0xff]  }
 0xb98   : > { %5780 = vmatmul.mubr.bf16.gmra.mxu0 %v5510_v23  ;;  %7093 = vmatpush3.bf16.msra.mxu1 %v7827_v45 }
 0xb99   : > { %v5432_v10 = vmul.f32 0.2, %v5399_v11  ;;  %v5463_v18 = vmax.f32 %v5397_v58, %v5431_v62 }
 0xb9b   : > { %v5464_v28 = vmax.f32 %v5399_v11, %v5432_v10  ;;  %v5512_v29 = vpack.c.bf16 %v5463_v18, %v5461_v47 }
 0xb9d   : > { %v5513_v12 = vpack.c.bf16 %v5464_v28, %v5462_v32 }
 0xb9f   : > { %5789 = vmatprep.mubr.bf16.mxu0 %v5513_v12 }
 0xba0   : > { %5790 = vmatmul.mubr.bf16.gmra.mxu0 %v5512_v29 }
 0xc28   : > { %v5721_v36 = vpop.f32.mrf.mxu0 }
 0xc29   : > { %v5722_v56 = vadd.f32 %v5721_v36, %v10350_v3 }
 0xc2a   : > { %v5723_v50 = vpop.f32.mrf.mxu0 }
 0xc2b   : > { %v5724_v31 = vadd.f32 %v5723_v50, %v10347_v15  ;;  %v5800_v60 = vadd.f32 %v5722_v56, %v9953_v27 }
 0xc2c   : > { %v5725_v30 = vpop.f32.mrf.mxu0 }
 0xc2d   : > { %v5726_v26 = vadd.f32 %v5725_v30, %v10350_v3  ;;  %v5801_v44 = vadd.f32 %v5724_v31, %v9947_v39 }
 0xc2e   : > { %v5727_v33 = vpop.f32.mrf.mxu0 }
 0xc2f   : > { %v5728_v40 = vadd.f32 %v5727_v33, %v10347_v15  ;;  %v5802_v52 = vadd.f32 %v5726_v26, %v9944_v14 }
 0xc30   : > { %v5731_v35 = vpop.f32.mrf.mxu0 }
 0xc31   : > { %v5803_v58 = vadd.f32 %v5728_v40, %v9950_v54  ;;  %v5864_v0 = vpack.c.bf16 %v5802_v52, %v5800_v60  ;;  %v5732_v2 = vadd.f32 %v5731_v35, %v10350_v3 }
 0xc32   : > { %v5733_v6 = vpop.f32.mrf.mxu0 }
 0xc33   : > { %v5865_v23 = vpack.c.bf16 %v5803_v58, %v5801_v44  ;;  %v5734_v62 = vadd.f32 %v5733_v6, %v10347_v15  ;;  %v5804_v32 = vadd.f32 %v5732_v2, %v9973_v21 }
 0xc34   : > { %v5735_v25 = vpop.f32.mrf.mxu0 }
 0xc35   : > { %v5736_v11 = vadd.f32 %v5735_v25, %v10350_v3  ;;  %6015 = vmatprep.mubr.bf16.mxu1 %v5865_v23  ;;  %v5805_v27 = vadd.f32 %v5734_v62, %v9967_v53 }
 0xc36   : > { %v5737_v10 = vpop.f32.mrf.mxu0  ;;  %6016 = vmatmul.mubr.bf16.vlgmr.msra.gmra.mxu1 %v5864_v0 }
 0xc37   : > { %v5738_v14 = vadd.f32 %v5737_v10, %v10347_v15  ;;  %v5806_v39 = vadd.f32 %v5736_v11, %v9964_v57 }
 0xc38   : > { %v5741_v54 = vpop.f32.mrf.mxu0 }
 0xc39   : > { %v5807_v18 = vadd.f32 %v5738_v14, %v9970_v7  ;;  %v5866_v12 = vpack.c.bf16 %v5806_v39, %v5804_v32  ;;  %v5742_v13 = vadd.f32 %v5741_v54, %v10350_v3 }
 0xc3a   : > { %v5743_v28 = vpop.f32.mrf.mxu0 }
 0xc3b   : > { %v5867_v47 = vpack.c.bf16 %v5807_v18, %v5805_v27  ;;  %v5744_v9 = vadd.f32 %v5743_v28, %v10347_v15  ;;  %v5808_v30 = vadd.f32 %v5742_v13, %v9993_v37 }
 0xc3c   : > { %v5745_v29 = vpop.f32.mrf.mxu0 }
 0xc3d   : > { %v5746_v45 = vadd.f32 %v5745_v29, %v10350_v3  ;;  %6023 = vmatprep.mubr.bf16.mxu1 %v5867_v47  ;;  %v5809_v21 = vadd.f32 %v5744_v9, %v9987_v42 }
 0xc3e   : > { %v5747_v36 = vpop.f32.mrf.mxu0  ;;  %6024 = vmatmul.mubr.bf16.gmra.mxu1 %v5866_v12 }
 0xc3f   : > { %v5748_v57 = vadd.f32 %v5747_v36, %v10347_v15  ;;  %v5810_v53 = vadd.f32 %v5746_v45, %v9984_v19 }
 0xc40   : > { %v5751_v7 = vpop.f32.mrf.mxu0 }
 0xc41   : > { %v5811_v50 = vadd.f32 %v5748_v57, %v9990_v34  ;;  %v5868_v56 = vpack.c.bf16 %v5810_v53, %v5808_v30  ;;  %v5752_v35 = vadd.f32 %v5751_v7, %v10350_v3 }
 0xc42   : > { %v5753_v31 = vpop.f32.mrf.mxu0 }
 0xc43   : > { %v5869_v26 = vpack.c.bf16 %v5811_v50, %v5809_v21  ;;  %v5754_v40 = vadd.f32 %v5753_v31, %v10347_v15  ;;  %v5812_v60 = vadd.f32 %v5752_v35, %v10013_v5 }
 0xc44   : > { %v5755_v33 = vpop.f32.mrf.mxu0 }
 0xc45   : > { %v5756_v52 = vadd.f32 %v5755_v33, %v10350_v3  ;;  %6031 = vmatprep.mubr.bf16.mxu1 %v5869_v26  ;;  %v5813_v37 = vadd.f32 %v5754_v40, %v10007_v38 }
 0xc46   : > { %v5757_v44 = vpop.f32.mrf.mxu0  ;;  %6032 = vmatmul.mubr.bf16.gmra.mxu1 %v5868_v56 }
 0xc47   : > { %v5758_v19 = vadd.f32 %v5757_v44, %v10347_v15  ;;  %v5814_v42 = vadd.f32 %v5756_v52, %v10004_v16 }
 0xc48   : > { %v5761_v34 = vpop.f32.mrf.mxu0 }
 0xc49   : > { %v5815_v58 = vadd.f32 %v5758_v19, %v10010_v43  ;;  %v5870_v0 = vpack.c.bf16 %v5814_v42, %v5812_v60  ;;  %v5762_v2 = vadd.f32 %v5761_v34, %v10350_v3 }
 0xc4a   : > { %v5763_v6 = vpop.f32.mrf.mxu0 }
 0xc4b   : > { %v5871_v23 = vpack.c.bf16 %v5815_v58, %v5813_v37  ;;  %v5764_v62 = vadd.f32 %v5763_v6, %v10347_v15  ;;  %v5816_v39 = vadd.f32 %v5762_v2, %v10033_v17 }
 0xc4c   : > { %v5765_v25 = vpop.f32.mrf.mxu0 }
 0xc4d   : > { %v5766_v11 = vadd.f32 %v5765_v25, %v10350_v3  ;;  %6039 = vmatprep.mubr.bf16.mxu1 %v5871_v23  ;;  %v5817_v5 = vadd.f32 %v5764_v62, %v10027_v51 }
 0xc4e   : > { %v5767_v10 = vpop.f32.mrf.mxu0  ;;  %6040 = vmatmul.mubr.bf16.gmra.mxu1 %v5870_v0 }
 0xc4f   : > { %v5768_v16 = vadd.f32 %v5767_v10, %v10347_v15  ;;  %v5818_v38 = vadd.f32 %v5766_v11, %v10024_v55 }
 0xc50   : > { %v5771_v43 = vpop.f32.mrf.mxu0 }
 0xc51   : > { %v5819_v14 = vadd.f32 %v5768_v16, %v10030_v24  ;;  %v5872_v18 = vpack.c.bf16 %v5818_v38, %v5816_v39  ;;  %v5772_v12 = vadd.f32 %v5771_v43, %v10350_v3 }
 0xc52   : > { %v5773_v54 = vpop.f32.mrf.mxu0 }
 0xc53   : > { %v5873_v27 = vpack.c.bf16 %v5819_v14, %v5817_v5  ;;  %v5774_v28 = vadd.f32 %v5773_v54, %v10347_v15  ;;  %v5820_v45 = vadd.f32 %v5772_v12, %v10053_v63 }
 0xc54   : > { %v5775_v32 = vpop.f32.mrf.mxu0 }
 0xc55   : > { %v5776_v47 = vadd.f32 %v5775_v32, %v10350_v3  ;;  %6047 = vmatprep.mubr.bf16.mxu1 %v5873_v27  ;;  %v5821_v17 = vadd.f32 %v5774_v28, %v10047_v61 }
 0xc56   : > { %v5777_v29 = vpop.f32.mrf.mxu0  ;;  %6048 = vmatmul.mubr.bf16.gmra.mxu1 %v5872_v18 }
 0xc57   : > { %v5778_v55 = vadd.f32 %v5777_v29, %v10347_v15  ;;  %v5822_v51 = vadd.f32 %v5776_v47, %v10044_v20 }
 0xc58   : > { %v5781_v24 = vpop.f32.mrf.mxu0 }
 0xc59   : > { %v5823_v9 = vadd.f32 %v5778_v55, %v10050_v49  ;;  %v5874_v57 = vpack.c.bf16 %v5822_v51, %v5820_v45  ;;  %v5782_v50 = vadd.f32 %v5781_v24, %v10350_v3 }
 0xc5a   : > { %v5783_v13 = vpop.f32.mrf.mxu0 }
 0xc5b   : > { %v5875_v36 = vpack.c.bf16 %v5823_v9, %v5821_v17  ;;  %v5784_v7 = vadd.f32 %v5783_v13, %v10347_v15  ;;  %v5824_v26 = vadd.f32 %v5782_v50, %v10073_v1 }
 0xc5c   : > { %v5785_v53 = vpop.f32.mrf.mxu0 }
 0xc5d   : > { %v5786_v21 = vadd.f32 %v5785_v53, %v10350_v3  ;;  %6055 = vmatprep.mubr.bf16.mxu1 %v5875_v36  ;;  %v5825_v63 = vadd.f32 %v5784_v7, %v10067_v46 }
 0xc5e   : > { %v5787_v30 = vpop.f32.mrf.mxu0  ;;  %6056 = vmatmul.mubr.bf16.gmra.mxu1 %v5874_v57 }
 0xc5f   : > { %v5788_v20 = vadd.f32 %v5787_v30, %v10347_v15  ;;  %v5826_v61 = vadd.f32 %v5786_v21, %v10064_v4 }
 0xc60   : > { %v5791_v49 = vpop.f32.mrf.mxu0 }
 0xc61   : > { %v5827_v31 = vadd.f32 %v5788_v20, %v10070_v59  ;;  %v5876_v40 = vpack.c.bf16 %v5826_v61, %v5824_v26  ;;  %v5792_v19 = vadd.f32 %v5791_v49, %v10350_v3 }
 0xc62   : > { %v5793_v56 = vpop.f32.mrf.mxu0 }
 0xc63   : > { %v5877_v33 = vpack.c.bf16 %v5827_v31, %v5825_v63  ;;  %v5794_v35 = vadd.f32 %v5793_v56, %v10347_v15  ;;  %v5828_v34 = vadd.f32 %v5792_v19, %v10093_v8 }
 0xc64   : > { %v5795_v52 = vpop.f32.mrf.mxu0 }
 0xc65   : > { %v5796_v44 = vadd.f32 %v5795_v52, %v10350_v3  ;;  %6063 = vmatprep.mubr.bf16.mxu1 %v5877_v33  ;;  %v5829_v59 = vadd.f32 %v5794_v35, %v10087_v48  ;;  %v10419_v3 = vld [vmem:[%s10494_s9] ss:$0 sm:$0xff] }
 0xc66   : > { %v5797_v42 = vpop.f32.mrf.mxu0  ;;  %6064 = vmatmul.mubr.bf16.gmra.mxu1 %v5876_v40 }
 0xc67   : > { %v5798_v4 = vadd.f32 %v5797_v42, %v10347_v15  ;;  %v5830_v46 = vadd.f32 %v5796_v44, %v10084_v22 }
 0xc69   : > { %v5831_v1 = vadd.f32 %v5798_v4, %v10090_v41  ;;  %v5878_v58 = vpack.c.bf16 %v5830_v46, %v5828_v34 }
 0xc6b   : > { %v5879_v37 = vpack.c.bf16 %v5831_v1, %v5829_v59 }
 0xc6d   : > { %6071 = vmatprep.mubr.bf16.mxu1 %v5879_v37 }
 0xc6e   : > { %6072 = vmatmul.mubr.bf16.gmra.mxu1 %v5878_v58 }
 0xcf6   : > { %v7094_v60 = vpop.f32.mrf.mxu1 }
 0xcf8   : > { %v7095_v6 = vpop.f32.mrf.mxu1 }
 0xcf9   : > { %v7096_v15 = vadd.f32 %v7095_v6, %v7094_v60 }
 0xcfa   : > { %v7097_v23 = vpop.f32.mrf.mxu1 }
 0xcfb   : > { %v6018_v22 = vadd.f32 %v7096_v15, %v10419_v3 }
 0xcfc   : > { %v7098_v48 = vpop.f32.mrf.mxu1 }
 0xcfd   : > { %7828 = vtanh.f32 %v6018_v22  ;;  %v7099_v41 = vadd.f32 %v7098_v48, %v7097_v23 }
 0xcfe   : > { %v7100_v8 = vpop.f32.mrf.mxu1 }
 0xcff   : > { %v6021_v0 = vadd.f32 %v7099_v41, %v10419_v3 }
 0xd00   : > { %v7101_v25 = vpop.f32.mrf.mxu1 }
 0xd01   : > { %7830 = vtanh.f32 %v6021_v0  ;;  %v7102_v62 = vadd.f32 %v7101_v25, %v7100_v8 }
 0xd02   : > { %v7103_v11 = vpop.f32.mrf.mxu1 }
 0xd03   : > { %v6026_v2 = vadd.f32 %v7102_v62, %v10419_v3 }
 0xd04   : > { %v7104_v10 = vpop.f32.mrf.mxu1 }
 0xd05   : > { %7832 = vtanh.f32 %v6026_v2  ;;  %v7105_v16 = vadd.f32 %v7104_v10, %v7103_v11 }
 0xd06   : > { %v7106_v38 = vpop.f32.mrf.mxu1 }
 0xd07   : > { %v6029_v43 = vadd.f32 %v7105_v16, %v10419_v3 }
 0xd08   : > { %v7107_v5 = vpop.f32.mrf.mxu1 }
 0xd09   : > { %7834 = vtanh.f32 %v6029_v43  ;;  %v7108_v14 = vadd.f32 %v7107_v5, %v7106_v38 }
 0xd0a   : > { %v7829_v39 = vpop.eup %7828  ;;  %v7109_v54 = vpop.f32.mrf.mxu1 }
 0xd0b   : > { %6096 = vst.msk [vmem:[%s10430_s26] sm:$0xff] %vm448_vm1, %v7829_v39  ;;  %v6034_v27 = vadd.f32 %v7108_v14, %v10419_v3 }
 0xd0c   : > { %v7110_v18 = vpop.f32.mrf.mxu1 }
 0xd0d   : > { %7836 = vtanh.f32 %v6034_v27  ;;  %v7111_v32 = vadd.f32 %v7110_v18, %v7109_v54 }
 0xd0e   : > { %v7831_v28 = vpop.eup %7830  ;;  %v7112_v47 = vpop.f32.mrf.mxu1 }
 0xd0f   : > { %6097 = vst.msk [vmem:[%s10430_s26 + $0x8] sm:$0xff] %vm448_vm1, %v7831_v28  ;;  %v6037_v12 = vadd.f32 %v7111_v32, %v10419_v3 }
 0xd10   : > { %v7113_v29 = vpop.f32.mrf.mxu1 }
 0xd11   : > { %7838 = vtanh.f32 %v6037_v12  ;;  %v7114_v55 = vadd.f32 %v7113_v29, %v7112_v47 }
 0xd12   : > { %v7833_v51 = vpop.eup %7832  ;;  %v7115_v24 = vpop.f32.mrf.mxu1 }
 0xd13   : > { %6098 = vst.msk [vmem:[%s10430_s26 + $0x10] sm:$0xff] %vm448_vm1, %v7833_v51  ;;  %v6042_v17 = vadd.f32 %v7114_v55, %v10419_v3 }
 0xd14   : > { %v7116_v9 = vpop.f32.mrf.mxu1 }
 0xd15   : > { %7840 = vtanh.f32 %v6042_v17  ;;  %v7117_v45 = vadd.f32 %v7116_v9, %v7115_v24 }
 0xd16   : > { %v7835_v13 = vpop.eup %7834  ;;  %v7118_v36 = vpop.f32.mrf.mxu1 }
 0xd17   : > { %6099 = vst.msk [vmem:[%s10430_s26 + $0x18] sm:$0xff] %vm448_vm1, %v7835_v13  ;;  %v6045_v57 = vadd.f32 %v7117_v45, %v10419_v3 }
 0xd18   : > { %v7119_v53 = vpop.f32.mrf.mxu1 }
 0xd19   : > { %7842 = vtanh.f32 %v6045_v57  ;;  %v7120_v7 = vadd.f32 %v7119_v53, %v7118_v36 }
 0xd1a   : > { %v7837_v21 = vpop.eup %7836  ;;  %v7121_v50 = vpop.f32.mrf.mxu1 }
 0xd1b   : > { %6100 = vst.msk [vmem:[%s10430_s26 + $0x20] sm:$0xff] %vm448_vm1, %v7837_v21  ;;  %v6050_v30 = vadd.f32 %v7120_v7, %v10419_v3 }
 0xd1c   : > { %v7122_v20 = vpop.f32.mrf.mxu1 }
 0xd1d   : > { %7844 = vtanh.f32 %v6050_v30  ;;  %v7123_v61 = vadd.f32 %v7122_v20, %v7121_v50 }
 0xd1e   : > { %v7839_v49 = vpop.eup %7838  ;;  %v7124_v63 = vpop.f32.mrf.mxu1 }
 0xd1f   : > { %6101 = vst.msk [vmem:[%s10430_s26 + $0x28] sm:$0xff] %vm448_vm1, %v7839_v49  ;;  %v6053_v31 = vadd.f32 %v7123_v61, %v10419_v3 }
 0xd20   : > { %v7125_v26 = vpop.f32.mrf.mxu1 }
 0xd21   : > { %7846 = vtanh.f32 %v6053_v31  ;;  %v7126_v56 = vadd.f32 %v7125_v26, %v7124_v63 }
 0xd22   : > { %v7841_v33 = vpop.eup %7840  ;;  %v7127_v40 = vpop.f32.mrf.mxu1 }
 0xd23   : > { %6102 = vst.msk [vmem:[%s10430_s26 + $0x30] sm:$0xff] %vm448_vm1, %v7841_v33  ;;  %v6058_v52 = vadd.f32 %v7126_v56, %v10419_v3 }
 0xd24   : > { %v7128_v35 = vpop.f32.mrf.mxu1 }
 0xd25   : > { %7848 = vtanh.f32 %v6058_v52  ;;  %v7129_v44 = vadd.f32 %v7128_v35, %v7127_v40 }
 0xd26   : > { %v7843_v19 = vpop.eup %7842  ;;  %v7130_v42 = vpop.f32.mrf.mxu1 }
 0xd27   : > { %6103 = vst.msk [vmem:[%s10430_s26 + $0x38] sm:$0xff] %vm448_vm1, %v7843_v19  ;;  %v6061_v4 = vadd.f32 %v7129_v44, %v10419_v3 }
 0xd28   : > { %v7131_v46 = vpop.f32.mrf.mxu1 }
 0xd29   : > { %7850 = vtanh.f32 %v6061_v4  ;;  %v7132_v59 = vadd.f32 %v7131_v46, %v7130_v42 }
 0xd2a   : > { %v7845_v1 = vpop.eup %7844  ;;  %v7133_v34 = vpop.f32.mrf.mxu1 }
 0xd2b   : > { %6104 = vst.msk [vmem:[%s10430_s26 + $0x40] sm:$0xff] %vm448_vm1, %v7845_v1  ;;  %v6066_v37 = vadd.f32 %v7132_v59, %v10419_v3 }
 0xd2c   : > { %v7134_v58 = vpop.f32.mrf.mxu1 }
 0xd2d   : > { %7852 = vtanh.f32 %v6066_v37  ;;  %v7135_v60 = vadd.f32 %v7134_v58, %v7133_v34 }
 0xd2e   : > { %v7847_v6 = vpop.eup %7846  ;;  %v7136_v15 = vpop.f32.mrf.mxu1 }
 0xd2f   : > { %6105 = vst.msk [vmem:[%s10430_s26 + $0x48] sm:$0xff] %vm448_vm1, %v7847_v6  ;;  %v6069_v23 = vadd.f32 %v7135_v60, %v10419_v3 }
 0xd30   : > { %v7137_v22 = vpop.f32.mrf.mxu1 }
 0xd31   : > { %7854 = vtanh.f32 %v6069_v23  ;;  %v7138_v48 = vadd.f32 %v7137_v22, %v7136_v15 }
 0xd32   : > { %v7849_v41 = vpop.eup %7848  ;;  %v7139_v8 = vpop.f32.mrf.mxu1 }
 0xd33   : > { %6106 = vst.msk [vmem:[%s10430_s26 + $0x50] sm:$0xff] %vm448_vm1, %v7849_v41  ;;  %v6074_v0 = vadd.f32 %v7138_v48, %v10419_v3 }
 0xd34   : > { %v7140_v25 = vpop.f32.mrf.mxu1 }
 0xd35   : > { %7856 = vtanh.f32 %v6074_v0  ;;  %v7141_v62 = vadd.f32 %v7140_v25, %v7139_v8 }
 0xd36   : > { %v7851_v11 = vpop.eup %7850 }
 0xd37   : > { %6107 = vst.msk [vmem:[%s10430_s26 + $0x58] sm:$0xff] %vm448_vm1, %v7851_v11  ;;  %v6077_v2 = vadd.f32 %v7141_v62, %v10419_v3 }
 0xd39   : > { %7858 = vtanh.f32 %v6077_v2 }
 0xd3a   : > { %v7853_v10 = vpop.eup %7852 }
 0xd3b   : > { %6108 = vst.msk [vmem:[%s10430_s26 + $0x60] sm:$0xff] %vm448_vm1, %v7853_v10 }
 0xd3e   : > { %v7855_v16 = vpop.eup %7854 }
 0xd3f   : > { %6109 = vst.msk [vmem:[%s10430_s26 + $0x68] sm:$0xff] %vm448_vm1, %v7855_v16 }
 0xd42   : > { %v7857_v38 = vpop.eup %7856 }
 0xd43   : > { %6110 = vst.msk [vmem:[%s10430_s26 + $0x70] sm:$0xff] %vm448_vm1, %v7857_v38 }
 0xd46   : > { %v7859_v43 = vpop.eup %7858 }
 0xd47   : > { %6111 = vst.msk [vmem:[%s10430_s26 + $0x78] sm:$0xff] %vm448_vm1, %v7859_v43 }
 0xd48 PF: > { %s20_s15 = sadd.s32 1, %s7882_s15   ;;  %s10496_s13 = smov %s7878_s14 }
 0xd49   : > { %p17_p5 = scmp.ge.s32.totalorder %s20_s15, 4   ;;  %s10497_s14 = smov %s10499_s16 }
 0xd4b   :  { %19 = sbr.rel (!%p17_p5) target bundleno = 2 (0x2), region = 117 }

</bundles_post_ra>
